<compile_context>
chip_gen: v5e
topology: v5e:2x2
jax: 0.10.0
libtpu: 0.0.40
codegen_flags: <defaults>
</compile_context>

<pallas_src>
import functools

import jax
import jax.numpy as jnp
from jax.experimental import pallas as pl
from jax.experimental.pallas import tpu as pltpu


def _round_up(x, m):
    return ((x + m - 1) // m) * m


def _bytes(shape, dtype):
    n = 1
    for d in shape:
        n *= int(d)
    return n * jnp.dtype(dtype).itemsize


def _vmem_limit(total_block_bytes):
    # Double-buffered blocks + headroom for compiler scratch / spills.
    # Clamp to 64 MiB so the request is always legal on v7x (64 MiB VMEM/TC);
    # on v5e/v6e this could be raised toward ~100 MiB for bigger tiles.
    limit = 2 * total_block_bytes + (8 << 20)
    return int(min(max(limit, 16 << 20), 64 << 20))


# ----------------------------------------------------------------------------
# One-time parameter layout prep (hoisted out of the forward pass).
# ----------------------------------------------------------------------------
def prepare_params(params, *, plain_last=True, matmul_dtype=jnp.float32):
    num_types = params["num_types"]
    num_layers = len(params["lin_w"])
    n_norm = num_layers - 1 if plain_last else num_layers
    layers = []
    for i in range(num_layers):
        w = params["lin_w"][i].astype(jnp.float32)   # (T, Fin, Fout)
        b = params["lin_b"][i].astype(jnp.float32)   # (T, Fout)
        _, fin, fout = w.shape
        fin_pad, fout_pad = _round_up(fin, 128), _round_up(fout, 128)
        fold_bias = fin < fin_pad                     # slack row available?

        w_pad = jnp.zeros((num_types, fin_pad, fout_pad), jnp.float32
                          ).at[:, :fin, :fout].set(w)
        b_pad = None
        if fold_bias:
            # Bias lives in padded Fin row `fin`; kernel feeds a 1.0 there.
            w_pad = w_pad.at[:, fin, :fout].set(b)
        else:
            b_pad = jnp.zeros((num_types, fout_pad), jnp.float32
                              ).at[:, :fout].set(b)
        # All types share one wide MXU matmul: (Fin_pad, T*Fout_pad).
        w_wide = jnp.transpose(w_pad, (1, 0, 2)).reshape(
            fin_pad, num_types * fout_pad).astype(matmul_dtype)

        g_pad = be_pad = None
        if i < n_norm:
            g_pad = jnp.ones((num_types, fout_pad), jnp.float32
                             ).at[:, :fout].set(params["bn_gamma"][i].astype(jnp.float32))
            be_pad = jnp.zeros((num_types, fout_pad), jnp.float32
                               ).at[:, :fout].set(params["bn_beta"][i].astype(jnp.float32))

        layers.append(dict(w_wide=w_wide, b_pad=b_pad, fold_bias=fold_bias,
                           fin=fin, fout=fout, fin_pad=fin_pad,
                           fout_pad=fout_pad, g_pad=g_pad, be_pad=be_pad))
    return {"num_types": num_types, "layers": layers, "plain_last": plain_last}


# ----------------------------------------------------------------------------
# Fused per-layer kernel (one grid step = one TILE_N slab of nodes):
#   [optional] previous layer's HeteroBatchNorm as per-type scale/shift (one
#              merged onehot matmul) + LeakyReLU
#   HeteroLinear: chunked wide MXU matmul (bias folded in) + per-type select
#   [optional] merged per-type partial sums / sums-of-squares for this layer's BN
# ----------------------------------------------------------------------------
def _fused_layer_kernel(*refs, num_types, fout_pad, bias_col, fold_bias,
                        apply_norm_in, compute_stats, neg_slope,
                        matmul_dtype, types_per_chunk):
    idx = 0
    nt_ref = refs[idx]; idx += 1
    x_ref = refs[idx]; idx += 1
    ss_ref = None
    if apply_norm_in:
        ss_ref = refs[idx]; idx += 1
    w_ref = refs[idx]; idx += 1
    b_ref = None
    if not fold_bias:
        b_ref = refs[idx]; idx += 1
    y_ref = refs[idx]; idx += 1
    stats_ref = refs[idx] if compute_stats else None

    nt = nt_ref[...]                                    # (TILE_N, 1) int32
    tile_n = nt.shape[0]
    # One-hot mask built in-kernel; padded nodes carry an out-of-range type,
    # so their row is all-zero (they contribute nothing anywhere).
    onehot = (nt == jax.lax.broadcasted_iota(
        jnp.int32, (tile_n, num_types), 1)).astype(jnp.float32)   # (TILE_N, T)

    x = x_ref[...].astype(jnp.float32)                  # (TILE_N, Fin_pad)
    fin_pad = x.shape[1]
    if apply_norm_in:
        # Previous layer's BN folded into per-type scale/shift; one merged
        # (TILE_N,T)@(T,2*Fin_pad) MXU gather instead of two.
        ssn = jnp.dot(onehot, ss_ref[...], preferred_element_type=jnp.float32)
        x = x * ssn[:, :fin_pad] + ssn[:, fin_pad:]
        x = jnp.where(x >= 0, x, neg_slope * x)         # LeakyReLU
    if fold_bias:
        # Feed a 1.0 into the padded Fin column that carries the bias row.
        lane = jax.lax.broadcasted_iota(jnp.int32, (tile_n, fin_pad), 1)
        x = jnp.where(lane == bias_col, jnp.float32(1.0), x)

    x_mm = x.astype(matmul_dtype)                       # weights pre-cast outside

    # HeteroLinear: chunked wide MXU matmul + immediate lane-aligned select.
    y = jnp.zeros((tile_n, fout_pad), jnp.float32)
    for c0 in range(0, num_types, types_per_chunk):
        c1 = min(c0 + types_per_chunk, num_types)
        yw = jnp.dot(x_mm, w_ref[:, c0 * fout_pad:c1 * fout_pad],
                     preferred_element_type=jnp.float32)
        for t in range(c0, c1):
            mask_t = (nt == t).astype(jnp.float32)      # (TILE_N, 1)
            off = (t - c0) * fout_pad
            y = y + mask_t * yw[:, off:off + fout_pad]

    if not fold_bias:
        # Fallback: per-type bias via (TILE_N, T) @ (T, Fout_pad) on the MXU.
        y = y + jnp.dot(onehot, b_ref[...], preferred_element_type=jnp.float32)

    y_ref[...] = y.astype(y_ref.dtype)

    if compute_stats:
        # Merged per-type partial sums and sums-of-squares: one MXU contraction
        # over N producing (T, 2*Fout_pad) = [sum(y) | sum(y*y)].
        ysq = jnp.concatenate([y, y * y], axis=1)
        dn = (((0,), (0,)), ((), ()))
        stats_ref[...] = jax.lax.dot_general(
            onehot, ysq, dn, preferred_element_type=jnp.float32)[None]


def _fused_layer(nt, h, ss, layer, *, num_types, tile_n, apply_norm_in,
                 compute_stats, neg_slope, act_dtype):
    n_pad = h.shape[0]
    fin_pad, fout_pad = layer["fin_pad"], layer["fout_pad"]
    wide = num_types * fout_pad
    grid = (n_pad // tile_n,)
    fold_bias = layer["fold_bias"]
    matmul_dtype = layer["w_wide"].dtype
    # Keep each matmul chunk >= 256 output lanes on v6e/v7x (full MXU N).
    types_per_chunk = max(1, 256 // fout_pad)

    kernel = functools.partial(
        _fused_layer_kernel, num_types=num_types, fout_pad=fout_pad,
        bias_col=layer["fin"], fold_bias=fold_bias, apply_norm_in=apply_norm_in,
        compute_stats=compute_stats, neg_slope=neg_slope,
        matmul_dtype=matmul_dtype, types_per_chunk=types_per_chunk)

    block_bytes = 0
    in_specs = [pl.BlockSpec((tile_n, 1), lambda i: (i, 0)),        # node_type
                pl.BlockSpec((tile_n, fin_pad), lambda i: (i, 0))]  # activations
    block_bytes += _bytes((tile_n, 1), jnp.int32)
    block_bytes += _bytes((tile_n, fin_pad), h.dtype)
    inputs = [nt, h]
    if apply_norm_in:
        in_specs.append(pl.BlockSpec((num_types, 2 * fin_pad), lambda i: (0, 0)))
        block_bytes += _bytes((num_types, 2 * fin_pad), jnp.float32)
        inputs.append(ss)
    # Wide weights pinned resident across the grid (already in matmul_dtype).
    in_specs.append(pl.BlockSpec((fin_pad, wide), lambda i: (0, 0)))
    block_bytes += _bytes((fin_pad, wide), matmul_dtype)
    inputs.append(layer["w_wide"])
    if not fold_bias:
        in_specs.append(pl.BlockSpec((num_types, fout_pad), lambda i: (0, 0)))
        block_bytes += _bytes((num_types, fout_pad), jnp.float32)
        inputs.append(layer["b_pad"])

    out_shapes = [jax.ShapeDtypeStruct((n_pad, fout_pad), act_dtype)]
    out_specs = [pl.BlockSpec((tile_n, fout_pad), lambda i: (i, 0))]
    block_bytes += _bytes((tile_n, fout_pad), act_dtype)
    if compute_stats:
        out_shapes.append(jax.ShapeDtypeStruct(
            (grid[0], num_types, 2 * fout_pad), jnp.float32))
        out_specs.append(pl.BlockSpec((1, num_types, 2 * fout_pad),
                                      lambda i: (i, 0, 0)))
        block_bytes += _bytes((1, num_types, 2 * fout_pad), jnp.float32)

    return pl.pallas_call(
        kernel,
        grid=grid,
        in_specs=in_specs,
        out_specs=tuple(out_specs),
        out_shape=tuple(out_shapes),
        compiler_params=pltpu.CompilerParams(
            dimension_semantics=("parallel",),
            vmem_limit_bytes=_vmem_limit(block_bytes)),
    )(*inputs)


# ----------------------------------------------------------------------------
# Standalone normalize + LeakyReLU pass (only needed when plain_last=False).
# ----------------------------------------------------------------------------
def _norm_act_kernel(nt_ref, y_ref, ss_ref, out_ref, *, num_types, neg_slope):
    nt = nt_ref[...]
    onehot = (nt == jax.lax.broadcasted_iota(
        jnp.int32, (nt.shape[0], num_types), 1)).astype(jnp.float32)
    y = y_ref[...].astype(jnp.float32)
    f_pad = y.shape[1]
    ssn = jnp.dot(onehot, ss_ref[...], preferred_element_type=jnp.float32)
    z = y * ssn[:, :f_pad] + ssn[:, f_pad:]
    out_ref[...] = jnp.where(z >= 0, z, neg_slope * z).astype(out_ref.dtype)


def _norm_act(nt, y, ss, *, num_types, tile_n, neg_slope):
    n_pad, f_pad = y.shape
    kernel = functools.partial(_norm_act_kernel, num_types=num_types,
                               neg_slope=neg_slope)
    block_bytes = (_bytes((tile_n, 1), jnp.int32)
                   + 2 * _bytes((tile_n, f_pad), y.dtype)
                   + _bytes((num_types, 2 * f_pad), jnp.float32))
    return pl.pallas_call(
        kernel,
        grid=(n_pad // tile_n,),
        in_specs=[pl.BlockSpec((tile_n, 1), lambda i: (i, 0)),
                  pl.BlockSpec((tile_n, f_pad), lambda i: (i, 0)),
                  pl.BlockSpec((num_types, 2 * f_pad), lambda i: (0, 0))],
        out_specs=pl.BlockSpec((tile_n, f_pad), lambda i: (i, 0)),
        out_shape=jax.ShapeDtypeStruct((n_pad, f_pad), y.dtype),
        compiler_params=pltpu.CompilerParams(
            dimension_semantics=("parallel",),
            vmem_limit_bytes=_vmem_limit(block_bytes)),
    )(nt, y, ss)


# ----------------------------------------------------------------------------
# HeteroMLP forward (layout prep + tiny BN finalize in JAX; heavy work in Pallas)
# ----------------------------------------------------------------------------
def hetero_mlp_forward(x, node_type, prepped, *, dropout=0.0, eps=1e-5,
                       neg_slope=0.01, tile_n=512, act_dtype=jnp.float32):
    # TODO(synk): dropout > 0.0 in training mode would need pltpu.prng_* inside
    # the kernel; module default is 0.0 (identity), so it is skipped here.
    del dropout
    num_types = prepped["num_types"]
    layers = prepped["layers"]
    plain_last = prepped["plain_last"]
    num_layers = len(layers)
    n, in_ch = x.shape
    out_ch = layers[-1]["fout"]

    # ---- lane-dense layout: features padded to 128, nodes padded to the tile.
    tile_n = max(8, min(tile_n, _round_up(n, 8)))
    n_pad = _round_up(n, tile_n)
    fin0_pad = layers[0]["fin_pad"]

    h = jnp.zeros((n_pad, fin0_pad), act_dtype).at[:n, :in_ch].set(
        x.astype(act_dtype))
    # Padded nodes get an out-of-range type so they never match any mask.
    nt = jnp.full((n_pad, 1), num_types, jnp.int32).at[:n, 0].set(
        node_type.astype(jnp.int32))

    # Per-type node counts (clamped at 1) without an O(N*T) materialization.
    cnt = jnp.maximum(
        jnp.bincount(node_type.astype(jnp.int32), length=num_types)
        .astype(jnp.float32), 1.0)[:, None]                          # (T, 1)

    ss = None                                           # merged [scale|shift]
    for i, layer in enumerate(layers):
        last = i == num_layers - 1
        compute_stats = not (last and plain_last)
        apply_norm_in = ss is not None

        outs = _fused_layer(nt, h, ss, layer, num_types=num_types,
                            tile_n=tile_n, apply_norm_in=apply_norm_in,
                            compute_stats=compute_stats, neg_slope=neg_slope,
                            act_dtype=act_dtype)

        if compute_stats:
            y, stats = outs
            fout_pad = layer["fout_pad"]
            # Tiny (T, Fout) finalize in plain JAX (f32 accumulation).
            s = jnp.sum(stats[:, :, :fout_pad], axis=0)
            sq = jnp.sum(stats[:, :, fout_pad:], axis=0)
            mean = s / cnt
            # TODO(synk): E[y^2]-E[y]^2 form can lose precision for large-mean
            # features; a centered second pass would match the reference bit-wise.
            var = jnp.maximum(sq / cnt - mean * mean, 0.0)
            inv = jax.lax.rsqrt(var + eps)
            scale = layer["g_pad"] * inv                 # (T, Fout_pad)
            shift = layer["be_pad"] - mean * scale
            ss = jnp.concatenate([scale, shift], axis=1)  # (T, 2*Fout_pad)
            h = y
        else:
            (y,) = outs
            ss = None
            h = y

    if not plain_last:
        h = _norm_act(nt, h, ss, num_types=num_types, tile_n=tile_n,
                      neg_slope=neg_slope)

    return h[:n, :out_ch].astype(x.dtype)


# ----------------------------------------------------------------------------
# Pure-JAX reference (mirrors PyG HeteroLinear / HeteroBatchNorm training mode)
# ----------------------------------------------------------------------------
def hetero_mlp_reference(x, node_type, params, *, num_layers, plain_last=True,
                         eps=1e-5, neg_slope=0.01):
    num_types = params["num_types"]
    for i in range(num_layers):
        last = i == num_layers - 1
        w, b = params["lin_w"][i], params["lin_b"][i]
        y = jnp.einsum("nf,nfo->no", x, w[node_type]) + b[node_type]
        if last and plain_last:
            x = y
            continue
        gamma, beta = params["bn_gamma"][i], params["bn_beta"][i]
        onehot = jax.nn.one_hot(node_type, num_types, dtype=y.dtype)  # (N, T)
        cnt = jnp.maximum(onehot.sum(0), 1.0)                         # (T,)
        mean = (onehot.T @ y) / cnt[:, None]                          # (T, Fout)
        var = (onehot.T @ ((y - mean[node_type]) ** 2)) / cnt[:, None]
        yn = (y - mean[node_type]) * jax.lax.rsqrt(var[node_type] + eps)
        yn = yn * gamma[node_type] + beta[node_type]
        x = jnp.where(yn >= 0, yn, neg_slope * yn)
    return x


# ----------------------------------------------------------------------------
# Deterministic parameter construction
# ----------------------------------------------------------------------------
def init_params(key, *, in_channels, hidden_channels, out_channels,
                num_layers, num_types, plain_last=True, dtype=jnp.float32):
    n_channels = [in_channels] + [hidden_channels] * (num_layers - 1) + [out_channels]
    lin_w, lin_b, bn_gamma, bn_beta = [], [], [], []
    n_norm = num_layers - 1 if plain_last else num_layers
    for i in range(num_layers):
        fin, fout = n_channels[i], n_channels[i + 1]
        key, kw, kb = jax.random.split(key, 3)
        lin_w.append(jax.random.normal(kw, (num_types, fin, fout), dtype) / jnp.sqrt(fin))
        lin_b.append(0.01 * jax.random.normal(kb, (num_types, fout), dtype))
        if i < n_norm:
            bn_gamma.append(jnp.ones((num_types, fout), dtype))
            bn_beta.append(jnp.zeros((num_types, fout), dtype))
    return {"lin_w": lin_w, "lin_b": lin_b,
            "bn_gamma": bn_gamma, "bn_beta": bn_beta,
            "num_types": num_types}


if __name__ == "__main__":
    # Small shapes consistent with the module's forward signature:
    #   x: (num_nodes, in_channels) node features, node_type: (num_nodes,) int
    N = 1024             # number of nodes (tiled as 2 x TILE_N=512)
    IN_CH = 8
    HIDDEN = 32
    OUT_CH = 4
    NUM_LAYERS = 3
    NUM_TYPES = 3

    key = jax.random.PRNGKey(0)
    key, kx, kt, kp = jax.random.split(key, 4)
    x = jax.random.normal(kx, (N, IN_CH), jnp.float32)
    node_type = jax.random.randint(kt, (N,), 0, NUM_TYPES, jnp.int32)
    params = init_params(kp, in_channels=IN_CH, hidden_channels=HIDDEN,
                         out_channels=OUT_CH, num_layers=NUM_LAYERS,
                         num_types=NUM_TYPES)

    ref = jax.block_until_ready(
        hetero_mlp_reference(x, node_type, params, num_layers=NUM_LAYERS))

    # f32 path: exact-parity default (one-time weight layout prep, hoisted).
    prep_f32 = prepare_params(params, plain_last=True, matmul_dtype=jnp.float32)
    out = jax.block_until_ready(
        hetero_mlp_forward(x, node_type, prep_f32, tile_n=512))
    assert out.shape == (N, OUT_CH), out.shape
    assert jnp.allclose(out, ref, rtol=1e-3, atol=1e-3), \
        float(jnp.max(jnp.abs(out - ref)))

    # bf16 fast path (v5e/v6e/v7x MXU rate + halved weight/activation traffic);
    # looser tolerance expected vs. the f32 reference.
    prep_bf16 = prepare_params(params, plain_last=True, matmul_dtype=jnp.bfloat16)
    out_bf16 = jax.block_until_ready(
        hetero_mlp_forward(x, node_type, prep_bf16, tile_n=512,
                           act_dtype=jnp.bfloat16))
    assert out_bf16.shape == (N, OUT_CH), out_bf16.shape
    assert float(jnp.max(jnp.abs(out_bf16 - ref))) < 0.35, \
        float(jnp.max(jnp.abs(out_bf16 - ref)))

    print("KERNEL_OK")
</pallas_src>

<mosaic_0001>
module attributes {stable_mosaic.version = 11 : i64} {
  func.func @_fused_layer_kernel(%arg0: i32, %arg1: memref<512x1xi32, #tpu.memory_space<vmem>>, %arg2: memref<512x128xf32, #tpu.memory_space<vmem>>, %arg3: memref<128x384xf32, #tpu.memory_space<vmem>>, %arg4: memref<512x128xf32, #tpu.memory_space<vmem>>, %arg5: memref<1x3x256xf32, #tpu.memory_space<vmem>>) attributes {dimension_semantics = [#tpu.dimension_semantics<parallel>], iteration_bounds = array<i64: 2>, scalar_prefetch = 0 : i64, scratch_operands = 0 : i64, tpu.core_type = #tpu.core_type<tc>, window_params = [{transform_indices = @transform_0, window_bounds = array<i64: 512, 1>}, {transform_indices = @transform_1, window_bounds = array<i64: 512, 128>}, {pipeline_mode = #tpu.pipeline_mode<synchronous>, transform_indices = @transform_2, window_bounds = array<i64: 128, 384>}, {transform_indices = @transform_3, window_bounds = array<i64: 512, 128>}, {transform_indices = @transform_4, window_bounds = array<i64: 1, 3, 256>}]} {
    %c0 = arith.constant 0 : index
    %c0_0 = arith.constant 0 : index
    %0 = vector.load %arg1[%c0, %c0_0] : memref<512x1xi32, #tpu.memory_space<vmem>>, vector<512x1xi32>
    %1 = tpu.iota {dimensions = array<i32: 1>} : vector<512x3xi32>
    %2 = vector.broadcast %0 : vector<512x1xi32> to vector<512x3xi32>
    %3 = arith.cmpi eq, %2, %1 : vector<512x3xi32>
    %4 = arith.extui %3 : vector<512x3xi1> to vector<512x3xi32>
    %5 = arith.sitofp %4 : vector<512x3xi32> to vector<512x3xf32>
    %c0_1 = arith.constant 0 : index
    %c0_2 = arith.constant 0 : index
    %6 = vector.load %arg2[%c0_1, %c0_2] : memref<512x128xf32, #tpu.memory_space<vmem>>, vector<512x128xf32>
    %7 = tpu.iota {dimensions = array<i32: 1>} : vector<512x128xi32>
    %c8_i32 = arith.constant 8 : i32
    %8 = vector.broadcast %c8_i32 : i32 to vector<512x128xi32>
    %9 = arith.cmpi eq, %7, %8 : vector<512x128xi32>
    %cst = arith.constant 1.000000e+00 : f32
    %10 = vector.broadcast %cst : f32 to vector<512x128xf32>
    %11 = arith.select %9, %10, %6 : vector<512x128xi1>, vector<512x128xf32>
    %cst_3 = arith.constant 0.000000e+00 : f32
    %12 = vector.broadcast %cst_3 : f32 to vector<512x128xf32>
    %c0_4 = arith.constant 0 : index
    %c0_5 = arith.constant 0 : index
    %13 = vector.load %arg3[%c0_4, %c0_5] : memref<128x384xf32, #tpu.memory_space<vmem>>, vector<128x256xf32>
    %cst_6 = arith.constant dense<0.000000e+00> : vector<512x256xf32>
    %14 = tpu.matmul %11, %13, %cst_6 {dimension_numbers = #tpu.dot_dimension_numbers<[1], [0], [0], [1], [0, 0, 1, 1], [], []>} : vector<512x128xf32>, vector<128x256xf32>, vector<512x256xf32> -> vector<512x256xf32>
    %c0_i32 = arith.constant 0 : i32
    %15 = vector.broadcast %c0_i32 : i32 to vector<512x1xi32>
    %16 = arith.cmpi eq, %0, %15 : vector<512x1xi32>
    %17 = arith.extui %16 : vector<512x1xi1> to vector<512x1xi32>
    %18 = arith.sitofp %17 : vector<512x1xi32> to vector<512x1xf32>
    %19 = vector.extract_strided_slice %14 {offsets = [0, 0], sizes = [512, 128], strides = [1, 1]} : vector<512x256xf32> to vector<512x128xf32>
    %20 = vector.broadcast %18 : vector<512x1xf32> to vector<512x128xf32>
    %21 = arith.mulf %20, %19 : vector<512x128xf32>
    %22 = arith.addf %12, %21 : vector<512x128xf32>
    %c1_i32 = arith.constant 1 : i32
    %23 = vector.broadcast %c1_i32 : i32 to vector<512x1xi32>
    %24 = arith.cmpi eq, %0, %23 : vector<512x1xi32>
    %25 = arith.extui %24 : vector<512x1xi1> to vector<512x1xi32>
    %26 = arith.sitofp %25 : vector<512x1xi32> to vector<512x1xf32>
    %27 = vector.extract_strided_slice %14 {offsets = [0, 128], sizes = [512, 128], strides = [1, 1]} : vector<512x256xf32> to vector<512x128xf32>
    %28 = vector.broadcast %26 : vector<512x1xf32> to vector<512x128xf32>
    %29 = arith.mulf %28, %27 : vector<512x128xf32>
    %30 = arith.addf %22, %29 : vector<512x128xf32>
    %c0_7 = arith.constant 0 : index
    %c256 = arith.constant 256 : index
    %31 = vector.load %arg3[%c0_7, %c256] : memref<128x384xf32, #tpu.memory_space<vmem>>, vector<128x128xf32>
    %cst_8 = arith.constant dense<0.000000e+00> : vector<512x128xf32>
    %32 = tpu.matmul %11, %31, %cst_8 {dimension_numbers = #tpu.dot_dimension_numbers<[1], [0], [0], [1], [0, 0, 1, 1], [], []>} : vector<512x128xf32>, vector<128x128xf32>, vector<512x128xf32> -> vector<512x128xf32>
    %c2_i32 = arith.constant 2 : i32
    %33 = vector.broadcast %c2_i32 : i32 to vector<512x1xi32>
    %34 = arith.cmpi eq, %0, %33 : vector<512x1xi32>
    %35 = arith.extui %34 : vector<512x1xi1> to vector<512x1xi32>
    %36 = arith.sitofp %35 : vector<512x1xi32> to vector<512x1xf32>
    %37 = vector.broadcast %36 : vector<512x1xf32> to vector<512x128xf32>
    %38 = arith.mulf %37, %32 : vector<512x128xf32>
    %39 = arith.addf %30, %38 : vector<512x128xf32>
    %c0_9 = arith.constant 0 : index
    %c0_10 = arith.constant 0 : index
    %40 = vector.load %arg4[%c0_9, %c0_10] : memref<512x128xf32, #tpu.memory_space<vmem>>, vector<512x128xf32>
    tpu.vector_store %arg4[%c0_9, %c0_10], %39 {strides = array<i32>} : memref<512x128xf32, #tpu.memory_space<vmem>>, vector<512x128xf32>,
    %41 = arith.mulf %39, %39 : vector<512x128xf32>
    %42 = tpu.concatenate %39, %41 in 1 : vector<512x128xf32>, vector<512x128xf32> -> vector<512x256xf32>
    %cst_11 = arith.constant dense<0.000000e+00> : vector<3x256xf32>
    %43 = tpu.matmul %5, %42, %cst_11 {dimension_numbers = #tpu.dot_dimension_numbers<[0], [0], [1], [1], [0, 1, 1, 1], [], []>} : vector<512x3xf32>, vector<512x256xf32>, vector<3x256xf32> -> vector<3x256xf32>
    %44 = vector.shape_cast %43 : vector<3x256xf32> to vector<1x3x256xf32>
    %c0_12 = arith.constant 0 : index
    %c0_13 = arith.constant 0 : index
    %c0_14 = arith.constant 0 : index
    %45 = vector.load %arg5[%c0_12, %c0_13, %c0_14] : memref<1x3x256xf32, #tpu.memory_space<vmem>>, vector<1x3x256xf32>
    tpu.vector_store %arg5[%c0_12, %c0_13, %c0_14], %44 {strides = array<i32>} : memref<1x3x256xf32, #tpu.memory_space<vmem>>, vector<1x3x256xf32>,
    return
  }
  func.func @transform_0(%arg0: i32) -> (i32, i32) {
    %c0_i32 = arith.constant 0 : i32
    %c0_i32_0 = arith.constant 0 : i32
    return %arg0, %c0_i32 : i32, i32
  }
  func.func @transform_1(%arg0: i32) -> (i32, i32) {
    %c0_i32 = arith.constant 0 : i32
    %c0_i32_0 = arith.constant 0 : i32
    return %arg0, %c0_i32 : i32, i32
  }
  func.func @transform_2(%arg0: i32) -> (i32, i32) {
    %c0_i32 = arith.constant 0 : i32
    %c0_i32_0 = arith.constant 0 : i32
    %c0_i32_1 = arith.constant 0 : i32
    return %c0_i32, %c0_i32_0 : i32, i32
  }
  func.func @transform_3(%arg0: i32) -> (i32, i32) {
    %c0_i32 = arith.constant 0 : i32
    %c0_i32_0 = arith.constant 0 : i32
    return %arg0, %c0_i32 : i32, i32
  }
  func.func @transform_4(%arg0: i32) -> (i32, i32, i32) {
    %c0_i32 = arith.constant 0 : i32
    %c0_i32_0 = arith.constant 0 : i32
    %c0_i32_1 = arith.constant 0 : i32
    return %arg0, %c0_i32, %c0_i32_0 : i32, i32, i32
  }
}

</mosaic_0001>

<bundles_post_ra>
// kernel: tpu_custom_call.1
= control target key start
LH: loop header
LB: loop body
LE: loop exit
PB: predicated region body
PF: predicated region fallthrough
CT: control target
= control target key end

     0   :  { %10 = vsyncpa [#allocation3], 0  ;;  %s8407_s0 = inlined_call_operand.vmem [shape: s32[1024,1], index: 0, kind: input, shape index: {}]   ;;  %s8408_s1 = inlined_call_operand.vmem [shape: f32[1024,128], index: 1, kind: input, shape index: {}]   ;;  %s8409_s2 = inlined_call_operand.hbm [shape: f32[128,384], index: 2, kind: input, shape index: {}]   ;;  %s8410_s3 = inlined_call_operand.hbm [shape: f32[1024,128], index: 3, kind: output, shape index: {0}]   ;;  %s8411_s4 = inlined_call_operand.vmem [shape: f32[2,3,256], index: 4, kind: output, shape index: {1}]  }
   0x1   :  { %11 = vsyncpa [#allocation4], 0 }
   0x2   :  { %13 = vsyncpa [#allocation4 + $0x1], 0  ;;  %s5240_s15 = smov 0   ;;  %s5242_s16 = smov 0  }
   0x3   :  { %s5244_s17 = smov 0   ;;  %s5246_s18 = smov 0  }
   0x4 LB: > { %s5261_s19 = sadd.s32 4294967295, %s5201_s18   ;;  %s3983_s20 = sadd.s32 4294967294, %s5201_s18   ;;  %s5201_s18 = sphi %s5246_s18, %s9131_s18   ;;  %s5197_s17 = sphi %s5244_s17, %s9130_s17   ;;  %s5193_s16 = sphi %s5242_s16, %s9129_s16   ;;  %s5189_s15 = sphi %s5240_s15, %s9128_s15  }
   0x5   : > { %s5265_s21 = sadd.s32 1, %s5201_s18   ;;  %s99_s22 = sadd.s32 1, %s5197_s17 }
   0x6   : > { %s96_s23 = ssub.s32 %s5201_s18, %s5265_s21  ;;  %p109_p0 = scmp.ne.s32.totalorder %s5197_s17, %s5193_s16 }
   0x7   : > { %p97_p1 = scmp.eq.s32.totalorder %s96_s23, 0  ;;  %p110_p2 = scmp.eq.s32.totalorder %s5261_s19, 1 }
   0x8   : > { %p115_p3 = scmp.ne.s32.totalorder %s5193_s16, %s5189_s15  ;;  %p116_p4 = scmp.eq.s32.totalorder %s3983_s20, 1 }
   0x9   : > { %s5276_s24 = scalar_select %p97_p1, %s5197_s17, %s99_s22  }
   0xa   : > { %p5278_p5 = por %p110_p2, %p109_p0  ;;  %p5282_p6 = por %p116_p4, %p115_p3 }
   0xb   : > { %p3984_p7 = scmp.ge.s32.totalorder %s5201_s18, 1  ;;  %p149_p8 = scmp.lt.s32.totalorder %s5201_s18, 3 }
   0xc   : > { %p4475_p9 = scmp.eq.s32.totalorder %s5261_s19, 0  ;;  %s160_s29 = sshll.u32 %s8409_s2, 4  ;;  %s161_s29 = int_to_ptr.hbm [resolvable:$true] %s160_s29 }
   0xd   : > { %p150_p10 = pnand %p3984_p7, %p149_p8  ;;  %s5203_s30 = smov [#allocation2]  }
   0xe   : > { %s162_s5 = sshll.u32 %s5203_s30, 4  ;;  %s5204_s6 = smov 384   ;;  %s163_s5 = int_to_ptr.vmem [resolvable:$true] %s162_s5 }
   0xf   : > { %p4467_p11 = pneg %p150_p10  ;;  %s5205_s7 = smov 24  }
  0x10   : > { %196 = sbr.rel (%p150_p10) target bundleno = 1020 (0x3fc), region = 32 }
  0x11   : > { %p4468_p12 = pnand %p4475_p9, %p4467_p11 }
  0x13   : > { %4470 = dma.hbm_to_vmem [thread:$0]  (!%p4468_p12), %s161_s29, 6144, %s163_s5, [#allocation3], %s5204_s6, %s5204_s6, %s5205_s7  }
  0x15   : > { %5180 = dma.done.wait (%p4475_p9), [#allocation3], 6144  }
  0x16   : > { %5182 = vsyncadd (%p4475_p9), [#allocation3], 4294961152  ;;  %s3990_s8 = sshll.u32 %s5261_s19, 6  ;;  %v5206_v0 = vmov 0   ;;  %v860_v1 = vld [vmem:[#allocation2 + $0x168] sm:$0xff]  ;;  %v5309_v2 = vld [vmem:[#allocation2 + $0x170] sm:$0xff]  ;;  %v315_v43 = vlaneseq }
  0x17   : > { %4520 = vset.pattern.permute.xlu2 %v5206_v0  ;;  %4519 = vset.pattern.permute.xlu1 %v5206_v0  ;;  %p234_p13 = scmp.lt.s32.totalorder %s3990_s8, 127  ;;  %v2575_v3 = vld [vmem:[#allocation2 + $0x178] sm:$0xff]  ;;  %v858_v7 = vld [vmem:[#allocation2 + $0x150] sm:$0xff]  ;;  %v2574_v9 = vld [vmem:[#allocation2 + $0x160] sm:$0xff]  ;;  %s223_s22 = sand.u32 1, %s5193_s16  }
  0x18   : > { %4518 = vset.pattern.permute.xlu0 %v5206_v0  ;;  %862 = vmatpush.msra.mxu0 %v860_v1  ;;  %v5322_v8 = vld [vmem:[#allocation2 + $0x158] sm:$0xff]  ;;  %v5326_v11 = vld [vmem:[#allocation2 + $0x140] sm:$0xff]  ;;  %v2573_v12 = vld [vmem:[#allocation2 + $0x148] sm:$0xff]  ;;  %v5386_v51 = vand.u32 127, %v315_v43  ;;  %s3989_s23 = sshll.u32 %s223_s22, 9  ;;  %s4258_s28 = sshll.u32 %s5261_s19, 9 }
  0x19   : > { %s9133_s8 = smov (!%p234_p13, %s3990_s8), 127  ;;  %1071 = vmatpush.msra.mxu1 %v5309_v2  ;;  %2576 = vmatpush.msra.mxu2 %v2575_v3  ;;  %v856_v10 = vld [vmem:[#allocation2 + $0x138] sm:$0xff]  ;;  %v854_v13 = vld [vmem:[#allocation2 + $0x120] sm:$0xff]  ;;  %v5329_v14 = vld [vmem:[#allocation2 + $0x128] sm:$0xff]  ;;  %s7423_s27 = scalar_lea.vmem [#allocation5], %s3989_s23 }
  0x1a   : > { %s3991_s9 = sshll.u32 %s9133_s8, 3  ;;  %863 = vmatpush.msra.mxu0 %v858_v7  ;;  %4259 = vmatpush.msra.mxu3 %v860_v1  ;;  %v2572_v15 = vld [vmem:[#allocation2 + $0x130] sm:$0xff]  ;;  %v852_v16 = vld [vmem:[#allocation2 + $0x108] sm:$0xff]  ;;  %v2571_v18 = vld [vmem:[#allocation2 + $0x118] sm:$0xff]  ;;  %vm765_vm0 = vcmp.eq.s32.totalorder %v5386_v51, 8  ;;  %s3865_s5 = scalar_lea.hbm %s8410_s3, %s4258_s28 }
  0x1b   : > { %s5307_s12 = scalar_lea.vmem %s8407_s0, %s3991_s9  ;;  %1072 = vmatpush.msra.mxu1 %v5322_v8  ;;  %2577 = vmatpush.msra.mxu2 %v2574_v9  ;;  %v5332_v17 = vld [vmem:[#allocation2 + $0x110] sm:$0xff]  ;;  %v5345_v23 = vld [vmem:[#allocation2 + $0xf8] sm:$0xff]  ;;  %v2570_v24 = vld [vmem:[#allocation2 + $0x100] sm:$0xff]  ;;  %s5399_s20 = scalar_lea.vmem %s8408_s1, %s3991_s9 }
  0x1c   : > { %v5313_v4 = vld [vmem:[%s5307_s12 + $0x20] sm:$0xff]  ;;  %v5316_v5 = vld [vmem:[%s5307_s12 + $0x10] sm:$0xff]  ;;  %864 = vmatpush.msra.mxu0 %v856_v10  ;;  %4260 = vmatpush.msra.mxu3 %v858_v7  ;;  %v5336_v19 = vld [vmem:[%s5307_s12 + $0x28] sm:$0xff]  ;;  %s3866_s6 = sshll.u32 %s7423_s27, 4  ;;  %s3868_s7 = sshll.u32 %s3865_s5, 4  ;;  %s3867_s6 = int_to_ptr.vmem [resolvable:$true] %s3866_s6  ;;  %s3869_s7 = int_to_ptr.hbm [resolvable:$true] %s3868_s7 }
  0x1d   : > { %v5319_v6 = vld [vmem:[%s5307_s12] sm:$0xff]  ;;  %330 = vperm.xlu2 %4520, %v5313_v4   ;;  %324 = vperm.xlu1 %4519, %v5316_v5   ;;  %v5339_v20 = vld [vmem:[%s5307_s12 + $0x18] sm:$0xff]  ;;  %v5342_v21 = vld [vmem:[%s5307_s12 + $0x8] sm:$0xff]  ;;  %vm1282_vm3 = vcmp.eq.s32.totalorder %v5316_v5, 0  ;;  %vm1284_vm13 = vcmp.eq.s32.totalorder %v5313_v4, 0  ;;  %vm1285_vm14 = vcmp.eq.s32.totalorder %v5336_v19, 0 }
  0x1e   : > { %318 = vperm.xlu0 %4518, %v5319_v6   ;;  %1073 = vmatpush.msra.mxu1 %v5326_v11  ;;  %v850_v22 = vld [vmem:[#allocation2 + $0xf0] sm:$0xff]  ;;  %v848_v25 = vld [vmem:[#allocation2 + $0xd8] sm:$0xff]  ;;  %v5350_v26 = vld [vmem:[#allocation2 + $0xe0] sm:$0xff]  ;;  %vm1283_vm4 = vcmp.eq.s32.totalorder %v5339_v20, 0  ;;  %vm1280_vm5 = vcmp.eq.s32.totalorder %v5319_v6, 0  ;;  %vm1281_vm6 = vcmp.eq.s32.totalorder %v5342_v21, 0 }
  0x1f   : > { %2578 = vmatpush.msra.mxu2 %v2573_v12  ;;  %865 = vmatpush.msra.mxu0 %v854_v13  ;;  %v2569_v27 = vld [vmem:[#allocation2 + $0xe8] sm:$0xff]  ;;  %v846_v28 = vld [vmem:[#allocation2 + $0xc0] sm:$0xff]  ;;  %v2568_v30 = vld [vmem:[#allocation2 + $0xd0] sm:$0xff]  ;;  %s3849_s8 = scalar_lea.sflag [#allocation4], %s223_s22  ;;  %s5149_s9 = sshra.s32 %s3869_s7, 4  ;;  %s5150_s9 = int_to_ptr.hbm [resolvable:$true] %s5149_s9 }
  0x20   : > { %1074 = vmatpush.msra.mxu1 %v5329_v14  ;;  %4261 = vmatpush.msra.mxu3 %v856_v10  ;;  %v5353_v29 = vld [vmem:[#allocation2 + $0xc8] sm:$0xff]  ;;  %v5356_v32 = vld [vmem:[#allocation2 + $0xb0] sm:$0xff]  ;;  %v2567_v33 = vld [vmem:[#allocation2 + $0xb8] sm:$0xff]  ;;  %s5151_s10 = scalar_lea.hbm %s5150_s9, 512  ;;  %s5155_s13 = scalar_lea.hbm %s8410_s3, 1024 }
  0x21   : > { %2579 = vmatpush.msra.mxu2 %v2572_v15  ;;  %866 = vmatpush.msra.mxu0 %v852_v16  ;;  %v844_v31 = vld [vmem:[#allocation2 + $0xa8] sm:$0xff]  ;;  %v5360_v34 = vld [vmem:[%s5307_s12 + $0x40] sm:$0xff]  ;;  %v5363_v35 = vld [vmem:[%s5307_s12 + $0x38] sm:$0xff]  ;;  %p5152_p0 = scmp.ne.s32.totalorder %s5150_s9, %s5151_s10  ;;  %p5156_p3 = scmp.lt.s32.totalorder %s5150_s9, %s8410_s3 }
  0x22   : > { %1075 = vmatpush.msra.mxu1 %v5332_v17  ;;  %4262 = vmatpush.msra.mxu3 %v854_v13  ;;  %v5366_v36 = vld [vmem:[%s5307_s12 + $0x30] sm:$0xff]  ;;  %v5369_v38 = vld [vmem:[#allocation2 + $0x98] sm:$0xff]  ;;  %v2566_v39 = vld [vmem:[#allocation2 + $0xa0] sm:$0xff]  ;;  %vm1288_vm10 = vcmp.eq.s32.totalorder %v5360_v34, 0  ;;  %p5157_p4 = scmp.lt.s32.totalorder %s5155_s13, %s5151_s10 }
  0x23   : > { %2580 = vmatpush.msra.mxu2 %v2571_v18  ;;  %867 = vmatpush.msra.mxu0 %v850_v22  ;;  %v842_v37 = vld [vmem:[#allocation2 + $0x90] sm:$0xff]  ;;  %v840_v40 = vld [vmem:[#allocation2 + $0x78] sm:$0xff]  ;;  %v5374_v41 = vld [vmem:[#allocation2 + $0x80] sm:$0xff]  ;;  %vm1286_vm15 = vcmp.eq.s32.totalorder %v5366_v36, 0  ;;  %p5153_p1 = pnand %p5152_p0, %p5278_p5 }
  0x24   : > { %1076 = vmatpush.msra.mxu1 %v5345_v23  ;;  %4263 = vmatpush.msra.mxu3 %v852_v16  ;;  %v2565_v42 = vld [vmem:[#allocation2 + $0x88] sm:$0xff]  ;;  %v838_v44 = vld [vmem:[#allocation2 + $0x60] sm:$0xff]  ;;  %v2564_v46 = vld [vmem:[#allocation2 + $0x70] sm:$0xff]  ;;  %p5158_p7 = por %p5157_p4, %p5156_p3 }
  0x25   : > { %333 = vperm.xlu2 %4520, %v5336_v19   ;;  %327 = vperm.xlu1 %4519, %v5339_v20   ;;  %v5377_v45 = vld [vmem:[#allocation2 + $0x68] sm:$0xff]  ;;  %v5380_v48 = vld [vmem:[#allocation2 + $0x50] sm:$0xff]  ;;  %v2563_v49 = vld [vmem:[#allocation2 + $0x58] sm:$0xff]  ;;  %p5154_p2 = pneg %p5153_p1 }
  0x26   : > { %321 = vperm.xlu0 %4518, %v5342_v21   ;;  %2581 = vmatpush.msra.mxu2 %v2570_v24  ;;  %v836_v47 = vld [vmem:[#allocation2 + $0x48] sm:$0xff]  ;;  %v5384_v50 = vld [vmem:[%s5307_s12 + $0x58] sm:$0xff]  ;;  %v5389_v52 = vld [vmem:[%s5307_s12 + $0x50] sm:$0xff] }
  0x27   : > { %868 = vmatpush.msra.mxu0 %v848_v25  ;;  %1077 = vmatpush.msra.mxu1 %v5350_v26  ;;  %v5392_v53 = vld [vmem:[%s5307_s12 + $0x48] sm:$0xff]  ;;  %v834_v54 = vld [vmem:[#allocation2 + $0x30] sm:$0xff]  ;;  %v5402_v55 = vld [vmem:[#allocation2 + $0x38] sm:$0xff]  ;;  %p5159_p8 = pnand %p5158_p7, %p5154_p2 }
  0x28   : > { %2582 = vmatpush.msra.mxu2 %v2569_v27  ;;  %4264 = vmatpush.msra.mxu3 %v850_v22  ;;  %v2562_v56 = vld [vmem:[#allocation2 + $0x40] sm:$0xff]  ;;  %v832_v57 = vld [vmem:[#allocation2 + $0x18] sm:$0xff]  ;;  %v2561_v60 = vld [vmem:[#allocation2 + $0x28] sm:$0xff]  ;;  %vm1289_vm12 = vcmp.eq.s32.totalorder %v5392_v53, 0 }
  0x29   : > { %869 = vmatpush.msra.mxu0 %v846_v28  ;;  %1078 = vmatpush.msra.mxu1 %v5353_v29  ;;  %v5407_v58 = vld [vmem:[#allocation2 + $0x20] sm:$0xff]  ;;  %v5412_v62 = vld [vmem:[#allocation2 + $0x8] sm:$0xff]  ;;  %v2560_v63 = vld [vmem:[#allocation2 + $0x10] sm:$0xff] }
  0x2a   : > { %2583 = vmatpush.msra.mxu2 %v2568_v30  ;;  %4265 = vmatpush.msra.mxu3 %v848_v25  ;;  %v701_v59 = vld [vmem:[%s5399_s20] sm:$0xff]  ;;  %v5419_v1 = vld [vmem:[%s5307_s12 + $0x70] sm:$0xff]  ;;  %v5422_v3 = vld [vmem:[%s5307_s12 + $0x68] sm:$0xff] }
  0x2b   : > { %870 = vmatpush.msra.mxu0 %v844_v31  ;;  %1079 = vmatpush.msra.mxu1 %v5356_v32  ;;  %v830_v61 = vld [vmem:[#allocation2] sm:$0xff]  ;;  %v766_v0 = vsel %vm765_vm0, 1.0, %v701_v59  ;;  %v702_v9 = vld [vmem:[%s5399_s20 + $0x8] sm:$0xff]  ;;  %v5440_v15 = vld [vmem:[%s5307_s12 + $0x78] sm:$0xff] }
  0x2c   : > { %2584 = vmatpush.msra.mxu2 %v2567_v33  ;;  %4266 = vmatpush.msra.mxu3 %v846_v28  ;;  %v5425_v7 = vld [vmem:[%s5307_s12 + $0x60] sm:$0xff]  ;;  %v767_v10 = vsel %vm765_vm0, 1.0, %v702_v9  ;;  %v5434_v12 = vld [vmem:[%s5307_s12 + $0x88] sm:$0xff]  ;;  %v703_v16 = vld [vmem:[%s5399_s20 + $0x10] sm:$0xff] }
  0x2d   : > { %342 = vperm.xlu2 %4520, %v5360_v34   ;;  %339 = vperm.xlu1 %4519, %v5363_v35   ;;  %v5437_v13 = vld [vmem:[%s5307_s12 + $0x80] sm:$0xff]  ;;  %v768_v18 = vsel %vm765_vm0, 1.0, %v703_v16  ;;  %v5452_v24 = vld [vmem:[%s5307_s12 + $0x98] sm:$0xff]  ;;  %v5455_v25 = vld [vmem:[%s5307_s12 + $0x90] sm:$0xff] }
  0x2e   : > { %336 = vperm.xlu0 %4518, %v5366_v36   ;;  %871 = vmatpush.msra.mxu0 %v842_v37  ;;  %v5449_v22 = vld [vmem:[%s5307_s12 + $0xa0] sm:$0xff]  ;;  %v704_v27 = vld [vmem:[%s5399_s20 + $0x18] sm:$0xff]  ;;  %v5470_v33 = vld [vmem:[%s5307_s12 + $0xa8] sm:$0xff] }
  0x2f   : > { %1080 = vmatpush.msra.mxu1 %v5369_v38  ;;  %2585 = vmatpush.msra.mxu2 %v2566_v39  ;;  %v769_v28 = vsel %vm765_vm0, 1.0, %v704_v27  ;;  %v5464_v30 = vld [vmem:[%s5307_s12 + $0xb8] sm:$0xff]  ;;  %v5485_v43 = vld [vmem:[%s5307_s12 + $0xc0] sm:$0xff]  ;;  %v5530_v16 = vld [vmem:[%s5307_s12 + $0x108] sm:$0xff] }
  0x30   : > { %872 = vmatpush.msra.mxu0 %v840_v40  ;;  %4267 = vmatpush.msra.mxu3 %v844_v31  ;;  %v5467_v31 = vld [vmem:[%s5307_s12 + $0xb0] sm:$0xff]  ;;  %v5509_v59 = vld [vmem:[%s5307_s12 + $0x100] sm:$0xff]  ;;  %v5524_v9 = vld [vmem:[%s5307_s12 + $0x118] sm:$0xff] }
  0x31   : > { %1081 = vmatpush.msra.mxu1 %v5374_v41  ;;  %2586 = vmatpush.msra.mxu2 %v2565_v42  ;;  %v5482_v42 = vld [vmem:[%s5307_s12 + $0xc8] sm:$0xff]  ;;  %8610 = vst [vmem:[#allocation12_spill] sm:$0xff] %v5524_v9  ;;  %v709_v27 = vld [vmem:[%s5399_s20 + $0x40] sm:$0xff]  ;;  %v5829_v6 = vld [vmem:[%s5307_s12 + $0x1f8] sm:$0xff] }
  0x32   : > { %873 = vmatpush.msra.mxu0 %v838_v44  ;;  %4268 = vmatpush.msra.mxu3 %v842_v37  ;;  %v705_v37 = vld [vmem:[%s5399_s20 + $0x20] sm:$0xff] }
  0x33   : > { %1082 = vmatpush.msra.mxu1 %v5377_v45  ;;  %2587 = vmatpush.msra.mxu2 %v2564_v46  ;;  %v770_v39 = vsel %vm765_vm0, 1.0, %v705_v37  ;;  %v5541_v37 = vld [vmem:[%s5307_s12 + $0x130] sm:$0xff] }
  0x34   : > { %874 = vmatpush.msra.mxu0 %v836_v47  ;;  %4269 = vmatpush.msra.mxu3 %v840_v40  ;;  %v5479_v40 = vld [vmem:[%s5307_s12 + $0xd0] sm:$0xff]  ;;  %8613 = vst [vmem:[#allocation15_spill] sm:$0xff] %v5541_v37 }
  0x35   : > { %1083 = vmatpush.msra.mxu1 %v5380_v48  ;;  %2588 = vmatpush.msra.mxu2 %v2563_v49  ;;  %v5497_v49 = vld [vmem:[%s5307_s12 + $0xe0] sm:$0xff] }
  0x36   : > { %351 = vperm.xlu2 %4520, %v5384_v50   ;;  %348 = vperm.xlu1 %4519, %v5389_v52   ;;  %8607 = vst [vmem:[#allocation9_spill] sm:$0xff] %v5497_v49 }
  0x37   : > { %345 = vperm.xlu0 %4518, %v5392_v53   ;;  %875 = vmatpush.msra.mxu0 %v834_v54 }
  0x38   : > { %1084 = vmatpush.msra.mxu1 %v5402_v55  ;;  %2589 = vmatpush.msra.mxu2 %v2562_v56  ;;  %v707_v56 = vld [vmem:[%s5399_s20 + $0x30] sm:$0xff] }
  0x39   : > { %876 = vmatpush.msra.mxu0 %v832_v57  ;;  %4270 = vmatpush.msra.mxu3 %v838_v44  ;;  %v706_v44 = vld [vmem:[%s5399_s20 + $0x28] sm:$0xff] }
  0x3a   : > { %1085 = vmatpush.msra.mxu1 %v5407_v58  ;;  %2590 = vmatpush.msra.mxu2 %v2561_v60  ;;  %v771_v46 = vsel %vm765_vm0, 1.0, %v706_v44  ;;  %v5512_v60 = vld [vmem:[%s5307_s12 + $0xf8] sm:$0xff]  ;;  %v5547_v44 = vld [vmem:[%s5307_s12 + $0x120] sm:$0xff] }
  0x3b   : > { %877 = vmatpush.msra.mxu0 %v830_v61  ;;  %4271 = vmatpush.msra.mxu3 %v836_v47  ;;  %v5494_v47 = vld [vmem:[%s5307_s12 + $0xe8] sm:$0xff]  ;;  %8608 = vst [vmem:[#allocation10_spill] sm:$0xff] %v5512_v60 }
  0x3c   : > { %1086 = vmatpush.msra.mxu1 %v5412_v62  ;;  %2591 = vmatpush.msra.mxu2 %v2560_v63  ;;  %8606 = vst [vmem:[#allocation8_spill] sm:$0xff] %v5494_v47  ;;  %v708_v63 = vld [vmem:[%s5399_s20 + $0x38] sm:$0xff] }
  0x3d   : > { %878 = vmatmul.f32.vlgmr.msra.gmra.mxu0 %v766_v0  ;;  %1087 = vmatmul.f32.vlgmr.msra.gmra.mxu1 %v766_v0  ;;  %8615 = vst [vmem:[#allocation17_spill] sm:$0xff] %v5547_v44 }
  0x3e   : > { %2592 = vmatmul.f32.vlgmr.msra.gmra.mxu2 %v766_v0  ;;  %360 = vperm.xlu2 %4520, %v5419_v1   ;;  %v773_v0 = vsel %vm765_vm0, 1.0, %v708_v63  ;;  %v5558_v63 = vld [vmem:[%s5307_s12 + $0x148] sm:$0xff] }
  0x3f   : > { %357 = vperm.xlu1 %4519, %v5422_v3   ;;  %354 = vperm.xlu0 %4518, %v5425_v7   ;;  %8617 = vst [vmem:[#allocation19_spill] sm:$0xff] %v5558_v63 }
  0x40   : > { %4272 = vmatpush.msra.mxu3 %v834_v54  ;;  %v5500_v54 = vld [vmem:[%s5307_s12 + $0xd8] sm:$0xff] }
  0x42   : > { %4273 = vmatpush.msra.mxu3 %v832_v57  ;;  %v772_v57 = vsel %vm765_vm0, 1.0, %v707_v56  ;;  %v710_v56 = vld [vmem:[%s5399_s20 + $0x48] sm:$0xff] }
  0x44   : > { %4274 = vmatpush.msra.mxu3 %v830_v61  ;;  %v5515_v61 = vld [vmem:[%s5307_s12 + $0xf0] sm:$0xff] }
  0x45   : > { %881 = vmatmul.f32.gmra.mxu0 %v767_v10  ;;  %1090 = vmatmul.f32.gmra.mxu1 %v767_v10  ;;  %8609 = vst [vmem:[#allocation11_spill] sm:$0xff] %v5515_v61 }
  0x46   : > { %2595 = vmatmul.f32.gmra.mxu2 %v767_v10  ;;  %369 = vperm.xlu2 %4520, %v5434_v12   ;;  %v5527_v10 = vld [vmem:[%s5307_s12 + $0x110] sm:$0xff] }
  0x47   : > { %366 = vperm.xlu1 %4519, %v5437_v13   ;;  %363 = vperm.xlu0 %4518, %v5440_v15   ;;  %8611 = vst [vmem:[#allocation13_spill] sm:$0xff] %v5527_v10 }
  0x4d   : > { %884 = vmatmul.f32.gmra.mxu0 %v768_v18  ;;  %1093 = vmatmul.f32.gmra.mxu1 %v768_v18 }
  0x4e   : > { %2598 = vmatmul.f32.gmra.mxu2 %v768_v18  ;;  %378 = vperm.xlu2 %4520, %v5449_v22  }
  0x4f   : > { %375 = vperm.xlu1 %4519, %v5452_v24   ;;  %372 = vperm.xlu0 %4518, %v5455_v25  }
  0x55   : > { %887 = vmatmul.f32.gmra.mxu0 %v769_v28  ;;  %1096 = vmatmul.f32.gmra.mxu1 %v769_v28 }
  0x56   : > { %2601 = vmatmul.f32.gmra.mxu2 %v769_v28  ;;  %387 = vperm.xlu2 %4520, %v5464_v30   ;;  %v774_v28 = vsel %vm765_vm0, 1.0, %v709_v27  ;;  %v5564_v27 = vld [vmem:[%s5307_s12 + $0x138] sm:$0xff] }
  0x57   : > { %384 = vperm.xlu1 %4519, %v5467_v31   ;;  %381 = vperm.xlu0 %4518, %v5470_v33   ;;  %8619 = vst [vmem:[#allocation21_spill] sm:$0xff] %v5564_v27 }
  0x5d   : > { %890 = vmatmul.f32.gmra.mxu0 %v770_v39  ;;  %1099 = vmatmul.f32.gmra.mxu1 %v770_v39 }
  0x5e   : > { %2604 = vmatmul.f32.gmra.mxu2 %v770_v39  ;;  %396 = vperm.xlu2 %4520, %v5479_v40   ;;  %v5544_v39 = vld [vmem:[%s5307_s12 + $0x128] sm:$0xff] }
  0x5f   : > { %393 = vperm.xlu1 %4519, %v5482_v42   ;;  %390 = vperm.xlu0 %4518, %v5485_v43   ;;  %8614 = vst [vmem:[#allocation16_spill] sm:$0xff] %v5544_v39 }
  0x65   : > { %893 = vmatmul.f32.gmra.mxu0 %v771_v46  ;;  %1102 = vmatmul.f32.gmra.mxu1 %v771_v46 }
  0x66   : > { %2607 = vmatmul.f32.gmra.mxu2 %v771_v46  ;;  %405 = vperm.xlu2 %4520, %v5494_v47  }
  0x67   : > { %402 = vperm.xlu1 %4519, %v5497_v49   ;;  %399 = vperm.xlu0 %4518, %v5500_v54  }
  0x6d   : > { %896 = vmatmul.f32.gmra.mxu0 %v772_v57  ;;  %1105 = vmatmul.f32.gmra.mxu1 %v772_v57 }
  0x6e   : > { %2610 = vmatmul.f32.gmra.mxu2 %v772_v57  ;;  %414 = vperm.xlu2 %4520, %v5509_v59   ;;  %v775_v57 = vsel %vm765_vm0, 1.0, %v710_v56 }
  0x6f   : > { %411 = vperm.xlu1 %4519, %v5512_v60   ;;  %408 = vperm.xlu0 %4518, %v5515_v61   ;;  %v5602_v60 = vld [vmem:[%s5307_s12 + $0x168] sm:$0xff] }
  0x70   : > { %8629 = vst [vmem:[#allocation31_spill] sm:$0xff] %v5602_v60 }
  0x75   : > { %899 = vmatmul.f32.gmra.mxu0 %v773_v0  ;;  %1108 = vmatmul.f32.gmra.mxu1 %v773_v0 }
  0x76   : > { %2613 = vmatmul.f32.gmra.mxu2 %v773_v0  ;;  %423 = vperm.xlu2 %4520, %v5524_v9   ;;  %v5561_v0 = vld [vmem:[%s5307_s12 + $0x140] sm:$0xff]  ;;  %v5578_v9 = vld [vmem:[%s5307_s12 + $0x158] sm:$0xff] }
  0x77   : > { %v5532_v18 = vpop.permute.xlu2 %330  ;;  %420 = vperm.xlu1 %4519, %v5527_v10   ;;  %417 = vperm.xlu0 %4518, %v5530_v16   ;;  %8618 = vst [vmem:[#allocation20_spill] sm:$0xff] %v5561_v0 }
  0x78   : > { %8612 = vst [vmem:[#allocation14_spill] sm:$0xff] %v5532_v18 }
  0x79   : > { %8622 = vst [vmem:[#allocation24_spill] sm:$0xff] %v5578_v9 }
  0x7d   : > { %902 = vmatmul.f32.gmra.mxu0 %v774_v28  ;;  %1111 = vmatmul.f32.gmra.mxu1 %v774_v28 }
  0x7e   : > { %2616 = vmatmul.f32.gmra.mxu2 %v774_v28  ;;  %432 = vperm.xlu2 %4520, %v5541_v37   ;;  %v5596_v37 = vld [vmem:[%s5307_s12 + $0x178] sm:$0xff] }
  0x7f   : > { %v5549_v46 = vpop.permute.xlu2 %333  ;;  %429 = vperm.xlu1 %4519, %v5544_v39   ;;  %426 = vperm.xlu0 %4518, %v5547_v44   ;;  %v711_v39 = vld [vmem:[%s5399_s20 + $0x50] sm:$0xff]  ;;  %v5575_v44 = vld [vmem:[%s5307_s12 + $0x160] sm:$0xff]  ;;  %8627 = vst [vmem:[#allocation29_spill] sm:$0xff] %v5596_v37 }
  0x80   : > { %8616 = vst [vmem:[#allocation18_spill] sm:$0xff] %v5549_v46  ;;  %v776_v56 = vsel %vm765_vm0, 1.0, %v711_v39  ;;  %v712_v39 = vld [vmem:[%s5399_s20 + $0x58] sm:$0xff] }
  0x81   : > { %8621 = vst [vmem:[#allocation23_spill] sm:$0xff] %v5575_v44 }
  0x85   : > { %905 = vmatmul.f32.gmra.mxu0 %v775_v57  ;;  %1114 = vmatmul.f32.gmra.mxu1 %v775_v57 }
  0x86   : > { %2619 = vmatmul.f32.gmra.mxu2 %v775_v57  ;;  %441 = vperm.xlu2 %4520, %v5558_v63   ;;  %v5581_v57 = vld [vmem:[%s5307_s12 + $0x150] sm:$0xff] }
  0x87   : > { %438 = vperm.xlu1 %4519, %v5561_v0   ;;  %v5568_v28 = vpop.permute.xlu2 %342  ;;  %435 = vperm.xlu0 %4518, %v5564_v27   ;;  %8623 = vst [vmem:[#allocation25_spill] sm:$0xff] %v5581_v57  ;;  %v777_v27 = vsel %vm765_vm0, 1.0, %v712_v39  ;;  %v713_v39 = vld [vmem:[%s5399_s20 + $0x60] sm:$0xff] }
  0x88   : > { %8620 = vst [vmem:[#allocation22_spill] sm:$0xff] %v5568_v28 }
  0x8d   : > { %908 = vmatmul.f32.gmra.mxu0 %v776_v56  ;;  %1117 = vmatmul.f32.gmra.mxu1 %v776_v56 }
  0x8e   : > { %2622 = vmatmul.f32.gmra.mxu2 %v776_v56  ;;  %450 = vperm.xlu2 %4520, %v5575_v44   ;;  %v5599_v56 = vld [vmem:[%s5307_s12 + $0x170] sm:$0xff]  ;;  %v757_v44 = vld [vmem:[%s5399_s20 + $0x1c0] sm:$0xff] }
  0x8f   : > { %v5583_v63 = vpop.permute.xlu1 %324  ;;  %447 = vperm.xlu1 %4519, %v5578_v9   ;;  %444 = vperm.xlu0 %4518, %v5581_v57   ;;  %8628 = vst [vmem:[#allocation30_spill] sm:$0xff] %v5599_v56  ;;  %v5615_v61 = vsel %vm765_vm0, 1.0, %v757_v44  ;;  %v714_v44 = vld [vmem:[%s5399_s20 + $0x68] sm:$0xff] }
  0x90   : > { %8624 = vst [vmem:[#allocation26_spill] sm:$0xff] %v5583_v63  ;;  %v5585_v0 = vpop.permute.xlu0 %318  ;;  %v5591_v10 = vpop.permute.xlu2 %351  ;;  %1046 = vmatmul.f32.vlgmr.msra.gmra.mxu3 %v5615_v61 }
  0x91   : > { %8625 = vst [vmem:[#allocation27_spill] sm:$0xff] %v5585_v0  ;;  %4275 = vmatpush.msra.mxu3 %v5309_v2  ;;  %vm520_vm8 = vcmp.eq.s32.totalorder %v5591_v10, %v5386_v51 }
  0x92   : > { %8626 = vst [vmem:[#allocation28_spill] sm:$0xff] %v5591_v10  ;;  %v8709_v10 = vld [vmem:[#allocation31_spill] sm:$0xff] }
  0x93   : > { %4276 = vmatpush.msra.mxu3 %v5322_v8  ;;  %v758_v8 = vld [vmem:[%s5399_s20 + $0x1c8] sm:$0xff] }
  0x95   : > { %911 = vmatmul.f32.gmra.mxu0 %v777_v27  ;;  %1120 = vmatmul.f32.gmra.mxu1 %v777_v27 }
  0x96   : > { %2625 = vmatmul.f32.gmra.mxu2 %v777_v27  ;;  %459 = vperm.xlu2 %4520, %v5596_v37   ;;  %v778_v27 = vsel %vm765_vm0, 1.0, %v713_v39  ;;  %v5624_v37 = vld [vmem:[%s5307_s12 + $0x190] sm:$0xff] }
  0x97   : > { %456 = vperm.xlu1 %4519, %v5599_v56   ;;  %v5606_v9 = vpop.permute.xlu1 %327  ;;  %453 = vperm.xlu0 %4518, %v5602_v60   ;;  %8633 = vst [vmem:[#allocation35_spill] sm:$0xff] %v5624_v37  ;;  %v5627_v56 = vld [vmem:[%s5307_s12 + $0x188] sm:$0xff]  ;;  %v5631_v60 = vld [vmem:[%s5307_s12 + $0x180] sm:$0xff] }
  0x98   : > { %8630 = vst [vmem:[#allocation32_spill] sm:$0xff] %v5606_v9  ;;  %v5608_v57 = vpop.permute.xlu0 %321  ;;  %v5617_v47 = vpop.permute.xlu2 %360  ;;  %4277 = vmatpush.msra.mxu3 %v5326_v11  ;;  %v5660_v11 = vld [vmem:[%s5307_s12 + $0x198] sm:$0xff] }
  0x99   : > { %8631 = vst [vmem:[#allocation33_spill] sm:$0xff] %v5608_v57  ;;  %vm523_vm2 = vcmp.eq.s32.totalorder %v5617_v47, %v5386_v51 }
  0x9a   : > { %8632 = vst [vmem:[#allocation34_spill] sm:$0xff] %v5617_v47  ;;  %4278 = vmatpush.msra.mxu3 %v5329_v14  ;;  %v759_v14 = vld [vmem:[%s5399_s20 + $0x1d0] sm:$0xff] }
  0x9b   : > { %8634 = vst [vmem:[#allocation36_spill] sm:$0xff] %v5627_v56 }
  0x9c   : > { %8635 = vst [vmem:[#allocation37_spill] sm:$0xff] %v5631_v60  ;;  %4279 = vmatpush.msra.mxu3 %v5332_v17  ;;  %v5675_v17 = vsel %vm765_vm0, 1.0, %v759_v14 }
  0x9d   : > { %914 = vmatmul.f32.gmra.mxu0 %v778_v27  ;;  %1123 = vmatmul.f32.gmra.mxu1 %v778_v27  ;;  %8641 = vst [vmem:[#allocation43_spill] sm:$0xff] %v5660_v11 }
  0x9e   : > { %2628 = vmatmul.f32.gmra.mxu2 %v778_v27  ;;  %468 = vperm.xlu2 %4520, %v5624_v37   ;;  %v5647_v27 = vsel %vm765_vm0, 1.0, %v758_v8  ;;  %v5657_v37 = vld [vmem:[%s5307_s12 + $0x1a0] sm:$0xff] }
  0x9f   : > { %465 = vperm.xlu1 %4519, %v5627_v56   ;;  %462 = vperm.xlu0 %4518, %v5631_v60   ;;  %v5637_v2 = vpop.permute.xlu1 %339  ;;  %v779_v56 = vsel %vm765_vm0, 1.0, %v714_v44  ;;  %v5654_v60 = vld [vmem:[%s5307_s12 + $0x1a8] sm:$0xff]  ;;  %8640 = vst [vmem:[#allocation42_spill] sm:$0xff] %v5657_v37  ;;  %v715_v44 = vld [vmem:[%s5399_s20 + $0x70] sm:$0xff] }
  0xa0   : > { %8636 = vst [vmem:[#allocation38_spill] sm:$0xff] %v5637_v2  ;;  %v5639_v39 = vpop.permute.xlu0 %336  ;;  %v5643_v49 = vpop.permute.xlu2 %369  ;;  %1049 = vmatmul.f32.gmra.mxu3 %v5647_v27 }
  0xa1   : > { %8637 = vst [vmem:[#allocation39_spill] sm:$0xff] %v5639_v39  ;;  %4280 = vmatpush.msra.mxu3 %v5345_v23  ;;  %v5684_v23 = vld [vmem:[%s5307_s12 + $0x1c0] sm:$0xff] }
  0xa2   : > { %8638 = vst [vmem:[#allocation40_spill] sm:$0xff] %v5643_v49 }
  0xa3   : > { %8639 = vst [vmem:[#allocation41_spill] sm:$0xff] %v5654_v60  ;;  %4281 = vmatpush.msra.mxu3 %v5350_v26  ;;  %v760_v26 = vld [vmem:[%s5399_s20 + $0x1d8] sm:$0xff] }
  0xa4   : > { %8645 = vst [vmem:[#allocation47_spill] sm:$0xff] %v5684_v23 }
  0xa5   : > { %917 = vmatmul.f32.gmra.mxu0 %v779_v56  ;;  %1126 = vmatmul.f32.gmra.mxu1 %v779_v56 }
  0xa6   : > { %2631 = vmatmul.f32.gmra.mxu2 %v779_v56  ;;  %477 = vperm.xlu2 %4520, %v5654_v60   ;;  %v780_v60 = vsel %vm765_vm0, 1.0, %v715_v44  ;;  %v716_v44 = vld [vmem:[%s5399_s20 + $0x78] sm:$0xff] }
  0xa7   : > { %474 = vperm.xlu1 %4519, %v5657_v37   ;;  %471 = vperm.xlu0 %4518, %v5660_v11   ;;  %v5690_v37 = vld [vmem:[%s5307_s12 + $0x1b0] sm:$0xff] }
  0xa8   : > { %v5669_v8 = vpop.permute.xlu2 %378  ;;  %v5671_v49 = vpop.permute.xlu1 %348  ;;  %1052 = vmatmul.f32.gmra.mxu3 %v5675_v17  ;;  %8647 = vst [vmem:[#allocation49_spill] sm:$0xff] %v5690_v37 }
  0xa9   : > { %8642 = vst [vmem:[#allocation44_spill] sm:$0xff] %v5669_v8  ;;  %v5677_v56 = vpop.permute.xlu0 %345  ;;  %v5687_v8 = vld [vmem:[%s5307_s12 + $0x1b8] sm:$0xff]  ;;  %4282 = vmatpush.msra.mxu3 %v5353_v29  ;;  %v5705_v29 = vsel %vm765_vm0, 1.0, %v760_v26  ;;  %vm519_vm11 = vcmp.eq.s32.totalorder %v5671_v49, %v5386_v51 }
  0xaa   : > { %8643 = vst [vmem:[#allocation45_spill] sm:$0xff] %v5671_v49 }
  0xab   : > { %8644 = vst [vmem:[#allocation46_spill] sm:$0xff] %v5677_v56  ;;  %4283 = vmatpush.msra.mxu3 %v5356_v32  ;;  %v5714_v32 = vld [vmem:[%s5307_s12 + $0x1d8] sm:$0xff] }
  0xac   : > { %8646 = vst [vmem:[#allocation48_spill] sm:$0xff] %v5687_v8 }
  0xad   : > { %920 = vmatmul.f32.gmra.mxu0 %v780_v60  ;;  %1129 = vmatmul.f32.gmra.mxu1 %v780_v60  ;;  %8651 = vst [vmem:[#allocation53_spill] sm:$0xff] %v5714_v32 }
  0xae   : > { %2634 = vmatmul.f32.gmra.mxu2 %v780_v60  ;;  %486 = vperm.xlu2 %4520, %v5684_v23  }
  0xaf   : > { %483 = vperm.xlu1 %4519, %v5687_v8   ;;  %480 = vperm.xlu0 %4518, %v5690_v37   ;;  %v781_v8 = vsel %vm765_vm0, 1.0, %v716_v44  ;;  %v5720_v37 = vld [vmem:[%s5307_s12 + $0x1c8] sm:$0xff]  ;;  %v717_v44 = vld [vmem:[%s5399_s20 + $0x80] sm:$0xff] }
  0xb0   : > { %v5699_v14 = vpop.permute.xlu2 %387  ;;  %1055 = vmatmul.f32.gmra.mxu3 %v5705_v29 }
  0xb1   : > { %8648 = vst [vmem:[#allocation50_spill] sm:$0xff] %v5699_v14  ;;  %v5701_v11 = vpop.permute.xlu1 %357  ;;  %v5707_v60 = vpop.permute.xlu0 %354  ;;  %4284 = vmatpush.msra.mxu3 %v5369_v38  ;;  %v5717_v14 = vld [vmem:[%s5307_s12 + $0x1d0] sm:$0xff]  ;;  %v761_v38 = vld [vmem:[%s5399_s20 + $0x1e0] sm:$0xff] }
  0xb2   : > { %8649 = vst [vmem:[#allocation51_spill] sm:$0xff] %v5701_v11  ;;  %vm522_vm7 = vcmp.eq.s32.totalorder %v5701_v11, %v5386_v51  ;;  %vm521_vm9 = vcmp.eq.s32.totalorder %v5707_v60, %v5386_v51 }
  0xb3   : > { %8650 = vst [vmem:[#allocation52_spill] sm:$0xff] %v5707_v60  ;;  %4285 = vmatpush.msra.mxu3 %v5374_v41  ;;  %v5735_v41 = vsel %vm765_vm0, 1.0, %v761_v38  ;;  %v8452_v38 = vmov 1.0   ;;  %v8710_v60 = vld [vmem:[#allocation20_spill] sm:$0xff] }
  0xb4   : > { %8652 = vst [vmem:[#allocation54_spill] sm:$0xff] %v5717_v14 }
  0xb5   : > { %923 = vmatmul.f32.gmra.mxu0 %v781_v8  ;;  %1132 = vmatmul.f32.gmra.mxu1 %v781_v8 }
  0xb6   : > { %2637 = vmatmul.f32.gmra.mxu2 %v781_v8  ;;  %495 = vperm.xlu2 %4520, %v5714_v32  }
  0xb7   : > { %492 = vperm.xlu1 %4519, %v5717_v14   ;;  %489 = vperm.xlu0 %4518, %v5720_v37   ;;  %v782_v14 = vsel %vm765_vm0, 1.0, %v717_v44  ;;  %v5756_v44 = vld [vmem:[%s5307_s12 + $0x1f0] sm:$0xff] }
  0xb8   : > { %4286 = vmatpush.msra.mxu3 %v5377_v45  ;;  %v5729_v26 = vpop.permute.xlu2 %396 }
  0xb9   : > { %8653 = vst [vmem:[#allocation55_spill] sm:$0xff] %v5729_v26  ;;  %v5731_v23 = vpop.permute.xlu1 %366  ;;  %v5737_v8 = vpop.permute.xlu0 %363  ;;  %1058 = vmatmul.f32.gmra.mxu3 %v5735_v41  ;;  %v5759_v26 = vld [vmem:[%s5307_s12 + $0x1e8] sm:$0xff] }
  0xba   : > { %8654 = vst [vmem:[#allocation56_spill] sm:$0xff] %v5731_v23  ;;  %v5739_v32 = vpop.f32.mrf.mxu0  ;;  %v5744_v45 = vpop.f32.mrf.mxu1  ;;  %vm524_vm1 = vcmp.eq.s32.totalorder %v5737_v8, %v5386_v51  ;;  %4287 = vmatpush.msra.mxu3 %v5380_v48  ;;  %v5762_v23 = vld [vmem:[%s5307_s12 + $0x1e0] sm:$0xff]  ;;  %v718_v48 = vld [vmem:[%s5399_s20 + $0x88] sm:$0xff] }
  0xbb   : > { %8655 = vst [vmem:[#allocation57_spill] sm:$0xff] %v5737_v8  ;;  %v8468_v8 = vmov 0.0   ;;  %v783_v5 = vsel %vm765_vm0, 1.0, %v718_v48 }
  0xbc   : > { %8656 = vst [vmem:[#allocation58_spill] sm:$0xff] %v5739_v32  ;;  %4397 = vmatpush.lsf.msk.msk.msrb.mxu3 %vm524_vm1, %v8452_v38  ;;  %v4062_v32 = vsel %vm1282_vm3, 1.0, %v8468_v8  ;;  %v4060_v20 = vsel %vm1280_vm5, 1.0, %v8468_v8  ;;  %vm1287_vm3 = vcmp.eq.s32.totalorder %v5363_v35, 0  ;;  %vm8459_vm5 = vcmp.eq.s32.totalorder %v5568_v28, %v5386_v51  ;;  %v724_v28 = vld [vmem:[%s5399_s20 + $0xb8] sm:$0xff] }
  0xbd   : > { %8657 = vst [vmem:[#allocation59_spill] sm:$0xff] %v5744_v45  ;;  %926 = vmatmul.f32.gmra.mxu0 %v782_v14  ;;  %1135 = vmatmul.f32.gmra.mxu1 %v782_v14  ;;  %v4063_v45 = vsel %vm1283_vm4, 1.0, %v8468_v8  ;;  %vm8460_vm4 = vcmp.eq.s32.totalorder %v5677_v56, %v5386_v51  ;;  %v4064_v34 = vsel %vm1284_vm13, 1.0, %v8468_v8  ;;  %v4066_v4 = vsel %vm1286_vm15, 1.0, %v8468_v8 }
  0xbe   : > { %4288 = vmatpush.msra.mxu3 %v5402_v55  ;;  %2640 = vmatmul.f32.gmra.mxu2 %v782_v14  ;;  %v762_v55 = vld [vmem:[%s5399_s20 + $0x1e8] sm:$0xff]  ;;  %v4526_v48 = vpack.i.bf16 %v4063_v45, %v4062_v32  ;;  %v763_v32 = vld [vmem:[%s5399_s20 + $0x1f0] sm:$0xff]  ;;  %v4067_v19 = vsel %vm1287_vm3, 1.0, %v8468_v8  ;;  %vm8464_vm13 = vcmp.eq.s32.totalorder %v5549_v46, %v5386_v51  ;;  %vm1290_vm15 = vcmp.eq.s32.totalorder %v5389_v52, 0 }
  0xbf   : > { %504 = vperm.xlu2 %4520, %v5756_v44   ;;  %501 = vperm.xlu1 %4519, %v5759_v26   ;;  %v4536_v35 = vpack.i.bf16 %v4067_v19, %v4066_v4  ;;  %vm1291_vm3 = vcmp.eq.s32.totalorder %v5384_v50, 0  ;;  %v4070_v4 = vsel %vm1290_vm15, 1.0, %v8468_v8  ;;  %vm1296_vm15 = vcmp.eq.s32.totalorder %v5437_v13, 0 }
  0xc0   : > { %4398 = vmatpush.lsf.msk.msk.msrb.mxu3 %vm523_vm2, %v8452_v38  ;;  %498 = vperm.xlu0 %4518, %v5762_v23   ;;  %v5786_v47 = vpop.permute.xlu2 %405  ;;  %v4071_v19 = vsel %vm1291_vm3, 1.0, %v8468_v8  ;;  %vm1297_vm3 = vcmp.eq.s32.totalorder %v5434_v12, 0 }
  0xc1   : > { %v5784_v14 = vpop.f32.mrf.mxu2  ;;  %8659 = vst [vmem:[#allocation61_spill] sm:$0xff] %v5786_v47  ;;  %v5800_v11 = vpop.permute.xlu1 %375 }
  0xc2   : > { %4399 = vmatpush.lsf.msk.msk.msrb.mxu3 %vm522_vm7, %v8452_v38  ;;  %8658 = vst [vmem:[#allocation60_spill] sm:$0xff] %v5784_v14  ;;  %v5798_v38 = vsel %vm765_vm0, 1.0, %v762_v55  ;;  %v5804_v47 = vpop.permute.xlu0 %372  ;;  %v4061_v14 = vsel %vm1281_vm6, 1.0, %v8468_v8  ;;  %v8662_v55 = vmov 1.0   ;;  %vm8458_vm6 = vcmp.eq.s32.totalorder %v5637_v2, %v5386_v51  ;;  %v8699_v2 = vld [vmem:[#allocation12_spill] sm:$0xff] }
  0xc3   : > { %8660 = vst [vmem:[#allocation62_spill] sm:$0xff] %v5800_v11  ;;  %1061 = vmatmul.f32.gmra.mxu3 %v5798_v38  ;;  %v5819_v11 = vpop.f32.mrf.mxu0  ;;  %v4521_v21 = vpack.i.bf16 %v4061_v14, %v4060_v20  ;;  %v4065_v20 = vsel %vm1285_vm14, 1.0, %v8468_v8  ;;  %vm1295_vm14 = vcmp.eq.s32.totalorder %v5440_v15, 0 }
  0xc4   : > { %8661 = vst [vmem:[#allocation63_spill] sm:$0xff] %v5804_v47  ;;  %4400 = vmatpush.lsf.msk.msk.msrb.mxu3 %vm521_vm9, %v8662_v55  ;;  %v5821_v47 = vpop.f32.mrf.mxu1 }
  0xc5   : > { %8663 = vst [vmem:[#allocation64_spill] sm:$0xff] %v5819_v11  ;;  %929 = vmatmul.f32.gmra.mxu0 %v783_v5  ;;  %1138 = vmatmul.f32.gmra.mxu1 %v783_v5 }
  0xc6   : > { %8664 = vst [vmem:[#allocation65_spill] sm:$0xff] %v5821_v47  ;;  %4289 = vmatpush.msra.mxu3 %v5407_v58  ;;  %2643 = vmatmul.f32.gmra.mxu2 %v783_v5  ;;  %v719_v58 = vld [vmem:[%s5399_s20 + $0x90] sm:$0xff]  ;;  %v4069_v5 = vsel %vm1289_vm12, 1.0, %v8468_v8  ;;  %vm1294_vm12 = vcmp.eq.s32.totalorder %v5419_v1, 0 }
  0xc7   : > { %4527 = vperm.xlu2 %4520, %v4526_v48   ;;  %4522 = vperm.xlu1 %4519, %v4521_v21   ;;  %v5873_v48 = vsel %vm765_vm0, 1.0, %v763_v32  ;;  %v784_v53 = vsel %vm765_vm0, 1.0, %v719_v58  ;;  %v4531_v58 = vpack.i.bf16 %v4065_v20, %v4064_v34  ;;  %v4074_v1 = vsel %vm1294_vm12, 1.0, %v8468_v8 }
  0xc8   : > { %4401 = vmatpush.lsf.msk.msk.msrb.mxu3 %vm520_vm8, %v8662_v55  ;;  %507 = vperm.xlu0 %4518, %v5829_v6   ;;  %v5860_v14 = vpop.permute.xlu2 %414  ;;  %vm8462_vm12 = vcmp.eq.s32.totalorder %v5606_v9, %v5386_v51 }
  0xc9   : > { %v5858_v45 = vpop.f32.mrf.mxu2  ;;  %8666 = vst [vmem:[#allocation67_spill] sm:$0xff] %v5860_v14  ;;  %v5875_v21 = vpop.permute.xlu1 %384 }
  0xca   : > { %4290 = vmatpush.msra.mxu3 %v5412_v62  ;;  %v4068_v62 = vsel %vm1288_vm10, 1.0, %v8468_v8  ;;  %8665 = vst [vmem:[#allocation66_spill] sm:$0xff] %v5858_v45  ;;  %v5877_v56 = vpop.permute.xlu0 %381  ;;  %vm515_vm10 = vcmp.eq.s32.totalorder %v5639_v39, %v5386_v51  ;;  %v8698_v39 = vld [vmem:[#allocation13_spill] sm:$0xff] }
  0xcb   : > { %8667 = vst [vmem:[#allocation68_spill] sm:$0xff] %v5875_v21  ;;  %1064 = vmatmul.f32.gmra.mxu3 %v5873_v48  ;;  %v5892_v32 = vpop.f32.mrf.mxu0  ;;  %v4541_v36 = vpack.i.bf16 %v4069_v5, %v4068_v62  ;;  %v720_v62 = vld [vmem:[%s5399_s20 + $0x98] sm:$0xff]  ;;  %v8712_v21 = vld [vmem:[#allocation25_spill] sm:$0xff] }
  0xcc   : > { %4402 = vmatpush.lsf.msk.msk.msrb.mxu3 %vm519_vm11, %v8662_v55  ;;  %8668 = vst [vmem:[#allocation69_spill] sm:$0xff] %v5877_v56  ;;  %v5894_v49 = vpop.f32.mrf.mxu1  ;;  %v764_v5 = vld [vmem:[%s5399_s20 + $0x1f8] sm:$0xff]  ;;  %v785_v15 = vsel %vm765_vm0, 1.0, %v720_v62  ;;  %v4546_v62 = vpack.i.bf16 %v4071_v19, %v4070_v4  ;;  %v5016_v56 = vld [vmem:[#allocation2 + $0x10] sm:$0xff] }
  0xcd   : > { %8669 = vst [vmem:[#allocation70_spill] sm:$0xff] %v5892_v32  ;;  %932 = vmatmul.f32.gmra.mxu0 %v784_v53  ;;  %1141 = vmatmul.f32.gmra.mxu1 %v784_v53  ;;  %v6616_v32 = vld [vmem:[%s5307_s12 + $0x110] sm:$0xff] }
  0xce   : > { %4403 = vmatpush.lsf.msk.msk.msrb.mxu3 %vm8460_vm4, %v8662_v55  ;;  %8670 = vst [vmem:[#allocation71_spill] sm:$0xff] %v5894_v49  ;;  %2646 = vmatmul.f32.gmra.mxu2 %v784_v53  ;;  %vm8463_vm4 = vcmp.eq.s32.totalorder %v5532_v18, %v5386_v51  ;;  %v4075_v53 = vsel %vm1295_vm14, 1.0, %v8468_v8  ;;  %vm1301_vm14 = vcmp.eq.s32.totalorder %v5470_v33, 0  ;;  %v6564_v49 = vld [vmem:[%s5307_s12 + $0xe0] sm:$0xff] }
  0xcf   : > { %4542 = vperm.xlu2 %4520, %v4541_v36   ;;  %4537 = vperm.xlu1 %4519, %v4536_v35   ;;  %v5940_v36 = vsel %vm765_vm0, 1.0, %v764_v5  ;;  %8779 = vst [vmem:[#allocation121_spill] sm:$0xff] %v6616_v32 }
  0xd0   : > { %4404 = vmatpush.lsf.msk.msk.msrb.mxu3 %vm8459_vm5, %v8662_v55  ;;  %vm1293_vm5 = vcmp.eq.s32.totalorder %v5422_v3, 0  ;;  %4532 = vperm.xlu0 %4518, %v4531_v58   ;;  %v5927_v20 = vpop.permute.xlu2 %423 }
  0xd1   : > { %v5925_v34 = vpop.f32.mrf.mxu2  ;;  %8672 = vst [vmem:[#allocation73_spill] sm:$0xff] %v5927_v20  ;;  %v5942_v58 = vpop.permute.xlu1 %393  ;;  %v4073_v50 = vsel %vm1293_vm5, 1.0, %v8468_v8  ;;  %vm8490_vm5 = vcmp.eq.s32.totalorder %v5583_v63, %v5386_v51  ;;  %v5001_v63 = vld [vmem:[#allocation2 + $0x178] sm:$0xff] }
  0xd2   : > { %4405 = vmatpush.lsf.msk.msk.msrb.mxu3 %vm8458_vm6, %v8662_v55  ;;  %vm1292_vm6 = vcmp.eq.s32.totalorder %v5425_v7, 0  ;;  %8671 = vst [vmem:[#allocation72_spill] sm:$0xff] %v5925_v34  ;;  %v5944_v35 = vpop.permute.xlu0 %390  ;;  %v4556_v7 = vpack.i.bf16 %v4075_v53, %v4074_v1  ;;  %v721_v1 = vld [vmem:[%s5399_s20 + $0xa0] sm:$0xff]  ;;  %v8721_v34 = vld [vmem:[#allocation30_spill] sm:$0xff] }
  0xd3   : > { %8673 = vst [vmem:[#allocation74_spill] sm:$0xff] %v5942_v58  ;;  %v4072_v52 = vsel %vm1292_vm6, 1.0, %v8468_v8  ;;  %1067 = vmatmul.f32.gmra.mxu3 %v5940_v36  ;;  %v5959_v5 = vpop.f32.mrf.mxu0  ;;  %vm1300_vm6 = vcmp.eq.s32.totalorder %v5449_v22, 0  ;;  %v786_v22 = vsel %vm765_vm0, 1.0, %v721_v1  ;;  %v8711_v58 = vld [vmem:[#allocation19_spill] sm:$0xff] }
  0xd4   : > { %4406 = vmatpush.lsf.msk.msk.msrb.mxu3 %vm515_vm10, %v8662_v55  ;;  %8674 = vst [vmem:[#allocation75_spill] sm:$0xff] %v5944_v35  ;;  %v5961_v46 = vpop.f32.mrf.mxu1  ;;  %v4551_v3 = vpack.i.bf16 %v4073_v50, %v4072_v52  ;;  %v4080_v19 = vsel %vm1300_vm6, 1.0, %v8468_v8  ;;  %v4076_v52 = vsel %vm1296_vm15, 1.0, %v8468_v8  ;;  %v4077_v50 = vsel %vm1297_vm3, 1.0, %v8468_v8  ;;  %v5013_v35 = vld [vmem:[#allocation2 + $0x58] sm:$0xff] }
  0xd5   : > { %8675 = vst [vmem:[#allocation76_spill] sm:$0xff] %v5959_v5  ;;  %935 = vmatmul.f32.gmra.mxu0 %v785_v15  ;;  %1144 = vmatmul.f32.gmra.mxu1 %v785_v15  ;;  %vm1302_vm6 = vcmp.eq.s32.totalorder %v5467_v31, 0  ;;  %vm1304_vm15 = vcmp.eq.s32.totalorder %v5485_v43, 0  ;;  %vm1305_vm3 = vcmp.eq.s32.totalorder %v5482_v42, 0  ;;  %v8685_v42 = vld [vmem:[#allocation9_spill] sm:$0xff]  ;;  %v8686_v43 = vld [vmem:[#allocation8_spill] sm:$0xff] }
  0xd6   : > { %4407 = vmatpush.lsf.msk.msk.msrb.mxu3 %vm8464_vm13, %v8662_v55  ;;  %8676 = vst [vmem:[#allocation77_spill] sm:$0xff] %v5961_v46  ;;  %2649 = vmatmul.f32.gmra.mxu2 %v785_v15  ;;  %vm8465_vm13 = vcmp.eq.s32.totalorder %v5608_v57, %v5386_v51  ;;  %v4081_v15 = vsel %vm1301_vm14, 1.0, %v8468_v8  ;;  %v4561_v57 = vpack.i.bf16 %v4077_v50, %v4076_v52  ;;  %vm1303_vm14 = vcmp.eq.s32.totalorder %v5464_v30, 0  ;;  %v5003_v52 = vld [vmem:[#allocation2 + $0x148] sm:$0xff] }
  0xd7   : > { %4557 = vperm.xlu2 %4520, %v4556_v7   ;;  %4552 = vperm.xlu1 %4519, %v4551_v3   ;;  %v4571_v1 = vpack.i.bf16 %v4081_v15, %v4080_v19  ;;  %v5002_v19 = vld [vmem:[#allocation2 + $0x160] sm:$0xff]  ;;  %v4082_v30 = vsel %vm1302_vm6, 1.0, %v8468_v8  ;;  %v4083_v15 = vsel %vm1303_vm14, 1.0, %v8468_v8  ;;  %vm1308_vm6 = vcmp.eq.s32.totalorder %v8685_v42, 0 }
  0xd8   : > { %4408 = vmatpush.lsf.msk.msk.msrb.mxu3 %vm8463_vm4, %v8662_v55  ;;  %vm1299_vm4 = vcmp.eq.s32.totalorder %v5452_v24, 0  ;;  %4547 = vperm.xlu0 %4518, %v4546_v62   ;;  %v5990_v4 = vpop.permute.xlu2 %432  ;;  %v722_v24 = vld [vmem:[%s5399_s20 + $0xa8] sm:$0xff]  ;;  %vm1309_vm14 = vcmp.eq.s32.totalorder %v8686_v43, 0 }
  0xd9   : > { %v5988_v53 = vpop.f32.mrf.mxu2  ;;  %8678 = vst [vmem:[#allocation79_spill] sm:$0xff] %v5990_v4  ;;  %v6004_v7 = vpop.permute.xlu1 %402  ;;  %v4079_v13 = vsel %vm1299_vm4, 1.0, %v8468_v8  ;;  %vm1306_vm4 = vcmp.eq.s32.totalorder %v5479_v40, 0 }
  0xda   : > { %4409 = vmatpush.lsf.msk.msk.msrb.mxu3 %vm8462_vm12, %v8662_v55  ;;  %vm1298_vm12 = vcmp.eq.s32.totalorder %v5455_v25, 0  ;;  %8677 = vst [vmem:[#allocation78_spill] sm:$0xff] %v5988_v53  ;;  %v6008_v62 = vpop.permute.xlu0 %399  ;;  %v8723_v53 = vld [vmem:[#allocation37_spill] sm:$0xff] }
  0xdb   : > { %8679 = vst [vmem:[#allocation80_spill] sm:$0xff] %v6004_v7  ;;  %v4078_v33 = vsel %vm1298_vm12, 1.0, %v8468_v8  ;;  %1255 = vmatmul.f32.vlgmr.msra.gmra.mxu3 %v5615_v61  ;;  %v6023_v12 = vpop.f32.mrf.mxu0  ;;  %vm1307_vm12 = vcmp.eq.s32.totalorder %v5500_v54, 0  ;;  %v4086_v54 = vsel %vm1306_vm4, 1.0, %v8468_v8  ;;  %vm1312_vm4 = vcmp.eq.s32.totalorder %v5509_v59, 0  ;;  %v5009_v7 = vld [vmem:[#allocation2 + $0xb8] sm:$0xff] }
  0xdc   : > { %4410 = vmatpush.lsf.msk.msk.msrb.mxu3 %vm8490_vm5, %v8662_v55  ;;  %8680 = vst [vmem:[#allocation81_spill] sm:$0xff] %v6008_v62  ;;  %v6025_v3 = vpop.f32.mrf.mxu1  ;;  %v4566_v25 = vpack.i.bf16 %v4079_v13, %v4078_v33  ;;  %v4087_v31 = vsel %vm1307_vm12, 1.0, %v8468_v8  ;;  %v4084_v33 = vsel %vm1304_vm15, 1.0, %v8468_v8  ;;  %v4085_v13 = vsel %vm1305_vm3, 1.0, %v8468_v8  ;;  %v723_v8 = vld [vmem:[%s5399_s20 + $0xb0] sm:$0xff]  ;;  %v8700_v62 = vld [vmem:[#allocation17_spill] sm:$0xff] }
  0xdd   : > { %938 = vmatmul.f32.gmra.mxu0 %v786_v22  ;;  %1147 = vmatmul.f32.gmra.mxu1 %v786_v22  ;;  %vm1313_vm12 = vcmp.eq.s32.totalorder %v5530_v16, 0  ;;  %v8691_v16 = vmov 0.0  }
  0xde   : > { %4411 = vmatpush.lsf.msk.msk.msrb.mxu3 %vm8465_vm13, %v8662_v55  ;;  %vm8477_vm13 = vcmp.eq.s32.totalorder %v5585_v0, %v5386_v51  ;;  %2652 = vmatmul.f32.gmra.mxu2 %v786_v22  ;;  %v8687_v0 = vld [vmem:[#allocation11_spill] sm:$0xff] }
  0xdf   : > { %4572 = vperm.xlu2 %4520, %v4571_v1   ;;  %4567 = vperm.xlu1 %4519, %v4566_v25   ;;  %vm1310_vm15 = vcmp.eq.s32.totalorder %v8687_v0, 0  ;;  %v8696_v0 = vld [vmem:[#allocation15_spill] sm:$0xff] }
  0xe0   : > { %4412 = vmatpush.lsf.msk.msk.msrb.mxu3 %vm8477_vm13, %v8662_v55  ;;  %4562 = vperm.xlu0 %4518, %v4561_v57   ;;  %v6036_v40 = vpop.permute.xlu2 %441  ;;  %v787_v57 = vsel %vm765_vm0, 1.0, %v722_v24  ;;  %v4581_v24 = vpack.i.bf16 %v4085_v13, %v4084_v33  ;;  %v5007_v33 = vld [vmem:[#allocation2 + $0xe8] sm:$0xff] }
  0xe1   : > { %8682 = vst [vmem:[#allocation83_spill] sm:$0xff] %v6036_v40  ;;  %v6042_v50 = vpop.permute.xlu1 %411 }
  0xe2   : > { %4341 = vllmr.1.mxu3  ;;  %8683 = vst [vmem:[#allocation84_spill] sm:$0xff] %v6042_v50  ;;  %v6044_v22 = vpop.permute.xlu0 %408  ;;  %v4576_v50 = vpack.i.bf16 %v4083_v15, %v4082_v30  ;;  %v4092_v30 = vsel %vm1312_vm4, 1.0, %v8691_v16  ;;  %v4093_v15 = vsel %vm1313_vm12, 1.0, %v8691_v16  ;;  %vm1318_vm4 = vcmp.eq.s32.totalorder %v8696_v0, 0 }
  0xe3   : > { %4291 = vmatpush.msra.mxu3 %v5001_v63  ;;  %v6034_v63 = vpop.f32.mrf.mxu2  ;;  %8684 = vst [vmem:[#allocation85_spill] sm:$0xff] %v6044_v22  ;;  %v6055_v1 = vpop.f32.mrf.mxu0  ;;  %v5005_v22 = vld [vmem:[#allocation2 + $0x118] sm:$0xff]  ;;  %v4601_v9 = vpack.i.bf16 %v4093_v15, %v4092_v30  ;;  %v5010_v30 = vld [vmem:[#allocation2 + $0xa0] sm:$0xff] }
  0xe4   : > { %8681 = vst [vmem:[#allocation82_spill] sm:$0xff] %v6034_v63  ;;  %1258 = vmatmul.f32.gmra.mxu3 %v5647_v27  ;;  %v6057_v25 = vpop.f32.mrf.mxu1  ;;  %v8722_v63 = vld [vmem:[#allocation29_spill] sm:$0xff] }
  0xe5   : > { %4292 = vmatpush.msra.mxu3 %v5002_v19  ;;  %v5004_v19 = vld [vmem:[#allocation2 + $0x130] sm:$0xff]  ;;  %941 = vmatmul.f32.gmra.mxu0 %v787_v57 }
  0xe6   : > { %1150 = vmatmul.f32.gmra.mxu1 %v787_v57  ;;  %2655 = vmatmul.f32.gmra.mxu2 %v787_v57  ;;  %v4089_v57 = vsel %vm1309_vm14, 1.0, %v8691_v16  ;;  %vm1315_vm14 = vcmp.eq.s32.totalorder %v8699_v2, 0 }
  0xe7   : > { %4293 = vmatpush.msra.mxu3 %v5003_v52  ;;  %v4586_v52 = vpack.i.bf16 %v4087_v31, %v4086_v54  ;;  %v5006_v54 = vld [vmem:[#allocation2 + $0x100] sm:$0xff]  ;;  %4582 = vperm.xlu1 %4519, %v4581_v24  }
  0xe8   : > { %4577 = vperm.xlu0 %4518, %v4576_v50   ;;  %v6068_v59 = vpop.permute.xlu2 %450  ;;  %v788_v50 = vsel %vm765_vm0, 1.0, %v723_v8 }
  0xe9   : > { %4294 = vmatpush.msra.mxu3 %v5004_v19  ;;  %v8688_v19 = vld [vmem:[#allocation10_spill] sm:$0xff]  ;;  %4587 = vperm.xlu2 %4520, %v4586_v52   ;;  %8690 = vst [vmem:[#allocation8_spill] sm:$0xff] %v6068_v59  ;;  %v6074_v13 = vpop.permute.xlu1 %420  ;;  %v4090_v52 = vsel %vm1310_vm15, 1.0, %v8691_v16  ;;  %vm1316_vm15 = vcmp.eq.s32.totalorder %v8700_v62, 0  ;;  %vm8495_vm5 = vcmp.eq.s32.totalorder %v6068_v59, %v5386_v51 }
  0xea   : > { %vm1311_vm3 = vcmp.eq.s32.totalorder %v8688_v19, 0  ;;  %8692 = vst [vmem:[#allocation11_spill] sm:$0xff] %v6074_v13  ;;  %v6076_v42 = vpop.permute.xlu0 %417  ;;  %v8697_v19 = vld [vmem:[#allocation21_spill] sm:$0xff]  ;;  %v5012_v62 = vld [vmem:[#allocation2 + $0x70] sm:$0xff] }
  0xeb   : > { %4295 = vmatpush.msra.mxu3 %v5005_v22  ;;  %v6066_v31 = vpop.f32.mrf.mxu2  ;;  %v4088_v22 = vsel %vm1308_vm6, 1.0, %v8691_v16  ;;  %8693 = vst [vmem:[#allocation10_spill] sm:$0xff] %v6076_v42  ;;  %v4091_v24 = vsel %vm1311_vm3, 1.0, %v8691_v16  ;;  %v6087_v43 = vpop.f32.mrf.mxu0  ;;  %vm1319_vm12 = vcmp.eq.s32.totalorder %v8697_v19, 0  ;;  %vm1314_vm6 = vcmp.eq.s32.totalorder %v8698_v39, 0 }
  0xec   : > { %8689 = vst [vmem:[#allocation9_spill] sm:$0xff] %v6066_v31  ;;  %1261 = vmatmul.f32.gmra.mxu3 %v5675_v17  ;;  %v4591_v18 = vpack.i.bf16 %v4089_v57, %v4088_v22  ;;  %v4596_v8 = vpack.i.bf16 %v4091_v24, %v4090_v52  ;;  %v4098_v22 = vsel %vm1318_vm4, 1.0, %v8691_v16  ;;  %v4099_v39 = vsel %vm1319_vm12, 1.0, %v8691_v16  ;;  %v726_v31 = vld [vmem:[%s5399_s20 + $0xc8] sm:$0xff] }
  0xed   : > { %4296 = vmatpush.msra.mxu3 %v5006_v54  ;;  %8694 = vst [vmem:[#allocation86_spill] sm:$0xff] %v6087_v43  ;;  %v6089_v54 = vpop.f32.mrf.mxu1  ;;  %944 = vmatmul.f32.gmra.mxu0 %v788_v50  ;;  %v4094_v2 = vsel %vm1314_vm6, 1.0, %v8691_v16  ;;  %v4095_v57 = vsel %vm1315_vm14, 1.0, %v8691_v16  ;;  %v789_v52 = vsel %vm765_vm0, 1.0, %v724_v28  ;;  %v4096_v24 = vsel %vm1316_vm15, 1.0, %v8691_v16 }
  0xee   : > { %8695 = vst [vmem:[#allocation87_spill] sm:$0xff] %v6089_v54  ;;  %1153 = vmatmul.f32.gmra.mxu1 %v788_v50  ;;  %2658 = vmatmul.f32.gmra.mxu2 %v788_v50  ;;  %v5011_v50 = vld [vmem:[#allocation2 + $0x88] sm:$0xff]  ;;  %v4616_v28 = vpack.i.bf16 %v4099_v39, %v4098_v22  ;;  %vm1325_vm12 = vcmp.eq.s32.totalorder %v8709_v10, 0  ;;  %vm1320_vm6 = vcmp.eq.s32.totalorder %v8710_v60, 0  ;;  %vm1321_vm14 = vcmp.eq.s32.totalorder %v8711_v58, 0  ;;  %v8713_v22 = vld [vmem:[#allocation24_spill] sm:$0xff] }
  0xef   : > { %4297 = vmatpush.msra.mxu3 %v5007_v33  ;;  %v5008_v33 = vld [vmem:[#allocation2 + $0xd0] sm:$0xff]  ;;  %4597 = vperm.xlu1 %4519, %v4596_v8   ;;  %vm1322_vm15 = vcmp.eq.s32.totalorder %v8712_v21, 0  ;;  %v4105_v60 = vsel %vm1325_vm12, 1.0, %v8691_v16  ;;  %v4100_v58 = vsel %vm1320_vm6, 1.0, %v8691_v16  ;;  %v8719_v21 = vld [vmem:[#allocation35_spill] sm:$0xff]  ;;  %vm1326_vm6 = vcmp.eq.s32.totalorder %v8721_v34, 0 }
  0xf0   : > { %4592 = vperm.xlu0 %4518, %v4591_v18   ;;  %v6100_v15 = vpop.permute.xlu2 %459  ;;  %v4106_v34 = vsel %vm1326_vm6, 1.0, %v8691_v16 }
  0xf1   : > { %4298 = vmatpush.msra.mxu3 %v5008_v33  ;;  %v8701_v33 = vld [vmem:[#allocation16_spill] sm:$0xff]  ;;  %4602 = vperm.xlu2 %4520, %v4601_v9   ;;  %8703 = vst [vmem:[#allocation21_spill] sm:$0xff] %v6100_v15  ;;  %vm8489_vm13 = vcmp.eq.s32.totalorder %v6100_v15, %v5386_v51  ;;  %v6108_v9 = vpop.permute.xlu1 %429 }
  0xf2   : > { %vm1317_vm3 = vcmp.eq.s32.totalorder %v8701_v33, 0  ;;  %8704 = vst [vmem:[#allocation13_spill] sm:$0xff] %v6108_v9  ;;  %v6110_v18 = vpop.permute.xlu0 %426  ;;  %v8708_v33 = vld [vmem:[#allocation23_spill] sm:$0xff]  ;;  %v725_v15 = vld [vmem:[%s5399_s20 + $0xc0] sm:$0xff] }
  0xf3   : > { %4299 = vmatpush.msra.mxu3 %v5009_v7  ;;  %v6098_v7 = vpop.f32.mrf.mxu2  ;;  %8705 = vst [vmem:[#allocation12_spill] sm:$0xff] %v6110_v18  ;;  %v4097_v8 = vsel %vm1317_vm3, 1.0, %v8691_v16  ;;  %v6121_v0 = vpop.f32.mrf.mxu0  ;;  %vm1324_vm4 = vcmp.eq.s32.totalorder %v8708_v33, 0  ;;  %vm1323_vm3 = vcmp.eq.s32.totalorder %v8713_v22, 0  ;;  %v5015_v33 = vld [vmem:[#allocation2 + $0x28] sm:$0xff]  ;;  %v8720_v22 = vld [vmem:[#allocation43_spill] sm:$0xff] }
  0xf4   : > { %8702 = vst [vmem:[#allocation15_spill] sm:$0xff] %v6098_v7  ;;  %1264 = vmatmul.f32.gmra.mxu3 %v5705_v29  ;;  %v4104_v10 = vsel %vm1324_vm4, 1.0, %v8691_v16  ;;  %vm1330_vm4 = vcmp.eq.s32.totalorder %v8719_v21, 0  ;;  %vm1331_vm12 = vcmp.eq.s32.totalorder %v8720_v22, 0  ;;  %v8733_v7 = vld [vmem:[#allocation49_spill] sm:$0xff] }
  0xf5   : > { %4300 = vmatpush.msra.mxu3 %v5010_v30  ;;  %8706 = vst [vmem:[#allocation17_spill] sm:$0xff] %v6121_v0  ;;  %v6123_v19 = vpop.f32.mrf.mxu1  ;;  %v4606_v30 = vpack.i.bf16 %v4095_v57, %v4094_v2  ;;  %947 = vmatmul.f32.gmra.mxu0 %v789_v52  ;;  %v5014_v57 = vld [vmem:[#allocation2 + $0x40] sm:$0xff] }
  0xf6   : > { %8707 = vst [vmem:[#allocation16_spill] sm:$0xff] %v6123_v19  ;;  %1156 = vmatmul.f32.gmra.mxu1 %v789_v52  ;;  %2661 = vmatmul.f32.gmra.mxu2 %v789_v52 }
  0xf7   : > { %4301 = vmatpush.msra.mxu3 %v5011_v50  ;;  %v4611_v50 = vpack.i.bf16 %v4097_v8, %v4096_v24  ;;  %v790_v8 = vsel %vm765_vm0, 1.0, %v725_v15 }
  0xf8   : > { %4607 = vperm.xlu0 %4518, %v4606_v30   ;;  %v6138_v2 = vpop.permute.xlu2 %468  ;;  %v4103_v30 = vsel %vm1323_vm3, 1.0, %v8691_v16 }
  0xf9   : > { %4413 = vmatpush.lsf.msk.msk.msrb.mxu3 %vm8489_vm13, %v8662_v55  ;;  %4617 = vperm.xlu2 %4520, %v4616_v28   ;;  %8715 = vst [vmem:[#allocation31_spill] sm:$0xff] %v6138_v2  ;;  %v6144_v52 = vpop.permute.xlu1 %438  ;;  %v4102_v28 = vsel %vm1322_vm15, 1.0, %v8691_v16  ;;  %vm1328_vm15 = vcmp.eq.s32.totalorder %v8723_v53, 0  ;;  %vm1341_vm13 = vcmp.eq.s32.totalorder %v5759_v26, 0 }
  0xfa   : > { %4612 = vperm.xlu1 %4519, %v4611_v50   ;;  %8716 = vst [vmem:[#allocation20_spill] sm:$0xff] %v6144_v52  ;;  %v6146_v24 = vpop.permute.xlu0 %435  ;;  %v4626_v15 = vpack.i.bf16 %v4103_v30, %v4102_v28 }
  0xfb   : > { %4302 = vmatpush.msra.mxu3 %v5012_v62  ;;  %v6136_v39 = vpop.f32.mrf.mxu2  ;;  %8717 = vst [vmem:[#allocation19_spill] sm:$0xff] %v6146_v24  ;;  %v6157_v62 = vpop.f32.mrf.mxu0 }
  0xfc   : > { %8714 = vst [vmem:[#allocation23_spill] sm:$0xff] %v6136_v39  ;;  %1267 = vmatmul.f32.gmra.mxu3 %v5735_v41  ;;  %v8734_v39 = vld [vmem:[#allocation48_spill] sm:$0xff] }
  0xfd   : > { %4303 = vmatpush.msra.mxu3 %v5013_v35  ;;  %v4101_v35 = vsel %vm1321_vm14, 1.0, %v8691_v16  ;;  %v6159_v50 = vpop.f32.mrf.mxu1  ;;  %950 = vmatmul.f32.gmra.mxu0 %v790_v8  ;;  %vm1327_vm14 = vcmp.eq.s32.totalorder %v8722_v63, 0 }
  0xfe   : > { %8718 = vst [vmem:[#allocation25_spill] sm:$0xff] %v6159_v50  ;;  %v4621_v2 = vpack.i.bf16 %v4101_v35, %v4100_v58  ;;  %1159 = vmatmul.f32.gmra.mxu1 %v790_v8  ;;  %2664 = vmatmul.f32.gmra.mxu2 %v790_v8  ;;  %v4111_v58 = vsel %vm1331_vm12, 1.0, %v8691_v16  ;;  %v4107_v63 = vsel %vm1327_vm14, 1.0, %v8691_v16  ;;  %v4108_v8 = vsel %vm1328_vm15, 1.0, %v8691_v16 }
  0xff   : > { %4304 = vmatpush.msra.mxu3 %v5014_v57  ;;  %v4631_v57 = vpack.i.bf16 %v4105_v60, %v4104_v10  ;;  %v4110_v60 = vsel %vm1330_vm4, 1.0, %v8691_v16  ;;  %v4636_v21 = vpack.i.bf16 %v4107_v63, %v4106_v34  ;;  %vm1337_vm12 = vcmp.eq.s32.totalorder %v5720_v37, 0 }
 0x100   : > { %4622 = vperm.xlu0 %4518, %v4621_v2   ;;  %v791_v2 = vsel %vm765_vm0, 1.0, %v726_v31  ;;  %v8731_v31 = vld [vmem:[#allocation42_spill] sm:$0xff]  ;;  %vm1334_vm15 = vcmp.eq.s32.totalorder %v8733_v7, 0  ;;  %v4117_v37 = vsel %vm1337_vm12, 1.0, %v8691_v16 }
 0x101   : > { %4305 = vmatpush.msra.mxu3 %v5015_v33  ;;  %v8724_v33 = vld [vmem:[#allocation36_spill] sm:$0xff]  ;;  %4632 = vperm.xlu2 %4520, %v4631_v57   ;;  %v6176_v35 = vpop.permute.xlu1 %447  ;;  %vm1332_vm6 = vcmp.eq.s32.totalorder %v8731_v31, 0  ;;  %v8739_v31 = vld [vmem:[#allocation54_spill] sm:$0xff] }
 0x102   : > { %vm1329_vm3 = vcmp.eq.s32.totalorder %v8724_v33, 0  ;;  %4627 = vperm.xlu1 %4519, %v4626_v15   ;;  %8727 = vst [vmem:[#allocation43_spill] sm:$0xff] %v6176_v35  ;;  %v6178_v53 = vpop.permute.xlu0 %444  ;;  %v4646_v15 = vpack.i.bf16 %v4111_v58, %v4110_v60  ;;  %v8730_v33 = vld [vmem:[#allocation47_spill] sm:$0xff]  ;;  %v4112_v63 = vsel %vm1332_vm6, 1.0, %v8691_v16  ;;  %vm1342_vm6 = vcmp.eq.s32.totalorder %v5756_v44, 0 }
 0x103   : > { %4306 = vmatpush.msra.mxu3 %v5016_v56  ;;  %v6168_v10 = vpop.f32.mrf.mxu2  ;;  %v6170_v56 = vpop.permute.xlu2 %477  ;;  %8728 = vst [vmem:[#allocation30_spill] sm:$0xff] %v6178_v53  ;;  %v4109_v28 = vsel %vm1329_vm3, 1.0, %v8691_v16  ;;  %vm1336_vm4 = vcmp.eq.s32.totalorder %v8730_v33, 0  ;;  %vm1335_vm3 = vcmp.eq.s32.totalorder %v8734_v39, 0 }
 0x104   : > { %8725 = vst [vmem:[#allocation24_spill] sm:$0xff] %v6168_v10  ;;  %1270 = vmatmul.f32.gmra.mxu3 %v5798_v38  ;;  %v6185_v30 = vpop.f32.mrf.mxu0  ;;  %v4641_v22 = vpack.i.bf16 %v4109_v28, %v4108_v8  ;;  %v727_v10 = vld [vmem:[%s5399_s20 + $0xd0] sm:$0xff]  ;;  %v4116_v34 = vsel %vm1336_vm4, 1.0, %v8691_v16  ;;  %v4114_v8 = vsel %vm1334_vm15, 1.0, %v8691_v16  ;;  %v4115_v28 = vsel %vm1335_vm3, 1.0, %v8691_v16 }
 0x105   : > { %8726 = vst [vmem:[#allocation35_spill] sm:$0xff] %v6170_v56  ;;  %v6187_v57 = vpop.f32.mrf.mxu1  ;;  %953 = vmatmul.f32.gmra.mxu0 %v791_v2  ;;  %v8732_v56 = vld [vmem:[#allocation41_spill] sm:$0xff]  ;;  %v792_v39 = vsel %vm765_vm0, 1.0, %v727_v10  ;;  %v4661_v10 = vpack.i.bf16 %v4117_v37, %v4116_v34  ;;  %v4656_v33 = vpack.i.bf16 %v4115_v28, %v4114_v8  ;;  %vm1338_vm15 = vcmp.eq.s32.totalorder %v8739_v31, 0  ;;  %v728_v34 = vld [vmem:[%s5399_s20 + $0xd8] sm:$0xff] }
 0x106   : > { %8729 = vst [vmem:[#allocation29_spill] sm:$0xff] %v6187_v57  ;;  %1162 = vmatmul.f32.gmra.mxu1 %v791_v2  ;;  %vm1333_vm14 = vcmp.eq.s32.totalorder %v8732_v56, 0  ;;  %2667 = vmatmul.f32.gmra.mxu2 %v791_v2  ;;  %v4122_v37 = vsel %vm1342_vm6, 1.0, %v8691_v16  ;;  %v793_v28 = vsel %vm765_vm0, 1.0, %v728_v34 }
 0x107   : > { %v4113_v56 = vsel %vm1333_vm14, 1.0, %v8691_v16  ;;  %vm1343_vm14 = vcmp.eq.s32.totalorder %v5829_v6, 0 }
 0x108   : > { %4637 = vperm.xlu0 %4518, %v4636_v21  }
 0x109   : > { %4647 = vperm.xlu2 %4520, %v4646_v15   ;;  %v6204_v2 = vpop.permute.xlu1 %456 }
 0x10a   : > { %4642 = vperm.xlu1 %4519, %v4641_v22   ;;  %8737 = vst [vmem:[#allocation47_spill] sm:$0xff] %v6204_v2  ;;  %v6206_v7 = vpop.permute.xlu0 %453  ;;  %vm8488_vm4 = vcmp.eq.s32.totalorder %v6204_v2, %v5386_v51  ;;  %v4651_v22 = vpack.i.bf16 %v4113_v56, %v4112_v63  ;;  %v8740_v2 = vld [vmem:[#allocation53_spill] sm:$0xff]  ;;  %v4123_v63 = vsel %vm1343_vm14, 1.0, %v8691_v16  ;;  %v4118_v56 = vsel %vm1338_vm15, 1.0, %v8691_v16 }
 0x10b   : > { %v6196_v60 = vpop.f32.mrf.mxu2  ;;  %v6198_v58 = vpop.permute.xlu2 %486  ;;  %8738 = vst [vmem:[#allocation42_spill] sm:$0xff] %v6206_v7  ;;  %4414 = vmatpush.lsf.msk.msk.msrb.mxu3 %vm8488_vm4, %v8662_v55  ;;  %vm8491_vm12 = vcmp.eq.s32.totalorder %v6206_v7, %v5386_v51  ;;  %vm1339_vm3 = vcmp.eq.s32.totalorder %v8740_v2, 0  ;;  %vm1340_vm4 = vcmp.eq.s32.totalorder %v5762_v23, 0  ;;  %v4676_v23 = vpack.i.bf16 %v4123_v63, %v4122_v37  ;;  %v6286_v37 = vld [vmem:[%s5307_s12 + $0x28] sm:$0xff]  ;;  %v6290_v63 = vld [vmem:[%s5307_s12] sm:$0xff] }
 0x10c   : > { %8735 = vst [vmem:[#allocation37_spill] sm:$0xff] %v6196_v60  ;;  %1273 = vmatmul.f32.gmra.mxu3 %v5873_v48  ;;  %v6215_v15 = vpop.f32.mrf.mxu0  ;;  %v4119_v2 = vsel %vm1339_vm3, 1.0, %v8691_v16  ;;  %vm1925_vm14 = vcmp.eq.s32.totalorder %v6286_v37, 1  ;;  %vm1920_vm15 = vcmp.eq.s32.totalorder %v6290_v63, 1 }
 0x10d   : > { %8736 = vst [vmem:[#allocation36_spill] sm:$0xff] %v6198_v58  ;;  %v6217_v21 = vpop.f32.mrf.mxu1  ;;  %956 = vmatmul.f32.gmra.mxu0 %v792_v39  ;;  %4415 = vmatpush.lsf.msk.msk.msrb.mxu3 %vm8491_vm12, %v8662_v55  ;;  %vm8494_vm12 = vcmp.eq.s32.totalorder %v6176_v35, %v5386_v51  ;;  %v4666_v26 = vpack.i.bf16 %v4119_v2, %v4118_v56  ;;  %v6282_v35 = vld [vmem:[%s5307_s12 + $0x20] sm:$0xff]  ;;  %v6294_v56 = vld [vmem:[%s5307_s12 + $0x8] sm:$0xff]  ;;  %v4129_v59 = vsel %vm1925_vm14, 1.0, %v8691_v16 }
 0x10e   : > { %1165 = vmatmul.f32.gmra.mxu1 %v792_v39  ;;  %2670 = vmatmul.f32.gmra.mxu2 %v792_v39  ;;  %vm1924_vm6 = vcmp.eq.s32.totalorder %v6282_v35, 1  ;;  %vm1921_vm3 = vcmp.eq.s32.totalorder %v6294_v56, 1  ;;  %v729_v2 = vld [vmem:[%s5399_s20 + $0xe0] sm:$0xff] }
 0x10f   : > { %4416 = vmatpush.lsf.msk.msk.msrb.mxu3 %vm8495_vm5, %v8662_v55  ;;  %vm8499_vm5 = vcmp.eq.s32.totalorder %v6144_v52, %v5386_v51  ;;  %v794_v7 = vsel %vm765_vm0, 1.0, %v729_v2 }
 0x110   : > { %4652 = vperm.xlu0 %4518, %v4651_v22   ;;  %v4121_v22 = vsel %vm1341_vm13, 1.0, %v8691_v16  ;;  %vm8507_vm13 = vcmp.eq.s32.totalorder %v6036_v40, %v5386_v51 }
 0x111   : > { %4662 = vperm.xlu2 %4520, %v4661_v10   ;;  %v6252_v39 = vpop.permute.xlu1 %465  ;;  %v4120_v10 = vsel %vm1340_vm4, 1.0, %v8691_v16  ;;  %4417 = vmatpush.lsf.msk.msk.msrb.mxu3 %vm8494_vm12, %v8662_v55  ;;  %vm8493_vm4 = vcmp.eq.s32.totalorder %v6178_v53, %v5386_v51  ;;  %v4128_v53 = vsel %vm1924_vm6, 1.0, %v8691_v16 }
 0x112   : > { %4657 = vperm.xlu1 %4519, %v4656_v33   ;;  %8743 = vst [vmem:[#allocation48_spill] sm:$0xff] %v6252_v39  ;;  %v6254_v8 = vpop.permute.xlu0 %462  ;;  %v4671_v34 = vpack.i.bf16 %v4121_v22, %v4120_v10  ;;  %v6303_v10 = vld [vmem:[%s5307_s12 + $0x10] sm:$0xff]  ;;  %v6307_v22 = vld [vmem:[%s5307_s12 + $0x18] sm:$0xff] }
 0x113   : > { %v6242_v44 = vpop.f32.mrf.mxu2  ;;  %v6244_v6 = vpop.permute.xlu2 %495  ;;  %8744 = vst [vmem:[#allocation54_spill] sm:$0xff] %v6254_v8  ;;  %4418 = vmatpush.lsf.msk.msk.msrb.mxu3 %vm8493_vm4, %v8662_v55  ;;  %vm1922_vm4 = vcmp.eq.s32.totalorder %v6303_v10, 1  ;;  %vm1923_vm12 = vcmp.eq.s32.totalorder %v6307_v22, 1 }
 0x114   : > { %8741 = vst [vmem:[#allocation41_spill] sm:$0xff] %v6242_v44  ;;  %1276 = vmatmul.f32.gmra.mxu3 %v5940_v36  ;;  %v6269_v33 = vpop.f32.mrf.mxu0 }
 0x115   : > { %8742 = vst [vmem:[#allocation49_spill] sm:$0xff] %v6244_v6  ;;  %v6271_v31 = vpop.f32.mrf.mxu1  ;;  %959 = vmatmul.f32.gmra.mxu0 %v793_v28  ;;  %4419 = vmatpush.lsf.msk.msk.msrb.mxu3 %vm8507_vm13, %v8662_v55  ;;  %v4127_v6 = vsel %vm1923_vm12, 1.0, %v8691_v16  ;;  %vm8517_vm12 = vcmp.eq.s32.totalorder %v6108_v9, %v5386_v51  ;;  %vm8510_vm13 = vcmp.eq.s32.totalorder %v6110_v18, %v5386_v51 }
 0x116   : > { %1168 = vmatmul.f32.gmra.mxu1 %v793_v28  ;;  %2673 = vmatmul.f32.gmra.mxu2 %v793_v28 }
 0x117   : > { %4420 = vmatpush.lsf.msk.msk.msrb.mxu3 %vm8499_vm5, %v8662_v55  ;;  %vm8506_vm5 = vcmp.eq.s32.totalorder %v6146_v24, %v5386_v51  ;;  %v6364_v24 = vld [vmem:[%s5307_s12 + $0x50] sm:$0xff] }
 0x118   : > { %4667 = vperm.xlu0 %4518, %v4666_v26   ;;  %v4125_v26 = vsel %vm1921_vm3, 1.0, %v8691_v16  ;;  %vm1930_vm6 = vcmp.eq.s32.totalorder %v6364_v24, 1 }
 0x119   : > { %4677 = vperm.xlu2 %4520, %v4676_v23   ;;  %v4124_v23 = vsel %vm1920_vm15, 1.0, %v8691_v16  ;;  %4421 = vmatpush.lsf.msk.msk.msrb.mxu3 %vm8506_vm5, %v8662_v55  ;;  %v4134_v9 = vsel %vm1930_vm6, 1.0, %v8691_v16 }
 0x11a   : > { %4672 = vperm.xlu1 %4519, %v4671_v34   ;;  %v6334_v34 = vpop.permute.xlu1 %474  ;;  %v6336_v52 = vpop.permute.xlu0 %471 }
 0x11b   : > { %v6316_v28 = vpop.f32.mrf.mxu2  ;;  %v6318_v40 = vpop.permute.xlu2 %504  ;;  %8747 = vst [vmem:[#allocation89_spill] sm:$0xff] %v6334_v34  ;;  %v4691_v34 = vpack.i.bf16 %v4129_v59, %v4128_v53  ;;  %v6368_v59 = vld [vmem:[%s5307_s12 + $0x58] sm:$0xff]  ;;  %v6372_v53 = vld [vmem:[%s5307_s12 + $0x30] sm:$0xff] }
 0x11c   : > { %8745 = vst [vmem:[#allocation53_spill] sm:$0xff] %v6316_v28  ;;  %2760 = vmatmul.f32.vlgmr.msra.gmra.mxu3 %v5615_v61  ;;  %v6351_v58 = vpop.f32.mrf.mxu0  ;;  %vm1931_vm14 = vcmp.eq.s32.totalorder %v6368_v59, 1  ;;  %vm1926_vm15 = vcmp.eq.s32.totalorder %v6372_v53, 1 }
 0x11d   : > { %8746 = vst [vmem:[#allocation88_spill] sm:$0xff] %v6318_v40  ;;  %v4126_v40 = vsel %vm1922_vm4, 1.0, %v8691_v16  ;;  %v6353_v2 = vpop.f32.mrf.mxu1  ;;  %vm8505_vm4 = vcmp.eq.s32.totalorder %v5990_v4, %v5386_v51  ;;  %962 = vmatmul.f32.gmra.mxu0 %v794_v7  ;;  %v4135_v4 = vsel %vm1931_vm14, 1.0, %v8691_v16 }
 0x11e   : > { %8748 = vst [vmem:[#allocation90_spill] sm:$0xff] %v6336_v52  ;;  %v4681_v52 = vpack.i.bf16 %v4125_v26, %v4124_v23  ;;  %4422 = vmatpush.lsf.msk.msk.msrb.mxu3 %vm8505_vm4, %v8662_v55  ;;  %v4686_v61 = vpack.i.bf16 %v4127_v6, %v4126_v40  ;;  %1171 = vmatmul.f32.gmra.mxu1 %v794_v7  ;;  %v6376_v23 = vld [vmem:[%s5307_s12 + $0x38] sm:$0xff]  ;;  %v730_v40 = vld [vmem:[%s5399_s20 + $0xe8] sm:$0xff]  ;;  %v6385_v6 = vld [vmem:[%s5307_s12 + $0x40] sm:$0xff] }
 0x11f   : > { %8749 = vst [vmem:[#allocation91_spill] sm:$0xff] %v6353_v2  ;;  %vm1927_vm3 = vcmp.eq.s32.totalorder %v6376_v23, 1  ;;  %2676 = vmatmul.f32.gmra.mxu2 %v794_v7  ;;  %vm1928_vm4 = vcmp.eq.s32.totalorder %v6385_v6, 1  ;;  %v6389_v26 = vld [vmem:[%s5307_s12 + $0x48] sm:$0xff]  ;;  %v795_v44 = vsel %vm765_vm0, 1.0, %v730_v40 }
 0x120   : > { %4423 = vmatpush.lsf.msk.msk.msrb.mxu3 %vm8517_vm12, %v8662_v55  ;;  %vm1929_vm5 = vcmp.eq.s32.totalorder %v6389_v26, 1  ;;  %4682 = vperm.xlu0 %4518, %v4681_v52   ;;  %v4130_v52 = vsel %vm1926_vm15, 1.0, %v8691_v16  ;;  %v4132_v60 = vsel %vm1928_vm4, 1.0, %v8691_v16  ;;  %vm8515_vm4 = vcmp.eq.s32.totalorder %v6074_v13, %v5386_v51 }
 0x121   : > { %4692 = vperm.xlu2 %4520, %v4691_v34   ;;  %v4131_v34 = vsel %vm1927_vm3, 1.0, %v8691_v16  ;;  %v4133_v39 = vsel %vm1929_vm5, 1.0, %v8691_v16  ;;  %vm542_vm5 = vcmp.eq.s32.totalorder %v6076_v42, %v5386_v51  ;;  %vm541_vm12 = vcmp.eq.s32.totalorder %v5860_v14, %v5386_v51 }
 0x122   : > { %4424 = vmatpush.lsf.msk.msk.msrb.mxu3 %vm8510_vm13, %v8662_v55  ;;  %4687 = vperm.xlu1 %4519, %v4686_v61   ;;  %vm8516_vm13 = vcmp.eq.s32.totalorder %v5927_v20, %v5386_v51  ;;  %v6414_v61 = vpop.permute.xlu1 %483  ;;  %v4696_v28 = vpack.i.bf16 %v4131_v34, %v4130_v52  ;;  %v6446_v20 = vld [vmem:[%s5307_s12 + $0x80] sm:$0xff]  ;;  %v6458_v52 = vld [vmem:[%s5307_s12 + $0x68] sm:$0xff]  ;;  %v6471_v34 = vld [vmem:[%s5307_s12 + $0x78] sm:$0xff] }
 0x123   : > { %v6398_v7 = vpop.f32.mrf.mxu2  ;;  %8751 = vst [vmem:[#allocation93_spill] sm:$0xff] %v6414_v61  ;;  %v6416_v18 = vpop.permute.xlu2 %4527  ;;  %vm1936_vm6 = vcmp.eq.s32.totalorder %v6446_v20, 1  ;;  %vm1933_vm3 = vcmp.eq.s32.totalorder %v6458_v52, 1 }
 0x124   : > { %8750 = vst [vmem:[#allocation92_spill] sm:$0xff] %v6398_v7  ;;  %2763 = vmatmul.f32.gmra.mxu3 %v5647_v27  ;;  %v6431_v61 = vpop.permute.xlu0 %480  ;;  %v6433_v40 = vpop.f32.mrf.mxu0  ;;  %v4706_v7 = vpack.i.bf16 %v4135_v4, %v4134_v9  ;;  %v4701_v27 = vpack.i.bf16 %v4133_v39, %v4132_v60  ;;  %v6450_v4 = vld [vmem:[%s5307_s12 + $0x88] sm:$0xff]  ;;  %v6454_v9 = vld [vmem:[%s5307_s12 + $0x60] sm:$0xff]  ;;  %v731_v60 = vld [vmem:[%s5399_s20 + $0xf0] sm:$0xff]  ;;  %v4140_v42 = vsel %vm1936_vm6, 1.0, %v8691_v16 }
 0x125   : > { %8752 = vst [vmem:[#allocation94_spill] sm:$0xff] %v6416_v18  ;;  %4425 = vmatpush.lsf.msk.msk.msrb.mxu3 %vm8516_vm13, %v8662_v55  ;;  %v6437_v8 = vpop.f32.mrf.mxu1  ;;  %965 = vmatmul.f32.gmra.mxu0 %v795_v44  ;;  %vm1937_vm14 = vcmp.eq.s32.totalorder %v6450_v4, 1  ;;  %vm1932_vm15 = vcmp.eq.s32.totalorder %v6454_v9, 1  ;;  %v6467_v39 = vld [vmem:[%s5307_s12 + $0x70] sm:$0xff]  ;;  %vm1935_vm13 = vcmp.eq.s32.totalorder %v6471_v34, 1 }
 0x126   : > { %8753 = vst [vmem:[#allocation95_spill] sm:$0xff] %v6431_v61  ;;  %1174 = vmatmul.f32.gmra.mxu1 %v795_v44  ;;  %v4141_v13 = vsel %vm1937_vm14, 1.0, %v8691_v16 }
 0x127   : > { %8754 = vst [vmem:[#allocation96_spill] sm:$0xff] %v6437_v8  ;;  %4426 = vmatpush.lsf.msk.msk.msrb.mxu3 %vm8515_vm4, %v8662_v55  ;;  %2679 = vmatmul.f32.gmra.mxu2 %v795_v44  ;;  %vm1934_vm4 = vcmp.eq.s32.totalorder %v6467_v39, 1 }
 0x128   : > { %8755 = vst [vmem:[#allocation97_spill] sm:$0xff] %v6446_v20  ;;  %4697 = vperm.xlu0 %4518, %v4696_v28   ;;  %v4136_v28 = vsel %vm1932_vm15, 1.0, %v8691_v16  ;;  %v4138_v61 = vsel %vm1934_vm4, 1.0, %v8691_v16 }
 0x129   : > { %8756 = vst [vmem:[#allocation98_spill] sm:$0xff] %v6450_v4  ;;  %4427 = vmatpush.lsf.msk.msk.msrb.mxu3 %vm542_vm5, %v8662_v55  ;;  %4707 = vperm.xlu2 %4520, %v4706_v7   ;;  %v4137_v7 = vsel %vm1933_vm3, 1.0, %v8691_v16 }
 0x12a   : > { %4702 = vperm.xlu1 %4519, %v4701_v27   ;;  %v6494_v14 = vpop.permute.xlu1 %492  ;;  %v4711_v19 = vpack.i.bf16 %v4137_v7, %v4136_v28 }
 0x12b   : > { %4428 = vmatpush.lsf.msk.msk.msrb.mxu3 %vm541_vm12, %v8662_v55  ;;  %v6480_v44 = vpop.f32.mrf.mxu2  ;;  %8758 = vst [vmem:[#allocation100_spill] sm:$0xff] %v6494_v14  ;;  %v4543_v27 = vpop.permute.xlu2 %4542  ;;  %v796_v55 = vsel %vm765_vm0, 1.0, %v731_v60  ;;  %v4721_v60 = vpack.i.bf16 %v4141_v13, %v4140_v42  ;;  %v6522_v13 = vld [vmem:[%s5307_s12 + $0x90] sm:$0xff]  ;;  %v6526_v42 = vld [vmem:[%s5307_s12 + $0x98] sm:$0xff] }
 0x12c   : > { %8757 = vst [vmem:[#allocation99_spill] sm:$0xff] %v6480_v44  ;;  %v4139_v44 = vsel %vm1935_vm13, 1.0, %v8691_v16  ;;  %2766 = vmatmul.f32.gmra.mxu3 %v5675_v17  ;;  %v4545_v2 = vunpack.i.h.bf16 %v4543_v27  ;;  %v4544_v43 = vunpack.i.l.bf16 %v4543_v27  ;;  %v6503_v0 = vpop.permute.xlu0 %489  ;;  %v921_v14 = vpop.f32.mrf.mxu0  ;;  %v6514_v27 = vld [vmem:[%s5307_s12 + $0xb0] sm:$0xff]  ;;  %vm1938_vm6 = vcmp.eq.s32.totalorder %v6522_v13, 1 }
 0x12d   : > { %8759 = vst [vmem:[#allocation101_spill] sm:$0xff] %v6503_v0  ;;  %v6505_v54 = vpop.f32.mrf.mxu1  ;;  %968 = vmatmul.f32.gmra.mxu0 %v796_v55  ;;  %v4716_v17 = vpack.i.bf16 %v4139_v44, %v4138_v61  ;;  %vm1942_vm13 = vcmp.eq.s32.totalorder %v6514_v27, 1  ;;  %v6518_v0 = vld [vmem:[%s5307_s12 + $0xb8] sm:$0xff]  ;;  %vm1939_vm14 = vcmp.eq.s32.totalorder %v6526_v42, 1  ;;  %v4142_v44 = vsel %vm1938_vm6, 1.0, %v8691_v16 }
 0x12e   : > { %8760 = vst [vmem:[#allocation102_spill] sm:$0xff] %v6505_v54  ;;  %v6508_v45 = vmul.f32 %v4545_v2, %v6185_v30  ;;  %v6511_v11 = vmul.f32 %v4544_v43, %v6157_v62  ;;  %1177 = vmatmul.f32.gmra.mxu1 %v796_v55  ;;  %vm1943_vm4 = vcmp.eq.s32.totalorder %v6518_v0, 1  ;;  %v732_v43 = vld [vmem:[%s5399_s20 + $0xf8] sm:$0xff]  ;;  %v6531_v62 = vld [vmem:[%s5307_s12 + $0xa0] sm:$0xff]  ;;  %v6535_v30 = vld [vmem:[%s5307_s12 + $0xa8] sm:$0xff]  ;;  %v4146_v61 = vsel %vm1942_vm13, 1.0, %v8691_v16 }
 0x12f   : > { %8763 = vst [vmem:[#allocation105_spill] sm:$0xff] %v6522_v13  ;;  %2682 = vmatmul.f32.gmra.mxu2 %v796_v55  ;;  %vm1940_vm15 = vcmp.eq.s32.totalorder %v6531_v62, 1  ;;  %vm1941_vm3 = vcmp.eq.s32.totalorder %v6535_v30, 1  ;;  %v4147_v55 = vsel %vm1943_vm4, 1.0, %v8691_v16  ;;  %v4143_v28 = vsel %vm1939_vm14, 1.0, %v8691_v16 }
 0x130   : > { %8761 = vst [vmem:[#allocation103_spill] sm:$0xff] %v6508_v45  ;;  %4712 = vperm.xlu0 %4518, %v4711_v19   ;;  %v797_v19 = vsel %vm765_vm0, 1.0, %v732_v43  ;;  %v4736_v45 = vpack.i.bf16 %v4147_v55, %v4146_v61  ;;  %v4726_v43 = vpack.i.bf16 %v4143_v28, %v4142_v44  ;;  %vm1948_vm13 = vcmp.eq.s32.totalorder %v6564_v49, 1  ;;  %v6572_v61 = vld [vmem:[%s5307_s12 + $0xc0] sm:$0xff] }
 0x131   : > { %8762 = vst [vmem:[#allocation104_spill] sm:$0xff] %v6511_v11  ;;  %4722 = vperm.xlu2 %4520, %v4721_v60   ;;  %v4144_v60 = vsel %vm1940_vm15, 1.0, %v8691_v16  ;;  %vm1944_vm6 = vcmp.eq.s32.totalorder %v6572_v61, 1  ;;  %v4152_v44 = vsel %vm1948_vm13, 1.0, %v8691_v16  ;;  %vm1954_vm13 = vcmp.eq.s32.totalorder %v6616_v32, 1 }
 0x132   : > { %8764 = vst [vmem:[#allocation106_spill] sm:$0xff] %v6526_v42  ;;  %4717 = vperm.xlu1 %4519, %v4716_v17   ;;  %v6548_v7 = vpop.permute.xlu1 %501  ;;  %v4145_v17 = vsel %vm1941_vm3, 1.0, %v8691_v16 }
 0x133   : > { %8765 = vst [vmem:[#allocation107_spill] sm:$0xff] %v6531_v62  ;;  %v6538_v2 = vpop.f32.mrf.mxu2  ;;  %v4558_v47 = vpop.permute.xlu2 %4557  ;;  %v6706_v62 = vld [vmem:[%s5307_s12 + $0x170] sm:$0xff] }
 0x134   : > { %8766 = vst [vmem:[#allocation108_spill] sm:$0xff] %v6535_v30  ;;  %2769 = vmatmul.f32.gmra.mxu3 %v5705_v29  ;;  %v4559_v54 = vunpack.i.l.bf16 %v4558_v47  ;;  %v6555_v8 = vpop.permute.xlu0 %498  ;;  %v924_v11 = vpop.f32.mrf.mxu0  ;;  %v4731_v29 = vpack.i.bf16 %v4145_v17, %v4144_v60  ;;  %v6664_v30 = vld [vmem:[%s5307_s12 + $0x140] sm:$0xff] }
 0x135   : > { %8767 = vst [vmem:[#allocation109_spill] sm:$0xff] %v6538_v2  ;;  %v4560_v2 = vunpack.i.h.bf16 %v4558_v47  ;;  %971 = vmatmul.f32.gmra.mxu0 %v797_v19  ;;  %v6568_v47 = vld [vmem:[%s5307_s12 + $0xe8] sm:$0xff] }
 0x136   : > { %8768 = vst [vmem:[#allocation110_spill] sm:$0xff] %v6548_v7  ;;  %v6557_v7 = vpop.f32.mrf.mxu1  ;;  %v6559_v50 = vmul.f32 %v4559_v54, %v921_v14  ;;  %1180 = vmatmul.f32.gmra.mxu1 %v797_v19  ;;  %vm1949_vm4 = vcmp.eq.s32.totalorder %v6568_v47, 1  ;;  %v6576_v14 = vld [vmem:[%s5307_s12 + $0xc8] sm:$0xff]  ;;  %v6581_v54 = vld [vmem:[%s5307_s12 + $0xd0] sm:$0xff] }
 0x137   : > { %8769 = vst [vmem:[#allocation111_spill] sm:$0xff] %v6555_v8  ;;  %v6561_v57 = vmul.f32 %v4560_v2, %v924_v11  ;;  %vm1945_vm14 = vcmp.eq.s32.totalorder %v6576_v14, 1  ;;  %2685 = vmatmul.f32.gmra.mxu2 %v797_v19  ;;  %v733_v11 = vld [vmem:[%s5399_s20 + $0x100] sm:$0xff]  ;;  %vm1946_vm15 = vcmp.eq.s32.totalorder %v6581_v54, 1  ;;  %v6585_v2 = vld [vmem:[%s5307_s12 + $0xd8] sm:$0xff]  ;;  %v4153_v28 = vsel %vm1949_vm4, 1.0, %v8691_v16 }
 0x138   : > { %8770 = vst [vmem:[#allocation112_spill] sm:$0xff] %v6557_v7  ;;  %vm1947_vm3 = vcmp.eq.s32.totalorder %v6585_v2, 1  ;;  %4727 = vperm.xlu0 %4518, %v4726_v43   ;;  %v4148_v19 = vsel %vm1944_vm6, 1.0, %v8691_v16  ;;  %v4149_v60 = vsel %vm1945_vm14, 1.0, %v8691_v16  ;;  %v798_v43 = vsel %vm765_vm0, 1.0, %v733_v11 }
 0x139   : > { %8771 = vst [vmem:[#allocation113_spill] sm:$0xff] %v6559_v50  ;;  %4737 = vperm.xlu2 %4520, %v4736_v45   ;;  %v6600_v45 = vpop.f32.mrf.mxu3  ;;  %v4151_v8 = vsel %vm1947_vm3, 1.0, %v8691_v16  ;;  %v4741_v11 = vpack.i.bf16 %v4149_v60, %v4148_v19  ;;  %v4158_v19 = vsel %vm1954_vm13, 1.0, %v8691_v16  ;;  %vm1960_vm13 = vcmp.eq.s32.totalorder %v6664_v30, 1 }
 0x13a   : > { %8772 = vst [vmem:[#allocation114_spill] sm:$0xff] %v6561_v57  ;;  %4732 = vperm.xlu1 %4519, %v4731_v29   ;;  %v4150_v29 = vsel %vm1946_vm15, 1.0, %v8691_v16  ;;  %v6609_v50 = vpop.permute.xlu1 %4522 }
 0x13b   : > { %8773 = vst [vmem:[#allocation115_spill] sm:$0xff] %v6576_v14  ;;  %v6588_v55 = vpop.f32.mrf.mxu2  ;;  %v6598_v17 = vpop.permute.xlu2 %4572  ;;  %v4746_v46 = vpack.i.bf16 %v4151_v8, %v4150_v29  ;;  %v6636_v8 = vld [vmem:[%s5307_s12 + $0x108] sm:$0xff] }
 0x13c   : > { %8774 = vst [vmem:[#allocation116_spill] sm:$0xff] %v6588_v55  ;;  %2772 = vmatmul.f32.gmra.mxu3 %v5735_v41  ;;  %v6607_v55 = vpop.permute.xlu0 %507  ;;  %v6611_v57 = vpop.f32.mrf.mxu0  ;;  %v6620_v41 = vld [vmem:[%s5307_s12 + $0x118] sm:$0xff]  ;;  %vm1953_vm3 = vcmp.eq.s32.totalorder %v6636_v8, 1 }
 0x13d   : > { %8775 = vst [vmem:[#allocation117_spill] sm:$0xff] %v6600_v45  ;;  %v4751_v45 = vpack.i.bf16 %v4153_v28, %v4152_v44  ;;  %974 = vmatmul.f32.gmra.mxu0 %v798_v43  ;;  %vm1955_vm4 = vcmp.eq.s32.totalorder %v6620_v41, 1  ;;  %v6632_v44 = vld [vmem:[%s5307_s12 + $0x100] sm:$0xff]  ;;  %v734_v28 = vld [vmem:[%s5399_s20 + $0x108] sm:$0xff] }
 0x13e   : > { %8776 = vst [vmem:[#allocation118_spill] sm:$0xff] %v6607_v55  ;;  %v6613_v7 = vpop.f32.mrf.mxu1  ;;  %1183 = vmatmul.f32.gmra.mxu1 %v798_v43  ;;  %v6624_v55 = vld [vmem:[%s5307_s12 + $0xf0] sm:$0xff]  ;;  %vm1952_vm15 = vcmp.eq.s32.totalorder %v6632_v44, 1  ;;  %v4159_v60 = vsel %vm1955_vm4, 1.0, %v8691_v16 }
 0x13f   : > { %8777 = vst [vmem:[#allocation119_spill] sm:$0xff] %v6609_v50  ;;  %vm1950_vm6 = vcmp.eq.s32.totalorder %v6624_v55, 1  ;;  %v6628_v50 = vld [vmem:[%s5307_s12 + $0xf8] sm:$0xff]  ;;  %2688 = vmatmul.f32.gmra.mxu2 %v798_v43  ;;  %v4157_v43 = vsel %vm1953_vm3, 1.0, %v8691_v16  ;;  %v4766_v5 = vpack.i.bf16 %v4159_v60, %v4158_v19  ;;  %v6674_v19 = vld [vmem:[%s5307_s12 + $0x120] sm:$0xff]  ;;  %v6678_v60 = vld [vmem:[%s5307_s12 + $0x128] sm:$0xff] }
 0x140   : > { %8778 = vst [vmem:[#allocation120_spill] sm:$0xff] %v6613_v7  ;;  %vm1951_vm14 = vcmp.eq.s32.totalorder %v6628_v50, 1  ;;  %4742 = vperm.xlu0 %4518, %v4741_v11   ;;  %v4154_v29 = vsel %vm1950_vm6, 1.0, %v8691_v16  ;;  %v799_v11 = vsel %vm765_vm0, 1.0, %v734_v28  ;;  %vm1956_vm6 = vcmp.eq.s32.totalorder %v6674_v19, 1 }
 0x141   : > { %8780 = vst [vmem:[#allocation122_spill] sm:$0xff] %v6620_v41  ;;  %4752 = vperm.xlu2 %4520, %v4751_v45   ;;  %v4155_v41 = vsel %vm1951_vm14, 1.0, %v8691_v16  ;;  %v6671_v28 = vpop.f32.mrf.mxu3  ;;  %vm1957_vm14 = vcmp.eq.s32.totalorder %v6678_v60, 1 }
 0x142   : > { %8781 = vst [vmem:[#allocation123_spill] sm:$0xff] %v6632_v44  ;;  %4747 = vperm.xlu1 %4519, %v4746_v46   ;;  %v4156_v44 = vsel %vm1952_vm15, 1.0, %v8691_v16  ;;  %v6657_v32 = vpop.permute.xlu1 %4537 }
 0x143   : > { %8782 = vst [vmem:[#allocation124_spill] sm:$0xff] %v6636_v8  ;;  %v6648_v8 = vpop.f32.mrf.mxu2  ;;  %v6650_v45 = vpop.permute.xlu2 %4587  ;;  %v4761_v18 = vpack.i.bf16 %v4157_v43, %v4156_v44  ;;  %v6686_v44 = vld [vmem:[%s5307_s12 + $0x138] sm:$0xff]  ;;  %v4164_v43 = vsel %vm1960_vm13, 1.0, %v8691_v16  ;;  %vm1966_vm13 = vcmp.eq.s32.totalorder %v6706_v62, 1 }
 0x144   : > { %8783 = vst [vmem:[#allocation125_spill] sm:$0xff] %v6648_v8  ;;  %2775 = vmatmul.f32.gmra.mxu3 %v5798_v38  ;;  %v6655_v46 = vpop.permute.xlu0 %4532  ;;  %v6659_v42 = vpop.f32.mrf.mxu0  ;;  %v4756_v8 = vpack.i.bf16 %v4155_v41, %v4154_v29  ;;  %v6668_v38 = vld [vmem:[%s5307_s12 + $0x148] sm:$0xff]  ;;  %v6682_v41 = vld [vmem:[%s5307_s12 + $0x130] sm:$0xff]  ;;  %vm1959_vm3 = vcmp.eq.s32.totalorder %v6686_v44, 1  ;;  %v4170_v14 = vsel %vm1966_vm13, 1.0, %v8691_v16 }
 0x145   : > { %8784 = vst [vmem:[#allocation126_spill] sm:$0xff] %v6650_v45  ;;  %vm1961_vm4 = vcmp.eq.s32.totalorder %v6668_v38, 1  ;;  %977 = vmatmul.f32.gmra.mxu0 %v799_v11  ;;  %vm1958_vm15 = vcmp.eq.s32.totalorder %v6682_v41, 1  ;;  %v735_v29 = vld [vmem:[%s5399_s20 + $0x110] sm:$0xff]  ;;  %v736_v45 = vld [vmem:[%s5399_s20 + $0x118] sm:$0xff] }
 0x146   : > { %8785 = vst [vmem:[#allocation127_spill] sm:$0xff] %v6657_v32  ;;  %v6661_v13 = vpop.f32.mrf.mxu1  ;;  %1186 = vmatmul.f32.gmra.mxu1 %v799_v11  ;;  %v4160_v32 = vsel %vm1956_vm6, 1.0, %v8691_v16 }
 0x147   : > { %8786 = vst [vmem:[#allocation128_spill] sm:$0xff] %v6661_v13  ;;  %2691 = vmatmul.f32.gmra.mxu2 %v799_v11 }
 0x148   : > { %8787 = vst [vmem:[#allocation129_spill] sm:$0xff] %v6664_v30  ;;  %4757 = vperm.xlu0 %4518, %v4756_v8   ;;  %v800_v30 = vsel %vm765_vm0, 1.0, %v735_v29 }
 0x149   : > { %8788 = vst [vmem:[#allocation130_spill] sm:$0xff] %v6668_v38  ;;  %4767 = vperm.xlu2 %4520, %v4766_v5   ;;  %v4161_v38 = vsel %vm1957_vm14, 1.0, %v8691_v16  ;;  %v6743_v20 = vpop.f32.mrf.mxu3 }
 0x14a   : > { %8789 = vst [vmem:[#allocation131_spill] sm:$0xff] %v6671_v28  ;;  %v4165_v28 = vsel %vm1961_vm4, 1.0, %v8691_v16  ;;  %4762 = vperm.xlu1 %4519, %v4761_v18   ;;  %v4771_v7 = vpack.i.bf16 %v4161_v38, %v4160_v32  ;;  %v6710_v18 = vld [vmem:[%s5307_s12 + $0x178] sm:$0xff]  ;;  %v6716_v32 = vld [vmem:[%s5307_s12 + $0x150] sm:$0xff] }
 0x14b   : > { %8790 = vst [vmem:[#allocation132_spill] sm:$0xff] %v6674_v19  ;;  %v6698_v11 = vpop.f32.mrf.mxu2  ;;  %v6700_v19 = vpop.permute.xlu2 %4602  ;;  %v4781_v5 = vpack.i.bf16 %v4165_v28, %v4164_v43  ;;  %vm1967_vm4 = vcmp.eq.s32.totalorder %v6710_v18, 1  ;;  %vm1962_vm6 = vcmp.eq.s32.totalorder %v6716_v32, 1  ;;  %v6720_v38 = vld [vmem:[%s5307_s12 + $0x158] sm:$0xff] }
 0x14c   : > { %8791 = vst [vmem:[#allocation133_spill] sm:$0xff] %v6678_v60  ;;  %2778 = vmatmul.f32.gmra.mxu3 %v5873_v48  ;;  %v4548_v8 = vpop.permute.xlu0 %4547  ;;  %v4553_v60 = vpop.permute.xlu1 %4552  ;;  %vm1963_vm14 = vcmp.eq.s32.totalorder %v6720_v38, 1 }
 0x14d   : > { %8792 = vst [vmem:[#allocation134_spill] sm:$0xff] %v6682_v41  ;;  %v4162_v41 = vsel %vm1958_vm15, 1.0, %v8691_v16  ;;  %v4550_v29 = vunpack.i.h.bf16 %v4548_v8  ;;  %v4549_v28 = vunpack.i.l.bf16 %v4548_v8  ;;  %v4555_v43 = vunpack.i.h.bf16 %v4553_v60  ;;  %980 = vmatmul.f32.gmra.mxu0 %v800_v30 }
 0x14e   : > { %8793 = vst [vmem:[#allocation135_spill] sm:$0xff] %v6686_v44  ;;  %v4163_v44 = vsel %vm1959_vm3, 1.0, %v8691_v16  ;;  %v4554_v48 = vunpack.i.l.bf16 %v4553_v60  ;;  %1189 = vmatmul.f32.gmra.mxu1 %v800_v30 }
 0x14f   : > { %8794 = vst [vmem:[#allocation136_spill] sm:$0xff] %v6698_v11  ;;  %v4776_v13 = vpack.i.bf16 %v4163_v44, %v4162_v41  ;;  %v933_v11 = vpop.f32.mrf.mxu0  ;;  %v6724_v41 = vld [vmem:[%s5307_s12 + $0x160] sm:$0xff]  ;;  %v6728_v44 = vld [vmem:[%s5307_s12 + $0x168] sm:$0xff]  ;;  %v6732_v60 = vmul.f32 %v4550_v29, %v6269_v33  ;;  %v6735_v8 = vmul.f32 %v4549_v28, %v6215_v15  ;;  %2694 = vmatmul.f32.gmra.mxu2 %v800_v30  ;;  %v4171_v15 = vsel %vm1967_vm4, 1.0, %v8691_v16 }
 0x150   : > { %8795 = vst [vmem:[#allocation137_spill] sm:$0xff] %v6700_v19  ;;  %v6713_v19 = vpop.f32.mrf.mxu1  ;;  %vm1964_vm15 = vcmp.eq.s32.totalorder %v6724_v41, 1  ;;  %vm1965_vm3 = vcmp.eq.s32.totalorder %v6728_v44, 1  ;;  %v6741_v4 = vmul.f32 %v4554_v48, %v6351_v58  ;;  %4772 = vperm.xlu0 %4518, %v4771_v7   ;;  %v4166_v58 = vsel %vm1962_vm6, 1.0, %v8691_v16 }
 0x151   : > { %8796 = vst [vmem:[#allocation138_spill] sm:$0xff] %v6710_v18  ;;  %4782 = vperm.xlu2 %4520, %v4781_v5   ;;  %v4167_v33 = vsel %vm1963_vm14, 1.0, %v8691_v16  ;;  %v4169_v30 = vsel %vm1965_vm3, 1.0, %v8691_v16  ;;  %v801_v5 = vsel %vm765_vm0, 1.0, %v736_v45  ;;  %v4796_v48 = vpack.i.bf16 %v4171_v15, %v4170_v14  ;;  %v6774_v45 = vld [vmem:[%s5307_s12 + $0x1a0] sm:$0xff]  ;;  %v5068_v15 = vld [vmem:[%s5307_s12 + $0x188] sm:$0xff] }
 0x152   : > { %8797 = vst [vmem:[#allocation139_spill] sm:$0xff] %v6713_v19  ;;  %v6738_v19 = vmul.f32 %v4555_v43, %v6433_v40  ;;  %v4168_v40 = vsel %vm1964_vm15, 1.0, %v8691_v16  ;;  %4777 = vperm.xlu1 %4519, %v4776_v13   ;;  %vm1972_vm13 = vcmp.eq.s32.totalorder %v6774_v45, 1  ;;  %v5067_v14 = vld [vmem:[%s5307_s12 + $0x180] sm:$0xff]  ;;  %vm1969_vm14 = vcmp.eq.s32.totalorder %v5068_v15, 1 }
 0x153   : > { %8798 = vst [vmem:[#allocation140_spill] sm:$0xff] %v6724_v41  ;;  %v6764_v29 = vpop.f32.mrf.mxu2  ;;  %v6766_v7 = vpop.permute.xlu2 %4617  ;;  %vm1968_vm6 = vcmp.eq.s32.totalorder %v5067_v14, 1 }
 0x154   : > { %8799 = vst [vmem:[#allocation141_spill] sm:$0xff] %v6728_v44  ;;  %2781 = vmatmul.f32.gmra.mxu3 %v5940_v36  ;;  %v4563_v28 = vpop.permute.xlu0 %4562  ;;  %v4568_v43 = vpop.permute.xlu1 %4567  ;;  %v6778_v36 = vld [vmem:[%s5307_s12 + $0x1a8] sm:$0xff] }
 0x155   : > { %8800 = vst [vmem:[#allocation142_spill] sm:$0xff] %v6738_v19  ;;  %v4565_v19 = vunpack.i.h.bf16 %v4563_v28  ;;  %v4564_v13 = vunpack.i.l.bf16 %v4563_v28  ;;  %v4570_v44 = vunpack.i.h.bf16 %v4568_v43  ;;  %983 = vmatmul.f32.gmra.mxu0 %v801_v5  ;;  %vm1973_vm4 = vcmp.eq.s32.totalorder %v6778_v36, 1  ;;  %v737_v28 = vld [vmem:[%s5399_s20 + $0x120] sm:$0xff] }
 0x156   : > { %8801 = vst [vmem:[#allocation143_spill] sm:$0xff] %v6741_v4  ;;  %v4786_v4 = vpack.i.bf16 %v4167_v33, %v4166_v58  ;;  %1192 = vmatmul.f32.gmra.mxu1 %v801_v5 }
 0x157   : > { %8802 = vst [vmem:[#allocation144_spill] sm:$0xff] %v6743_v20  ;;  %v4791_v20 = vpack.i.bf16 %v4169_v30, %v4168_v40  ;;  %v936_v41 = vpop.f32.mrf.mxu0  ;;  %v6784_v58 = vmul.f32 %v4565_v19, %v6659_v42  ;;  %v6787_v33 = vmul.f32 %v4564_v13, %v6611_v57  ;;  %2697 = vmatmul.f32.gmra.mxu2 %v801_v5  ;;  %v6799_v42 = vpop.f32.mrf.mxu3  ;;  %v4176_v57 = vsel %vm1972_vm13, 1.0, %v8691_v16 }
 0x158   : > { %8803 = vst [vmem:[#allocation145_spill] sm:$0xff] %v6764_v29  ;;  %v4569_v29 = vunpack.i.l.bf16 %v4568_v43  ;;  %v6771_v18 = vpop.f32.mrf.mxu1  ;;  %v6791_v30 = vmul.f32 %v4570_v44, %v936_v41  ;;  %v6795_v43 = vld [vmem:[%s5307_s12 + $0x190] sm:$0xff]  ;;  %4787 = vperm.xlu0 %4518, %v4786_v4   ;;  %v4177_v19 = vsel %vm1973_vm4, 1.0, %v8691_v16  ;;  %v4173_v41 = vsel %vm1969_vm14, 1.0, %v8691_v16 }
 0x159   : > { %8804 = vst [vmem:[#allocation146_spill] sm:$0xff] %v6766_v7  ;;  %vm1970_vm15 = vcmp.eq.s32.totalorder %v6795_v43, 1  ;;  %v5070_v7 = vld [vmem:[%s5307_s12 + $0x198] sm:$0xff]  ;;  %4797 = vperm.xlu2 %4520, %v4796_v48   ;;  %v4574_v5 = vunpack.i.l.bf16 %v6598_v17 }
 0x15a   : > { %8805 = vst [vmem:[#allocation147_spill] sm:$0xff] %v6774_v45  ;;  %v6789_v40 = vmul.f32 %v4569_v29, %v933_v11  ;;  %vm1971_vm3 = vcmp.eq.s32.totalorder %v5070_v7, 1  ;;  %4792 = vperm.xlu1 %4519, %v4791_v20   ;;  %v4172_v11 = vsel %vm1968_vm6, 1.0, %v8691_v16  ;;  %v802_v20 = vsel %vm765_vm0, 1.0, %v737_v28  ;;  %v6833_v45 = vld [vmem:[%s5307_s12 + $0x1d8] sm:$0xff] }
 0x15b   : > { %8806 = vst [vmem:[#allocation148_spill] sm:$0xff] %v6778_v36  ;;  %v6811_v44 = vpop.f32.mrf.mxu2  ;;  %v6813_v4 = vpop.permute.xlu2 %4632  ;;  %v4174_v29 = vsel %vm1970_vm15, 1.0, %v8691_v16  ;;  %v4175_v7 = vsel %vm1971_vm3, 1.0, %v8691_v16  ;;  %v4801_v28 = vpack.i.bf16 %v4173_v41, %v4172_v11  ;;  %vm1979_vm4 = vcmp.eq.s32.totalorder %v6833_v45, 1  ;;  %v6837_v36 = vld [vmem:[%s5307_s12 + $0x1b0] sm:$0xff]  ;;  %v6846_v11 = vld [vmem:[%s5307_s12 + $0x1c0] sm:$0xff] }
 0x15c   : > { %8807 = vst [vmem:[#allocation149_spill] sm:$0xff] %v6789_v40  ;;  %v6820_v48 = vpop.permute.xlu0 %4577  ;;  %v6822_v13 = vpop.permute.xlu1 %4582  ;;  %vm1974_vm6 = vcmp.eq.s32.totalorder %v6837_v36, 1  ;;  %vm1976_vm15 = vcmp.eq.s32.totalorder %v6846_v11, 1  ;;  %v6850_v41 = vld [vmem:[%s5307_s12 + $0x1c8] sm:$0xff] }
 0x15d   : > { %8808 = vst [vmem:[#allocation150_spill] sm:$0xff] %v6791_v30  ;;  %986 = vmatmul.f32.gmra.mxu0 %v802_v20  ;;  %vm1977_vm3 = vcmp.eq.s32.totalorder %v6850_v41, 1  ;;  %v6885_v40 = vld [vmem:[%s5307_s12 + $0x1e8] sm:$0xff] }
 0x15e   : > { %8809 = vst [vmem:[#allocation151_spill] sm:$0xff] %v6795_v43  ;;  %1195 = vmatmul.f32.gmra.mxu1 %v802_v20  ;;  %v6829_v43 = vld [vmem:[%s5307_s12 + $0x1d0] sm:$0xff] }
 0x15f   : > { %8810 = vst [vmem:[#allocation152_spill] sm:$0xff] %v6799_v42  ;;  %v939_v14 = vpop.f32.mrf.mxu0  ;;  %v4806_v42 = vpack.i.bf16 %v4175_v7, %v4174_v29  ;;  %vm1978_vm13 = vcmp.eq.s32.totalorder %v6829_v43, 1  ;;  %2700 = vmatmul.f32.gmra.mxu2 %v802_v20  ;;  %v4183_v7 = vsel %vm1979_vm4, 1.0, %v8691_v16  ;;  %v4178_v20 = vsel %vm1974_vm6, 1.0, %v8691_v16 }
 0x160   : > { %8811 = vst [vmem:[#allocation153_spill] sm:$0xff] %v6811_v44  ;;  %v6824_v15 = vpop.f32.mrf.mxu1  ;;  %v6826_v44 = vmul.f32 %v4574_v5, %v939_v14  ;;  %4802 = vperm.xlu0 %4518, %v4801_v28   ;;  %v4182_v29 = vsel %vm1978_vm13, 1.0, %v8691_v16  ;;  %v4575_v28 = vunpack.i.h.bf16 %v6598_v17  ;;  %vm2785_vm13 = vcmp.eq.s32.totalorder %v6290_v63, 2  ;;  %v6881_v17 = vld [vmem:[%s5307_s12 + $0x1e0] sm:$0xff] }
 0x161   : > { %8812 = vst [vmem:[#allocation154_spill] sm:$0xff] %v6813_v4  ;;  %v4811_v4 = vpack.i.bf16 %v4177_v19, %v4176_v57  ;;  %v6841_v57 = vld [vmem:[%s5307_s12 + $0x1b8] sm:$0xff]  ;;  %v738_v19 = vld [vmem:[%s5399_s20 + $0x128] sm:$0xff]  ;;  %vm2786_vm4 = vcmp.eq.s32.totalorder %v6294_v56, 2  ;;  %vm1980_vm6 = vcmp.eq.s32.totalorder %v6881_v17, 1  ;;  %v4188_v63 = vsel %vm2785_vm13, 1.0, %v8691_v16 }
 0x162   : > { %8813 = vst [vmem:[#allocation155_spill] sm:$0xff] %v6826_v44  ;;  %vm1975_vm14 = vcmp.eq.s32.totalorder %v6841_v57, 1  ;;  %4807 = vperm.xlu1 %4519, %v4806_v42   ;;  %v4181_v42 = vsel %vm1977_vm3, 1.0, %v8691_v16  ;;  %v4189_v56 = vsel %vm2786_vm4, 1.0, %v8691_v16  ;;  %vm2791_vm13 = vcmp.eq.s32.totalorder %v6372_v53, 2 }
 0x163   : > { %8814 = vst [vmem:[#allocation156_spill] sm:$0xff] %v6829_v43  ;;  %4812 = vperm.xlu2 %4520, %v4811_v4   ;;  %v4179_v5 = vsel %vm1975_vm14, 1.0, %v8691_v16  ;;  %v6859_v14 = vpop.f32.mrf.mxu2  ;;  %v4180_v4 = vsel %vm1976_vm15, 1.0, %v8691_v16  ;;  %vm1981_vm14 = vcmp.eq.s32.totalorder %v6885_v40, 1  ;;  %vm2792_vm4 = vcmp.eq.s32.totalorder %v6376_v23, 2 }
 0x164   : > { %8815 = vst [vmem:[#allocation157_spill] sm:$0xff] %v6833_v45  ;;  %v6868_v43 = vpop.permute.xlu0 %4592  ;;  %v6870_v45 = vpop.permute.xlu1 %4597  ;;  %v4821_v30 = vpack.i.bf16 %v4181_v42, %v4180_v4  ;;  %v4195_v53 = vsel %vm2792_vm4, 1.0, %v8691_v16  ;;  %vm2797_vm4 = vcmp.eq.s32.totalorder %v6454_v9, 2 }
 0x165   : > { %8816 = vst [vmem:[#allocation158_spill] sm:$0xff] %v6837_v36  ;;  %v6861_v36 = vpop.permute.xlu2 %4647  ;;  %v4200_v9 = vsel %vm2797_vm4, 1.0, %v8691_v16  ;;  %vm2814_vm4 = vcmp.eq.s32.totalorder %v6568_v47, 2 }
 0x166   : > { %8817 = vst [vmem:[#allocation159_spill] sm:$0xff] %v6841_v57  ;;  %v803_v57 = vsel %vm765_vm0, 1.0, %v738_v19  ;;  %v6874_v19 = vpop.f32.mrf.mxu3 }
 0x167   : > { %8818 = vst [vmem:[#allocation160_spill] sm:$0xff] %v6846_v11  ;;  %v4816_v11 = vpack.i.bf16 %v4179_v5, %v4178_v20  ;;  %989 = vmatmul.f32.gmra.mxu0 %v803_v57  ;;  %1198 = vmatmul.f32.gmra.mxu1 %v803_v57  ;;  %v4184_v20 = vsel %vm1980_vm6, 1.0, %v8691_v16  ;;  %vm2787_vm6 = vcmp.eq.s32.totalorder %v6303_v10, 2 }
 0x168   : > { %8819 = vst [vmem:[#allocation161_spill] sm:$0xff] %v6850_v41  ;;  %v942_v41 = vpop.f32.mrf.mxu0  ;;  %2703 = vmatmul.f32.gmra.mxu2 %v803_v57  ;;  %v4185_v57 = vsel %vm1981_vm14, 1.0, %v8691_v16  ;;  %vm2788_vm14 = vcmp.eq.s32.totalorder %v6307_v22, 2  ;;  %v4190_v23 = vsel %vm2787_vm6, 1.0, %v8691_v16  ;;  %vm2793_vm6 = vcmp.eq.s32.totalorder %v6385_v6, 2 }
 0x169   : > { %8820 = vst [vmem:[#allocation162_spill] sm:$0xff] %v6859_v14  ;;  %v6872_v14 = vpop.f32.mrf.mxu1  ;;  %v6876_v44 = vmul.f32 %v4575_v28, %v942_v41  ;;  %v6894_v41 = vld [vmem:[%s5307_s12 + $0x1f8] sm:$0xff]  ;;  %4817 = vperm.xlu0 %4518, %v4816_v11   ;;  %v4191_v10 = vsel %vm2788_vm14, 1.0, %v8691_v16  ;;  %vm2800_vm14 = vcmp.eq.s32.totalorder %v6471_v34, 2  ;;  %v4196_v6 = vsel %vm2793_vm6, 1.0, %v8691_v16 }
 0x16a   : > { %8821 = vst [vmem:[#allocation163_spill] sm:$0xff] %v6861_v36  ;;  %v4826_v36 = vpack.i.bf16 %v4183_v7, %v4182_v29  ;;  %v739_v29 = vld [vmem:[%s5399_s20 + $0x130] sm:$0xff]  ;;  %vm1983_vm3 = vcmp.eq.s32.totalorder %v6894_v41, 1  ;;  %4822 = vperm.xlu1 %4519, %v4821_v30   ;;  %v4579_v30 = vunpack.i.l.bf16 %v6820_v48  ;;  %v4203_v34 = vsel %vm2800_vm14, 1.0, %v8691_v16 }
 0x16b   : > { %8822 = vst [vmem:[#allocation164_spill] sm:$0xff] %v6874_v19  ;;  %v6890_v7 = vld [vmem:[%s5307_s12 + $0x1f0] sm:$0xff]  ;;  %v6901_v5 = vpop.f32.mrf.mxu2  ;;  %v804_v42 = vsel %vm765_vm0, 1.0, %v739_v29  ;;  %vm2794_vm6 = vcmp.eq.s32.totalorder %v6389_v26, 2  ;;  %vm2795_vm14 = vcmp.eq.s32.totalorder %v6364_v24, 2 }
 0x16c   : > { %8823 = vst [vmem:[#allocation165_spill] sm:$0xff] %v6876_v44  ;;  %vm1982_vm15 = vcmp.eq.s32.totalorder %v6890_v7, 1  ;;  %4827 = vperm.xlu2 %4520, %v4826_v36   ;;  %v4187_v36 = vsel %vm1983_vm3, 1.0, %v8691_v16  ;;  %v6910_v11 = vpop.permute.xlu0 %4607  ;;  %v6912_v19 = vpop.permute.xlu1 %4612  ;;  %vm2790_vm3 = vcmp.eq.s32.totalorder %v6286_v37, 2  ;;  %v4197_v24 = vsel %vm2794_vm6, 1.0, %v8691_v16 }
 0x16d   : > { %8824 = vst [vmem:[#allocation166_spill] sm:$0xff] %v6890_v7  ;;  %v6903_v4 = vpop.permute.xlu2 %4662  ;;  %v4186_v28 = vsel %vm1982_vm15, 1.0, %v8691_v16  ;;  %v4831_v7 = vpack.i.bf16 %v4185_v57, %v4184_v20  ;;  %vm2789_vm15 = vcmp.eq.s32.totalorder %v6282_v35, 2  ;;  %v4193_v35 = vsel %vm2790_vm3, 1.0, %v8691_v16 }
 0x16e   : > { %8825 = vst [vmem:[#allocation167_spill] sm:$0xff] %v6894_v41  ;;  %v4836_v29 = vpack.i.bf16 %v4187_v36, %v4186_v28  ;;  %v4192_v22 = vsel %vm2789_vm15, 1.0, %v8691_v16  ;;  %v4580_v20 = vunpack.i.h.bf16 %v6820_v48  ;;  %v4535_v48 = vunpack.i.h.bf16 %v6655_v46 }
 0x16f   : > { %8826 = vst [vmem:[#allocation168_spill] sm:$0xff] %v6901_v5  ;;  %v4841_v5 = vpack.i.bf16 %v4189_v56, %v4188_v63  ;;  %992 = vmatmul.f32.gmra.mxu0 %v804_v42  ;;  %1201 = vmatmul.f32.gmra.mxu1 %v804_v42  ;;  %v4194_v63 = vsel %vm2791_vm13, 1.0, %v8691_v16  ;;  %vm2796_vm13 = vcmp.eq.s32.totalorder %v6368_v59, 2  ;;  %vm2798_vm15 = vcmp.eq.s32.totalorder %v6458_v52, 2  ;;  %v741_v59 = vld [vmem:[%s5399_s20 + $0x140] sm:$0xff] }
 0x170   : > { %8827 = vst [vmem:[#allocation169_spill] sm:$0xff] %v6903_v4  ;;  %v945_v44 = vpop.f32.mrf.mxu0  ;;  %2706 = vmatmul.f32.gmra.mxu2 %v804_v42  ;;  %v4856_v36 = vpack.i.bf16 %v4195_v53, %v4194_v63  ;;  %vm2799_vm3 = vcmp.eq.s32.totalorder %v6467_v39, 2  ;;  %v4199_v63 = vsel %vm2796_vm13, 1.0, %v8691_v16  ;;  %v1797_v39 = vmul.f32 %v4535_v48, %v6055_v1 }
 0x171   : > { %8828 = vst [vmem:[#allocation170_spill] sm:$0xff] %v6912_v19  ;;  %v6914_v41 = vpop.f32.mrf.mxu1  ;;  %v6916_v4 = vmul.f32 %v4579_v30, %v945_v44  ;;  %v6924_v19 = vpop.f32.mrf.mxu3  ;;  %v740_v44 = vld [vmem:[%s5399_s20 + $0x138] sm:$0xff]  ;;  %4832 = vperm.xlu0 %4518, %v4831_v7   ;;  %v4846_v30 = vpack.i.bf16 %v4191_v10, %v4190_v23  ;;  %v4202_v52 = vsel %vm2799_vm3, 1.0, %v8691_v16  ;;  %v4584_v10 = vunpack.i.l.bf16 %v6822_v13 }
 0x172   : > { %8829 = vst [vmem:[#allocation171_spill] sm:$0xff] %v6924_v19  ;;  %4837 = vperm.xlu1 %4519, %v4836_v29   ;;  %v805_v7 = vsel %vm765_vm0, 1.0, %v740_v44  ;;  %v4851_v29 = vpack.i.bf16 %v4193_v35, %v4192_v22  ;;  %v4534_v44 = vunpack.i.l.bf16 %v6655_v46  ;;  %v4201_v46 = vsel %vm2798_vm15, 1.0, %v8691_v16 }
 0x173   : > { %v6933_v37 = vpop.f32.mrf.mxu2  ;;  %vm2813_vm13 = vcmp.eq.s32.totalorder %v6564_v49, 2  ;;  %vm2815_vm15 = vcmp.eq.s32.totalorder %v6624_v55, 2  ;;  %vm2816_vm3 = vcmp.eq.s32.totalorder %v6628_v50, 2  ;;  %v4198_v50 = vsel %vm2795_vm14, 1.0, %v8691_v16 }
 0x174   : > { %4842 = vperm.xlu2 %4520, %v4841_v5   ;;  %v6940_v57 = vpop.permute.xlu0 %4622  ;;  %v6942_v5 = vpop.permute.xlu1 %4627  ;;  %v1796_v23 = vmul.f32 %v4534_v44, %v6023_v12  ;;  %v4866_v12 = vpack.i.bf16 %v4201_v46, %v4202_v52  ;;  %v4218_v55 = vsel %vm2815_vm15, 1.0, %v8691_v16  ;;  %vm2811_vm6 = vcmp.eq.s32.totalorder %v6581_v54, 2 }
 0x175   : > { %v6935_v56 = vpop.permute.xlu2 %4677  ;;  %8830 = vst [vmem:[#allocation172_spill] sm:$0xff] %v6940_v57  ;;  %vm2812_vm14 = vcmp.eq.s32.totalorder %v6585_v2, 2  ;;  %vm2809_vm15 = vcmp.eq.s32.totalorder %v6572_v61, 2  ;;  %v4214_v2 = vsel %vm2811_vm6, 1.0, %v8691_v16 }
 0x176   : > { %8831 = vst [vmem:[#allocation173_spill] sm:$0xff] %v6942_v5  ;;  %v4861_v5 = vpack.i.bf16 %v4203_v34, %v4196_v6  ;;  %v742_v6 = vld [vmem:[%s5399_s20 + $0x148] sm:$0xff] }
 0x177   : > { %995 = vmatmul.f32.gmra.mxu0 %v805_v7  ;;  %1204 = vmatmul.f32.gmra.mxu1 %v805_v7  ;;  %v807_v47 = vsel %vm765_vm0, 1.0, %v742_v6 }
 0x178   : > { %v948_v42 = vpop.f32.mrf.mxu0  ;;  %2709 = vmatmul.f32.gmra.mxu2 %v805_v7  ;;  %v806_v7 = vsel %vm765_vm0, 1.0, %v741_v59 }
 0x179   : > { %v6944_v28 = vpop.f32.mrf.mxu1  ;;  %v6947_v19 = vmul.f32 %v4580_v20, %v948_v42  ;;  %4847 = vperm.xlu0 %4518, %v4846_v30   ;;  %v6961_v53 = vpop.f32.mrf.mxu3 }
 0x17a   : > { %4852 = vperm.xlu1 %4519, %v4851_v29   ;;  %v4871_v29 = vpack.i.bf16 %v4199_v63, %v4200_v9 }
 0x17b   : > { %v6968_v22 = vpop.f32.mrf.mxu2 }
 0x17c   : > { %4857 = vperm.xlu2 %4520, %v4856_v36   ;;  %v6972_v36 = vpop.permute.xlu0 %4637  ;;  %v6974_v30 = vpop.permute.xlu1 %4642 }
 0x17d   : > { %v4693_v35 = vpop.permute.xlu2 %4692  ;;  %8832 = vst [vmem:[#allocation174_spill] sm:$0xff] %v6972_v36 }
 0x17e   : > { %v4695_v20 = vunpack.i.h.bf16 %v4693_v35  ;;  %v4694_v42 = vunpack.i.l.bf16 %v4693_v35  ;;  %8833 = vst [vmem:[#allocation175_spill] sm:$0xff] %v6974_v30 }
 0x17f   : > { %998 = vmatmul.f32.gmra.mxu0 %v806_v7  ;;  %1207 = vmatmul.f32.gmra.mxu1 %v806_v7 }
 0x180   : > { %v951_v57 = vpop.f32.mrf.mxu0  ;;  %v2437_v48 = vmul.f32 %v4695_v20, %v6057_v25  ;;  %v2436_v44 = vmul.f32 %v4694_v42, %v6025_v3  ;;  %2712 = vmatmul.f32.gmra.mxu2 %v806_v7  ;;  %v4216_v3 = vsel %vm2813_vm13, 1.0, %v8691_v16  ;;  %v4217_v25 = vsel %vm2814_vm4, 1.0, %v8691_v16 }
 0x181   : > { %v6976_v1 = vpop.f32.mrf.mxu1  ;;  %v6983_v59 = vmul.f32 %v4584_v10, %v951_v57  ;;  %4862 = vperm.xlu0 %4518, %v4861_v5   ;;  %v4219_v57 = vsel %vm2816_vm3, 1.0, %v8691_v16  ;;  %v4585_v5 = vunpack.i.h.bf16 %v6822_v13  ;;  %v4876_v10 = vpack.i.bf16 %v4197_v24, %v4198_v50  ;;  %v7019_v13 = vpop.f32.mrf.mxu3 }
 0x182   : > { %v6988_v63 = vadd.f32 %v2436_v44, %v1796_v23  ;;  %v6990_v9 = vadd.f32 %v2437_v48, %v1797_v39  ;;  %4867 = vperm.xlu1 %4519, %v4866_v12   ;;  %v4886_v23 = vpack.i.bf16 %v4216_v3, %v4217_v25  ;;  %v4881_v20 = vpack.i.bf16 %v4218_v55, %v4219_v57  ;;  %v8839_v48 = vld [vmem:[#allocation115_spill] sm:$0xff]  ;;  %v8841_v25 = vld [vmem:[#allocation126_spill] sm:$0xff] }
 0x183   : > { %v7006_v34 = vpop.f32.mrf.mxu2  ;;  %vm2807_vm13 = vcmp.eq.s32.totalorder %v6514_v27, 2  ;;  %vm2808_vm4 = vcmp.eq.s32.totalorder %v6518_v0, 2  ;;  %vm2810_vm3 = vcmp.eq.s32.totalorder %v8839_v48, 2  ;;  %v4589_v24 = vunpack.i.l.bf16 %v8841_v25  ;;  %v8847_v48 = vld [vmem:[#allocation120_spill] sm:$0xff] }
 0x184   : > { %8834 = vst [vmem:[#allocation176_spill] sm:$0xff] %v6988_v63  ;;  %4872 = vperm.xlu2 %4520, %v4871_v29   ;;  %v7010_v39 = vpop.permute.xlu0 %4652  ;;  %v7012_v26 = vpop.permute.xlu1 %4657  ;;  %v4211_v61 = vsel %vm2808_vm4, 1.0, %v8691_v16  ;;  %v4213_v3 = vsel %vm2810_vm3, 1.0, %v8691_v16  ;;  %v8884_v63 = vld [vmem:[#allocation122_spill] sm:$0xff] }
 0x185   : > { %8835 = vst [vmem:[#allocation177_spill] sm:$0xff] %v6990_v9  ;;  %v4708_v49 = vpop.permute.xlu2 %4707  ;;  %v8885_v9 = vld [vmem:[#allocation121_spill] sm:$0xff] }
 0x186   : > { %8836 = vst [vmem:[#allocation178_spill] sm:$0xff] %v7006_v34  ;;  %v4710_v46 = vunpack.i.h.bf16 %v4708_v49  ;;  %v4709_v52 = vunpack.i.l.bf16 %v4708_v49 }
 0x187   : > { %8837 = vst [vmem:[#allocation179_spill] sm:$0xff] %v7010_v39  ;;  %1001 = vmatmul.f32.gmra.mxu0 %v807_v47  ;;  %1210 = vmatmul.f32.gmra.mxu1 %v807_v47 }
 0x188   : > { %8838 = vst [vmem:[#allocation180_spill] sm:$0xff] %v7012_v26  ;;  %v954_v35 = vpop.f32.mrf.mxu0  ;;  %v2443_v42 = vmul.f32 %v4710_v46, %v6271_v31  ;;  %v2442_v29 = vmul.f32 %v4709_v52, %v6217_v21  ;;  %2715 = vmatmul.f32.gmra.mxu2 %v807_v47  ;;  %v743_v31 = vld [vmem:[%s5399_s20 + $0x150] sm:$0xff]  ;;  %v4210_v21 = vsel %vm2807_vm13, 1.0, %v8691_v16 }
 0x189   : > { %v7014_v7 = vpop.f32.mrf.mxu1  ;;  %v7023_v12 = vmul.f32 %v4585_v5, %v954_v35  ;;  %4877 = vperm.xlu0 %4518, %v4876_v10   ;;  %v808_v0 = vsel %vm765_vm0, 1.0, %v743_v31  ;;  %v4901_v49 = vpack.i.bf16 %v4210_v21, %v4211_v61  ;;  %v8843_v10 = vld [vmem:[#allocation97_spill] sm:$0xff]  ;;  %v8844_v35 = vld [vmem:[#allocation98_spill] sm:$0xff]  ;;  %v8848_v21 = vld [vmem:[#allocation108_spill] sm:$0xff]  ;;  %v7066_v61 = vpop.f32.mrf.mxu3 }
 0x18a   : > { %v7029_v44 = vadd.f32 %v2442_v29, %v6735_v8  ;;  %v7032_v6 = vadd.f32 %v2443_v42, %v6732_v60  ;;  %v4215_v8 = vsel %vm2812_vm14, 1.0, %v8691_v16  ;;  %4882 = vperm.xlu1 %4519, %v4881_v20   ;;  %v4212_v60 = vsel %vm2809_vm15, 1.0, %v8691_v16  ;;  %v8845_v20 = vld [vmem:[#allocation107_spill] sm:$0xff]  ;;  %v8846_v42 = vld [vmem:[#allocation128_spill] sm:$0xff]  ;;  %v8851_v26 = vld [vmem:[#allocation106_spill] sm:$0xff] }
 0x18b   : > { %v7048_v50 = vpop.f32.mrf.mxu2  ;;  %v4891_v47 = vpack.i.bf16 %v4214_v2, %v4215_v8  ;;  %vm2801_vm13 = vcmp.eq.s32.totalorder %v8843_v10, 2  ;;  %vm2802_vm4 = vcmp.eq.s32.totalorder %v8844_v35, 2  ;;  %vm2805_vm6 = vcmp.eq.s32.totalorder %v8845_v20, 2  ;;  %v8849_v2 = vld [vmem:[#allocation94_spill] sm:$0xff] }
 0x18c   : > { %8840 = vst [vmem:[#allocation115_spill] sm:$0xff] %v7029_v44  ;;  %4887 = vperm.xlu2 %4520, %v4886_v23   ;;  %v7052_v5 = vpop.permute.xlu0 %4667  ;;  %v7054_v54 = vpop.permute.xlu1 %4672  ;;  %v4896_v23 = vpack.i.bf16 %v4212_v60, %v4213_v3  ;;  %vm2806_vm14 = vcmp.eq.s32.totalorder %v8848_v21, 2  ;;  %v4530_v8 = vunpack.i.h.bf16 %v8849_v2  ;;  %v4529_v60 = vunpack.i.l.bf16 %v8849_v2  ;;  %v8850_v3 = vld [vmem:[#allocation105_spill] sm:$0xff]  ;;  %v8855_v10 = vld [vmem:[#allocation70_spill] sm:$0xff] }
 0x18d   : > { %8842 = vst [vmem:[#allocation126_spill] sm:$0xff] %v7048_v50  ;;  %v4723_v27 = vpop.permute.xlu2 %4722  ;;  %vm2803_vm15 = vcmp.eq.s32.totalorder %v8850_v3, 2  ;;  %vm2804_vm3 = vcmp.eq.s32.totalorder %v8851_v26, 2  ;;  %v4590_v35 = vunpack.i.h.bf16 %v8841_v25  ;;  %v8869_v50 = vld [vmem:[#allocation129_spill] sm:$0xff] }
 0x18e   : > { %v4725_v55 = vunpack.i.h.bf16 %v4723_v27  ;;  %v4724_v57 = vunpack.i.l.bf16 %v4723_v27  ;;  %v4206_v26 = vsel %vm2803_vm15, 1.0, %v8691_v16  ;;  %v8871_v44 = vld [vmem:[#allocation25_spill] sm:$0xff] }
 0x18f   : > { %1004 = vmatmul.f32.gmra.mxu0 %v808_v0  ;;  %1213 = vmatmul.f32.gmra.mxu1 %v808_v0 }
 0x190   : > { %v957_v46 = vpop.f32.mrf.mxu0  ;;  %v2449_v29 = vmul.f32 %v4725_v55, %v8846_v42  ;;  %v2448_v31 = vmul.f32 %v4724_v57, %v8847_v48  ;;  %2718 = vmatmul.f32.gmra.mxu2 %v808_v0  ;;  %v744_v57 = vld [vmem:[%s5399_s20 + $0x158] sm:$0xff]  ;;  %v4205_v42 = vsel %vm2802_vm4, 1.0, %v8691_v16  ;;  %v4207_v0 = vsel %vm2804_vm3, 1.0, %v8691_v16 }
 0x191   : > { %v7056_v52 = vpop.f32.mrf.mxu1  ;;  %v7063_v27 = vmul.f32 %v4589_v24, %v957_v46  ;;  %4892 = vperm.xlu0 %4518, %v4891_v47   ;;  %v4204_v46 = vsel %vm2801_vm13, 1.0, %v8691_v16  ;;  %v809_v20 = vsel %vm765_vm0, 1.0, %v744_v57  ;;  %v4911_v25 = vpack.i.bf16 %v4206_v26, %v4207_v0  ;;  %v8860_v26 = vld [vmem:[#allocation138_spill] sm:$0xff]  ;;  %v8862_v0 = vld [vmem:[#allocation140_spill] sm:$0xff] }
 0x192   : > { %v7073_v55 = vadd.f32 %v2448_v31, %v6787_v33  ;;  %v7076_v24 = vadd.f32 %v2449_v29, %v6784_v58  ;;  %v4208_v33 = vsel %vm2805_vm6, 1.0, %v8691_v16  ;;  %v4209_v58 = vsel %vm2806_vm14, 1.0, %v8691_v16  ;;  %4897 = vperm.xlu1 %4519, %v4896_v23  }
 0x193   : > { %v1794_v29 = vmul.f32 %v4529_v60, %v8855_v10  ;;  %v7096_v48 = vpop.f32.mrf.mxu2  ;;  %v4916_v39 = vpack.i.bf16 %v4204_v46, %v4205_v42  ;;  %v4906_v30 = vpack.i.bf16 %v4208_v33, %v4209_v58  ;;  %vm2827_vm13 = vcmp.eq.s32.totalorder %v6716_v32, 2  ;;  %v7110_v46 = vpop.f32.mrf.mxu3  ;;  %v8858_v42 = vld [vmem:[#allocation77_spill] sm:$0xff]  ;;  %v8859_v58 = vld [vmem:[#allocation71_spill] sm:$0xff] }
 0x194   : > { %8852 = vst [vmem:[#allocation97_spill] sm:$0xff] %v7073_v55  ;;  %4902 = vperm.xlu2 %4520, %v4901_v49   ;;  %v8854_v49 = vld [vmem:[#allocation76_spill] sm:$0xff]  ;;  %v7100_v3 = vpop.permute.xlu0 %4682  ;;  %v4688_v23 = vpop.permute.xlu1 %4687  ;;  %vm2828_vm4 = vcmp.eq.s32.totalorder %v6720_v38, 2  ;;  %vm2831_vm6 = vcmp.eq.s32.totalorder %v6706_v62, 2  ;;  %vm2832_vm14 = vcmp.eq.s32.totalorder %v8860_v26, 2  ;;  %vm2829_vm15 = vcmp.eq.s32.totalorder %v8862_v0, 2 }
 0x195   : > { %8853 = vst [vmem:[#allocation98_spill] sm:$0xff] %v7076_v24  ;;  %v1795_v47 = vmul.f32 %v4530_v8, %v8854_v49  ;;  %v4738_v31 = vpop.permute.xlu2 %4737  ;;  %v4690_v36 = vunpack.i.h.bf16 %v4688_v23  ;;  %v4689_v8 = vunpack.i.l.bf16 %v4688_v23  ;;  %v745_v23 = vld [vmem:[%s5399_s20 + $0x160] sm:$0xff] }
 0x196   : > { %8856 = vst [vmem:[#allocation107_spill] sm:$0xff] %v7096_v48  ;;  %v4740_v2 = vunpack.i.h.bf16 %v4738_v31  ;;  %v4739_v21 = vunpack.i.l.bf16 %v4738_v31  ;;  %v8881_v24 = vld [vmem:[#allocation96_spill] sm:$0xff] }
 0x197   : > { %1007 = vmatmul.f32.gmra.mxu0 %v809_v20  ;;  %8857 = vst [vmem:[#allocation128_spill] sm:$0xff] %v7110_v46  ;;  %v2435_v33 = vmul.f32 %v4690_v36, %v8858_v42  ;;  %v2434_v31 = vmul.f32 %v4689_v8, %v8859_v58  ;;  %1216 = vmatmul.f32.gmra.mxu1 %v809_v20  ;;  %v4594_v8 = vunpack.i.l.bf16 %v6868_v43  ;;  %v8868_v46 = vld [vmem:[#allocation132_spill] sm:$0xff] }
 0x198   : > { %v960_v49 = vpop.f32.mrf.mxu0  ;;  %v2455_v10 = vmul.f32 %v4740_v2, %v6944_v28  ;;  %v2454_v57 = vmul.f32 %v4739_v21, %v6914_v41  ;;  %2721 = vmatmul.f32.gmra.mxu2 %v809_v20  ;;  %v810_v21 = vsel %vm765_vm0, 1.0, %v745_v23 }
 0x199   : > { %v7102_v60 = vpop.f32.mrf.mxu1  ;;  %v7107_v34 = vmul.f32 %v4590_v35, %v960_v49  ;;  %v8863_v35 = vld [vmem:[#allocation141_spill] sm:$0xff]  ;;  %v7125_v36 = vadd.f32 %v2435_v33, %v1795_v47  ;;  %v7127_v2 = vadd.f32 %v2434_v31, %v1794_v29  ;;  %4907 = vperm.xlu0 %4518, %v4906_v30   ;;  %v4235_v30 = vsel %vm2832_vm14, 1.0, %v8691_v16 }
 0x19a   : > { %v7118_v28 = vadd.f32 %v2454_v57, %v6916_v4  ;;  %v7121_v41 = vadd.f32 %v2455_v10, %v6947_v19  ;;  %vm2830_vm3 = vcmp.eq.s32.totalorder %v8863_v35, 2  ;;  %4912 = vperm.xlu1 %4519, %v4911_v25   ;;  %v4230_v19 = vsel %vm2827_vm13, 1.0, %v8691_v16  ;;  %v8867_v10 = vld [vmem:[#allocation133_spill] sm:$0xff] }
 0x19b   : > { %8864 = vst [vmem:[#allocation108_spill] sm:$0xff] %v7125_v36  ;;  %v4231_v4 = vsel %vm2828_vm4, 1.0, %v8691_v16  ;;  %v7137_v20 = vpop.f32.mrf.mxu2  ;;  %v4232_v29 = vsel %vm2829_vm15, 1.0, %v8691_v16  ;;  %v4233_v32 = vsel %vm2830_vm3, 1.0, %v8691_v16  ;;  %vm2822_vm13 = vcmp.eq.s32.totalorder %v8867_v10, 2  ;;  %v7151_v35 = vpop.f32.mrf.mxu3 }
 0x19c   : > { %8861 = vst [vmem:[#allocation120_spill] sm:$0xff] %v7118_v28  ;;  %4917 = vperm.xlu2 %4520, %v4916_v39   ;;  %v4234_v39 = vsel %vm2831_vm6, 1.0, %v8691_v16  ;;  %v7148_v38 = vpop.permute.xlu0 %4697  ;;  %v4703_v25 = vpop.permute.xlu1 %4702  ;;  %v4931_v58 = vpack.i.bf16 %v4230_v19, %v4231_v4  ;;  %v4926_v0 = vpack.i.bf16 %v4232_v29, %v4233_v32  ;;  %vm2821_vm4 = vcmp.eq.s32.totalorder %v8868_v46, 2  ;;  %v8873_v19 = vld [vmem:[#allocation130_spill] sm:$0xff]  ;;  %v8874_v4 = vld [vmem:[#allocation135_spill] sm:$0xff]  ;;  %v8877_v32 = vld [vmem:[#allocation104_spill] sm:$0xff] }
 0x19d   : > { %8865 = vst [vmem:[#allocation94_spill] sm:$0xff] %v7127_v2  ;;  %v4753_v47 = vpop.permute.xlu2 %4752  ;;  %v4705_v57 = vunpack.i.h.bf16 %v4703_v25  ;;  %v4704_v42 = vunpack.i.l.bf16 %v4703_v25  ;;  %v4921_v26 = vpack.i.bf16 %v4234_v39, %v4235_v30  ;;  %vm2825_vm6 = vcmp.eq.s32.totalorder %v8869_v50, 2  ;;  %v8872_v25 = vld [vmem:[#allocation134_spill] sm:$0xff]  ;;  %v746_v39 = vld [vmem:[%s5399_s20 + $0x168] sm:$0xff]  ;;  %v8875_v30 = vld [vmem:[#allocation103_spill] sm:$0xff] }
 0x19e   : > { %8866 = vst [vmem:[#allocation105_spill] sm:$0xff] %v7137_v20  ;;  %v4754_v49 = vunpack.i.l.bf16 %v4753_v47  ;;  %v8870_v20 = vld [vmem:[#allocation29_spill] sm:$0xff]  ;;  %vm2823_vm14 = vcmp.eq.s32.totalorder %v8872_v25, 2  ;;  %vm2826_vm15 = vcmp.eq.s32.totalorder %v8873_v19, 2  ;;  %vm2824_vm3 = vcmp.eq.s32.totalorder %v8874_v4, 2  ;;  %v8883_v2 = vld [vmem:[#allocation102_spill] sm:$0xff] }
 0x19f   : > { %1010 = vmatmul.f32.gmra.mxu0 %v810_v21  ;;  %v2441_v48 = vmul.f32 %v4705_v57, %v8870_v20  ;;  %v2440_v55 = vmul.f32 %v4704_v42, %v8871_v44  ;;  %1219 = vmatmul.f32.gmra.mxu1 %v810_v21  ;;  %v4224_v44 = vsel %vm2821_vm4, 1.0, %v8691_v16  ;;  %v4225_v20 = vsel %vm2822_vm13, 1.0, %v8691_v16  ;;  %v8879_v42 = vld [vmem:[#allocation123_spill] sm:$0xff] }
 0x1a0   : > { %v963_v62 = vpop.f32.mrf.mxu0  ;;  %2724 = vmatmul.f32.gmra.mxu2 %v810_v21  ;;  %v4228_v21 = vsel %vm2825_vm6, 1.0, %v8691_v16  ;;  %v4229_v46 = vsel %vm2826_vm15, 1.0, %v8691_v16  ;;  %v4226_v10 = vsel %vm2823_vm14, 1.0, %v8691_v16  ;;  %v4227_v50 = vsel %vm2824_vm3, 1.0, %v8691_v16 }
 0x1a1   : > { %v1172_v33 = vpop.f32.mrf.mxu1  ;;  %v1820_v31 = vmul.f32 %v4594_v8, %v963_v62  ;;  %v7164_v29 = vadd.f32 %v2441_v48, %v8875_v30  ;;  %4922 = vperm.xlu0 %4518, %v4921_v26   ;;  %vm2817_vm13 = vcmp.eq.s32.totalorder %v8879_v42, 2  ;;  %v8880_v62 = vld [vmem:[#allocation124_spill] sm:$0xff]  ;;  %v4946_v30 = vpack.i.bf16 %v4224_v44, %v4225_v20  ;;  %v747_v44 = vld [vmem:[%s5399_s20 + $0x170] sm:$0xff] }
 0x1a2   : > { %v2460_v23 = vmul.f32 %v4754_v49, %v1172_v33  ;;  %v7167_v49 = vadd.f32 %v2440_v55, %v8877_v32  ;;  %4927 = vperm.xlu1 %4519, %v4926_v0   ;;  %v811_v55 = vsel %vm765_vm0, 1.0, %v746_v39  ;;  %vm2818_vm4 = vcmp.eq.s32.totalorder %v8880_v62, 2 }
 0x1a3   : > { %8876 = vst [vmem:[#allocation106_spill] sm:$0xff] %v7164_v29  ;;  %v7178_v48 = vpop.f32.mrf.mxu2  ;;  %v4595_v33 = vunpack.i.h.bf16 %v6868_v43  ;;  %v4936_v29 = vpack.i.bf16 %v4228_v21, %v4229_v46  ;;  %v8882_v43 = vld [vmem:[#allocation112_spill] sm:$0xff]  ;;  %vm2820_vm6 = vcmp.eq.s32.totalorder %v8884_v63, 2  ;;  %vm2819_vm14 = vcmp.eq.s32.totalorder %v8885_v9, 2  ;;  %v7210_v21 = vpop.f32.mrf.mxu3 }
 0x1a4   : > { %v7160_v8 = vadd.f32 %v2460_v23, %v1820_v31  ;;  %8878 = vst [vmem:[#allocation76_spill] sm:$0xff] %v7167_v49  ;;  %4932 = vperm.xlu2 %4520, %v4931_v58   ;;  %v4755_v58 = vunpack.i.h.bf16 %v4753_v47  ;;  %v7196_v31 = vpop.permute.xlu0 %4712  ;;  %v4718_v23 = vpop.permute.xlu1 %4717  ;;  %v4941_v49 = vpack.i.bf16 %v4226_v10, %v4227_v50  ;;  %v4220_v20 = vsel %vm2817_vm13, 1.0, %v8691_v16  ;;  %v8887_v10 = vld [vmem:[#allocation114_spill] sm:$0xff]  ;;  %v8888_v50 = vld [vmem:[#allocation113_spill] sm:$0xff] }
 0x1a5   : > { %v7180_v57 = vpop.permute.xlu2 %4767  ;;  %v4715_v26 = vunpack.i.h.bf16 %v7196_v31  ;;  %v4720_v0 = vunpack.i.h.bf16 %v4718_v23  ;;  %v4719_v19 = vunpack.i.l.bf16 %v4718_v23  ;;  %vm2846_vm15 = vcmp.eq.s32.totalorder %v6885_v40, 2 }
 0x1a6   : > { %vm2845_vm3 = vcmp.eq.s32.totalorder %v6881_v17, 2 }
 0x1a7   : > { %1013 = vmatmul.f32.gmra.mxu0 %v811_v55  ;;  %v2445_v28 = vmul.f32 %v4715_v26, %v8881_v24  ;;  %v2447_v47 = vmul.f32 %v4720_v0, %v8882_v43  ;;  %v2446_v36 = vmul.f32 %v4719_v19, %v8883_v2  ;;  %1222 = vmatmul.f32.gmra.mxu1 %v811_v55  ;;  %v8886_v24 = vld [vmem:[#allocation142_spill] sm:$0xff]  ;;  %v4222_v26 = vsel %vm2819_vm14, 1.0, %v8691_v16 }
 0x1a8   : > { %v966_v25 = vpop.f32.mrf.mxu0  ;;  %2727 = vmatmul.f32.gmra.mxu2 %v811_v55  ;;  %v4221_v55 = vsel %vm2818_vm4, 1.0, %v8691_v16 }
 0x1a9   : > { %v1175_v39 = vpop.f32.mrf.mxu1  ;;  %v1821_v4 = vmul.f32 %v4595_v33, %v966_v25  ;;  %v7213_v46 = vadd.f32 %v2445_v28, %v8886_v24  ;;  %v7216_v2 = vadd.f32 %v2447_v47, %v8887_v10  ;;  %v7219_v33 = vadd.f32 %v2446_v36, %v8888_v50  ;;  %4937 = vperm.xlu0 %4518, %v4936_v29   ;;  %v8889_v47 = vld [vmem:[#allocation139_spill] sm:$0xff]  ;;  %v8890_v10 = vld [vmem:[#allocation166_spill] sm:$0xff] }
 0x1aa   : > { %v2461_v32 = vmul.f32 %v4755_v58, %v1175_v39  ;;  %4942 = vperm.xlu1 %4519, %v4941_v49   ;;  %v812_v28 = vsel %vm765_vm0, 1.0, %v747_v44  ;;  %v4223_v36 = vsel %vm2820_vm6, 1.0, %v8691_v16  ;;  %v4599_v29 = vunpack.i.l.bf16 %v6870_v45  ;;  %v8891_v50 = vld [vmem:[#allocation167_spill] sm:$0xff] }
 0x1ab   : > { %v7224_v42 = vpop.f32.mrf.mxu2  ;;  %v4956_v0 = vpack.i.bf16 %v4220_v20, %v4221_v55  ;;  %v4951_v63 = vpack.i.bf16 %v4222_v26, %v4223_v36  ;;  %vm2847_vm13 = vcmp.eq.s32.totalorder %v8890_v10, 2  ;;  %vm2848_vm4 = vcmp.eq.s32.totalorder %v8891_v50, 2  ;;  %v748_v55 = vld [vmem:[%s5399_s20 + $0x178] sm:$0xff]  ;;  %v8892_v26 = vld [vmem:[#allocation149_spill] sm:$0xff]  ;;  %v7268_v17 = vpop.f32.mrf.mxu3 }
 0x1ac   : > { %v7204_v23 = vadd.f32 %v2461_v32, %v1821_v4  ;;  %4947 = vperm.xlu2 %4520, %v4946_v30   ;;  %v4728_v49 = vpop.permute.xlu0 %4727  ;;  %v4733_v62 = vpop.permute.xlu1 %4732  ;;  %v8902_v10 = vld [vmem:[#allocation161_spill] sm:$0xff] }
 0x1ad   : > { %v7226_v58 = vpop.permute.xlu2 %4782  ;;  %v4730_v19 = vunpack.i.h.bf16 %v4728_v49  ;;  %v4729_v25 = vunpack.i.l.bf16 %v4728_v49  ;;  %v4735_v39 = vunpack.i.h.bf16 %v4733_v62  ;;  %v4734_v30 = vunpack.i.l.bf16 %v4733_v62  ;;  %v8896_v49 = vld [vmem:[#allocation165_spill] sm:$0xff] }
 0x1ae   : > { %vm2842_vm14 = vcmp.eq.s32.totalorder %v8902_v10, 2 }
 0x1af   : > { %1016 = vmatmul.f32.gmra.mxu0 %v812_v28  ;;  %v2451_v43 = vmul.f32 %v4730_v19, %v6771_v18  ;;  %v2450_v44 = vmul.f32 %v4729_v25, %v8889_v47  ;;  %v2453_v24 = vmul.f32 %v4735_v39, %v6872_v14  ;;  %v2452_v20 = vmul.f32 %v4734_v30, %v6824_v15  ;;  %v8894_v14 = vld [vmem:[#allocation150_spill] sm:$0xff]  ;;  %v8898_v19 = vld [vmem:[#allocation155_spill] sm:$0xff] }
 0x1b0   : > { %v969_v9 = vpop.f32.mrf.mxu0  ;;  %1225 = vmatmul.f32.gmra.mxu1 %v812_v28  ;;  %2730 = vmatmul.f32.gmra.mxu2 %v812_v28  ;;  %v4249_v18 = vsel %vm2846_vm15, 1.0, %v8691_v16  ;;  %v813_v39 = vsel %vm765_vm0, 1.0, %v748_v55  ;;  %v4250_v30 = vsel %vm2847_vm13, 1.0, %v8691_v16 }
 0x1b1   : > { %v7239_v4 = vpop.f32.mrf.mxu1  ;;  %v7241_v32 = vmul.f32 %v4599_v29, %v969_v9  ;;  %v4248_v29 = vsel %vm2845_vm3, 1.0, %v8691_v16  ;;  %v7257_v36 = vadd.f32 %v2450_v44, %v8892_v26  ;;  %v7260_v15 = vadd.f32 %v2451_v43, %v8894_v14  ;;  %4952 = vperm.xlu0 %4518, %v4951_v63  }
 0x1b2   : > { %v7263_v62 = vadd.f32 %v2453_v24, %v8896_v49  ;;  %v7266_v28 = vadd.f32 %v2452_v20, %v8898_v19  ;;  %v4251_v9 = vsel %vm2848_vm4, 1.0, %v8691_v16  ;;  %v4966_v47 = vpack.i.bf16 %v4248_v29, %v4249_v18  ;;  %v8901_v49 = vld [vmem:[#allocation160_spill] sm:$0xff] }
 0x1b3   : > { %8893 = vst [vmem:[#allocation70_spill] sm:$0xff] %v7257_v36  ;;  %v7270_v25 = vpop.f32.mrf.mxu2  ;;  %vm2841_vm6 = vcmp.eq.s32.totalorder %v8901_v49, 2  ;;  %v4961_v50 = vpack.i.bf16 %v4250_v30, %v4251_v9  ;;  %v749_v36 = vld [vmem:[%s5399_s20 + $0x180] sm:$0xff]  ;;  %v8909_v9 = vld [vmem:[#allocation137_spill] sm:$0xff] }
 0x1b4   : > { %8895 = vst [vmem:[#allocation77_spill] sm:$0xff] %v7260_v15  ;;  %4957 = vperm.xlu2 %4520, %v4956_v0   ;;  %v4600_v0 = vunpack.i.h.bf16 %v6870_v45  ;;  %v4743_v63 = vpop.permute.xlu0 %4742  ;;  %v4748_v43 = vpop.permute.xlu1 %4747 }
 0x1b5   : > { %8897 = vst [vmem:[#allocation71_spill] sm:$0xff] %v7263_v62  ;;  %v7272_v40 = vpop.permute.xlu2 %4797  ;;  %v4745_v44 = vunpack.i.h.bf16 %v4743_v63  ;;  %v4744_v24 = vunpack.i.l.bf16 %v4743_v63  ;;  %v4750_v20 = vunpack.i.h.bf16 %v4748_v43  ;;  %v4749_v26 = vunpack.i.l.bf16 %v4748_v43  ;;  %v8903_v63 = vld [vmem:[#allocation157_spill] sm:$0xff]  ;;  %v8904_v43 = vld [vmem:[#allocation156_spill] sm:$0xff] }
 0x1b6   : > { %8899 = vst [vmem:[#allocation138_spill] sm:$0xff] %v7266_v28  ;;  %vm2844_vm15 = vcmp.eq.s32.totalorder %v8903_v63, 2  ;;  %vm2843_vm3 = vcmp.eq.s32.totalorder %v8904_v43, 2  ;;  %v8913_v63 = vld [vmem:[#allocation158_spill] sm:$0xff]  ;;  %v8914_v28 = vld [vmem:[#allocation151_spill] sm:$0xff]  ;;  %v4670_v62 = vunpack.i.h.bf16 %v7052_v5 }
 0x1b7   : > { %8900 = vst [vmem:[#allocation140_spill] sm:$0xff] %v7272_v40  ;;  %1019 = vmatmul.f32.gmra.mxu0 %v813_v39  ;;  %v2457_v40 = vmul.f32 %v4745_v44, %v7014_v7  ;;  %v2456_v45 = vmul.f32 %v4744_v24, %v6976_v1  ;;  %v2459_v29 = vmul.f32 %v4750_v20, %v7102_v60 }
 0x1b8   : > { %v972_v14 = vpop.f32.mrf.mxu0  ;;  %v2458_v18 = vmul.f32 %v4749_v26, %v7056_v52  ;;  %1228 = vmatmul.f32.gmra.mxu1 %v813_v39  ;;  %2733 = vmatmul.f32.gmra.mxu2 %v813_v39  ;;  %v4244_v52 = vsel %vm2841_vm6, 1.0, %v8691_v16  ;;  %v8908_v39 = vld [vmem:[#allocation148_spill] sm:$0xff] }
 0x1b9   : > { %v1181_v55 = vpop.f32.mrf.mxu1  ;;  %v1823_v19 = vmul.f32 %v4600_v0, %v972_v14  ;;  %v7293_v15 = vadd.f32 %v2456_v45, %v6983_v59  ;;  %v7296_v30 = vadd.f32 %v2457_v40, %v7023_v12  ;;  %v7299_v7 = vadd.f32 %v2459_v29, %v7107_v34  ;;  %4962 = vperm.xlu0 %4518, %v4961_v50   ;;  %v8910_v50 = vld [vmem:[#allocation147_spill] sm:$0xff] }
 0x1ba   : > { %v7302_v1 = vadd.f32 %v2458_v18, %v7063_v27  ;;  %v4245_v59 = vsel %vm2842_vm14, 1.0, %v8691_v16  ;;  %v814_v34 = vsel %vm765_vm0, 1.0, %v749_v36  ;;  %v4246_v27 = vsel %vm2843_vm3, 1.0, %v8691_v16  ;;  %v8911_v36 = vld [vmem:[#allocation159_spill] sm:$0xff]  ;;  %v7324_v18 = vpop.f32.mrf.mxu3 }
 0x1bb   : > { %8905 = vst [vmem:[#allocation141_spill] sm:$0xff] %v7293_v15  ;;  %v7310_v60 = vpop.f32.mrf.mxu2  ;;  %v4247_v40 = vsel %vm2844_vm15, 1.0, %v8691_v16  ;;  %vm2838_vm13 = vcmp.eq.s32.totalorder %v8908_v39, 2  ;;  %v4604_v0 = vunpack.i.l.bf16 %v8909_v9  ;;  %v4976_v10 = vpack.i.bf16 %v4244_v52, %v4245_v59  ;;  %v8915_v52 = vld [vmem:[#allocation119_spill] sm:$0xff]  ;;  %v750_v15 = vld [vmem:[%s5399_s20 + $0x188] sm:$0xff] }
 0x1bc   : > { %8906 = vst [vmem:[#allocation133_spill] sm:$0xff] %v7296_v30  ;;  %4967 = vperm.xlu2 %4520, %v4966_v47   ;;  %v4758_v47 = vpop.permute.xlu0 %4757  ;;  %v4763_v44 = vpop.permute.xlu1 %4762  ;;  %vm2837_vm4 = vcmp.eq.s32.totalorder %v8910_v50, 2  ;;  %vm2840_vm6 = vcmp.eq.s32.totalorder %v8911_v36, 2  ;;  %v4971_v29 = vpack.i.bf16 %v4246_v27, %v4247_v40  ;;  %vm2839_vm14 = vcmp.eq.s32.totalorder %v8913_v63, 2  ;;  %v8919_v63 = vld [vmem:[#allocation144_spill] sm:$0xff] }
 0x1bd   : > { %v7312_v12 = vpop.permute.xlu2 %4812  ;;  %v4760_v24 = vunpack.i.h.bf16 %v4758_v47  ;;  %v4759_v20 = vunpack.i.l.bf16 %v4758_v47  ;;  %v4764_v26 = vunpack.i.l.bf16 %v4763_v44  ;;  %8912 = vst [vmem:[#allocation129_spill] sm:$0xff] %v7324_v18  ;;  %vm2835_vm15 = vcmp.eq.s32.totalorder %v8914_v28, 2  ;;  %v5082_v30 = vld [vmem:[%s5307_s12 + $0x180] sm:$0xff] }
 0x1be   : > { %8907 = vst [vmem:[#allocation132_spill] sm:$0xff] %v7312_v12  ;;  %v4525_v59 = vunpack.i.h.bf16 %v8915_v52  ;;  %v815_v39 = vsel %vm765_vm0, 1.0, %v750_v15 }
 0x1bf   : > { %1022 = vmatmul.f32.gmra.mxu0 %v814_v34  ;;  %v2463_v43 = vmul.f32 %v4760_v24, %v1181_v55  ;;  %v2462_v12 = vmul.f32 %v4759_v20, %v7239_v4  ;;  %v4240_v4 = vsel %vm2837_vm4, 1.0, %v8691_v16  ;;  %v4684_v24 = vunpack.i.l.bf16 %v7100_v3 }
 0x1c0   : > { %v975_v14 = vpop.f32.mrf.mxu0  ;;  %1231 = vmatmul.f32.gmra.mxu1 %v814_v34  ;;  %2736 = vmatmul.f32.gmra.mxu2 %v814_v34  ;;  %v4241_v34 = vsel %vm2838_vm13, 1.0, %v8691_v16  ;;  %vm2833_vm13 = vcmp.eq.s32.totalorder %v5082_v30, 2 }
 0x1c1   : > { %v1184_v49 = vpop.f32.mrf.mxu1  ;;  %v1824_v45 = vmul.f32 %v4604_v0, %v975_v14  ;;  %v4669_v0 = vunpack.i.l.bf16 %v7052_v5  ;;  %v7334_v27 = vadd.f32 %v2462_v12, %v7241_v32  ;;  %v7336_v40 = vadd.f32 %v2463_v43, %v1823_v19  ;;  %4972 = vperm.xlu0 %4518, %v4971_v29  }
 0x1c2   : > { %v2464_v47 = vmul.f32 %v4764_v26, %v1184_v49  ;;  %v4242_v5 = vsel %vm2839_vm14, 1.0, %v8691_v16  ;;  %v4243_v32 = vsel %vm2840_vm6, 1.0, %v8691_v16  ;;  %v4524_v19 = vunpack.i.l.bf16 %v8915_v52 }
 0x1c3   : > { %v4605_v12 = vunpack.i.h.bf16 %v8909_v9  ;;  %v7355_v20 = vpop.f32.mrf.mxu2  ;;  %v4685_v14 = vunpack.i.h.bf16 %v7100_v3  ;;  %v4765_v49 = vunpack.i.h.bf16 %v4763_v44  ;;  %v8918_v9 = vld [vmem:[#allocation152_spill] sm:$0xff]  ;;  %v1850_v43 = vmul.f32 %v4669_v0, %v8919_v63  ;;  %v8920_v0 = vld [vmem:[#allocation59_spill] sm:$0xff] }
 0x1c4   : > { %v7338_v55 = vadd.f32 %v2464_v47, %v1824_v45  ;;  %4977 = vperm.xlu2 %4520, %v4976_v10   ;;  %8917 = vst [vmem:[#allocation25_spill] sm:$0xff] %v7355_v20  ;;  %v7360_v36 = vpop.permute.xlu0 %4772  ;;  %v7362_v45 = vpop.permute.xlu1 %4777  ;;  %v1851_v29 = vmul.f32 %v4670_v62, %v8918_v9  ;;  %v4981_v15 = vpack.i.bf16 %v4242_v5, %v4243_v32  ;;  %v5081_v20 = vld [vmem:[%s5307_s12 + $0x188] sm:$0xff]  ;;  %v5083_v62 = vld [vmem:[%s5307_s12 + $0x198] sm:$0xff] }
 0x1c5   : > { %vm2834_vm3 = vcmp.eq.s32.totalorder %v5081_v20, 2  ;;  %vm2836_vm4 = vcmp.eq.s32.totalorder %v5083_v62, 2  ;;  %v2432_v9 = vmul.f32 %v4684_v24, %v8920_v0  ;;  %v4236_v24 = vsel %vm2833_vm13, 1.0, %v8691_v16 }
 0x1c6   : > { %8916 = vst [vmem:[#allocation29_spill] sm:$0xff] %v7338_v55  ;;  %v4828_v26 = vpop.permute.xlu2 %4827  ;;  %v4986_v55 = vpack.i.bf16 %v4240_v4, %v4241_v34  ;;  %v8921_v4 = vld [vmem:[#allocation65_spill] sm:$0xff]  ;;  %v4769_v20 = vunpack.i.l.bf16 %v7180_v57 }
 0x1c7   : > { %v4830_v10 = vunpack.i.h.bf16 %v4828_v26  ;;  %v4829_v50 = vunpack.i.l.bf16 %v4828_v26  ;;  %1025 = vmatmul.f32.gmra.mxu0 %v815_v39  ;;  %v2433_v34 = vmul.f32 %v4685_v14, %v8921_v4  ;;  %v4239_v14 = vsel %vm2836_vm4, 1.0, %v8691_v16  ;;  %v8927_v4 = vld [vmem:[#allocation66_spill] sm:$0xff] }
 0x1c8   : > { %v978_v47 = vpop.f32.mrf.mxu0  ;;  %1234 = vmatmul.f32.gmra.mxu1 %v815_v39  ;;  %2739 = vmatmul.f32.gmra.mxu2 %v815_v39  ;;  %v4238_v39 = vsel %vm2835_vm15, 1.0, %v8691_v16 }
 0x1c9   : > { %v1187_v52 = vpop.f32.mrf.mxu1  ;;  %v2490_v3 = vmul.f32 %v4829_v50, %v7151_v35  ;;  %v1825_v44 = vmul.f32 %v4605_v12, %v978_v47  ;;  %v2491_v26 = vmul.f32 %v4830_v10, %v7210_v21  ;;  %v751_v21 = vld [vmem:[%s5399_s20 + $0x190] sm:$0xff]  ;;  %v7380_v12 = vpop.f32.mrf.mxu3  ;;  %4982 = vperm.xlu0 %4518, %v4981_v15  }
 0x1ca   : > { %v2465_v18 = vmul.f32 %v4765_v49, %v1187_v52  ;;  %v8924_v49 = vld [vmem:[#allocation64_spill] sm:$0xff]  ;;  %v8925_v50 = vld [vmem:[#allocation58_spill] sm:$0xff]  ;;  %v816_v30 = vsel %vm765_vm0, 1.0, %v751_v21 }
 0x1cb   : > { %v7373_v5 = vadd.f32 %v2490_v3, %v1850_v43  ;;  %v7377_v32 = vadd.f32 %v2491_v26, %v1851_v29  ;;  %v1793_v10 = vmul.f32 %v4525_v59, %v8924_v49  ;;  %v1792_v63 = vmul.f32 %v4524_v19, %v8925_v50  ;;  %v8928_v21 = vld [vmem:[#allocation60_spill] sm:$0xff] }
 0x1cc   : > { %v7375_v35 = vadd.f32 %v2465_v18, %v1825_v44  ;;  %4987 = vperm.xlu2 %4520, %v4986_v55   ;;  %v4237_v18 = vsel %vm2834_vm3, 1.0, %v8691_v16  ;;  %v4609_v59 = vunpack.i.l.bf16 %v6910_v11  ;;  %v7395_v55 = vpop.f32.mrf.mxu2  ;;  %v7400_v15 = vpop.permute.xlu0 %4787  ;;  %v4700_v3 = vunpack.i.h.bf16 %v7148_v38 }
 0x1cd   : > { %8922 = vst [vmem:[#allocation134_spill] sm:$0xff] %v7373_v5  ;;  %v2496_v19 = vadd.f32 %v2432_v9, %v1792_v63  ;;  %v2497_v43 = vadd.f32 %v2433_v34, %v1793_v10  ;;  %v7402_v28 = vpop.permute.xlu1 %4792  ;;  %v4699_v44 = vunpack.i.l.bf16 %v7148_v38  ;;  %v4996_v0 = vpack.i.bf16 %v4236_v24, %v4237_v18  ;;  %v8929_v63 = vld [vmem:[#allocation127_spill] sm:$0xff]  ;;  %v8932_v18 = vld [vmem:[#allocation16_spill] sm:$0xff] }
 0x1ce   : > { %8923 = vst [vmem:[#allocation130_spill] sm:$0xff] %v7377_v32  ;;  %v4843_v29 = vpop.permute.xlu2 %4842  ;;  %v4991_v9 = vpack.i.bf16 %v4238_v39, %v4239_v14  ;;  %v4539_v5 = vunpack.i.l.bf16 %v8929_v63  ;;  %v752_v38 = vld [vmem:[%s5399_s20 + $0x198] sm:$0xff]  ;;  %v2439_v39 = vmul.f32 %v4700_v3, %v8932_v18 }
 0x1cf   : > { %v4845_v47 = vunpack.i.h.bf16 %v4843_v29  ;;  %v4844_v52 = vunpack.i.l.bf16 %v4843_v29  ;;  %8926 = vst [vmem:[#allocation135_spill] sm:$0xff] %v7402_v28  ;;  %1028 = vmatmul.f32.gmra.mxu0 %v816_v30  ;;  %v4540_v29 = vunpack.i.h.bf16 %v8929_v63  ;;  %v8933_v14 = vld [vmem:[#allocation87_spill] sm:$0xff]  ;;  %v817_v3 = vsel %vm765_vm0, 1.0, %v752_v38 }
 0x1d0   : > { %v981_v26 = vpop.f32.mrf.mxu0  ;;  %1237 = vmatmul.f32.gmra.mxu1 %v816_v30  ;;  %2742 = vmatmul.f32.gmra.mxu2 %v816_v30  ;;  %v8934_v30 = vld [vmem:[#allocation17_spill] sm:$0xff]  ;;  %v8939_v63 = vld [vmem:[#allocation23_spill] sm:$0xff] }
 0x1d1   : > { %v1190_v62 = vpop.f32.mrf.mxu1  ;;  %v3298_v34 = vmul.f32 %v4845_v47, %v8927_v4  ;;  %v3297_v49 = vmul.f32 %v4844_v52, %v8928_v21  ;;  %v1826_v10 = vmul.f32 %v4609_v59, %v981_v26  ;;  %v2438_v47 = vmul.f32 %v4699_v44, %v8933_v14  ;;  %4992 = vperm.xlu0 %4518, %v4991_v9   ;;  %v7421_v59 = vpop.f32.mrf.mxu3  ;;  %v8940_v38 = vld [vmem:[#allocation15_spill] sm:$0xff] }
 0x1d2   : > { %v2466_v50 = vmul.f32 %v4769_v20, %v1190_v62  ;;  %v1799_v20 = vmul.f32 %v4540_v29, %v8934_v30  ;;  %v4610_v44 = vunpack.i.h.bf16 %v6910_v11  ;;  %v4770_v62 = vunpack.i.h.bf16 %v7180_v57  ;;  %v753_v30 = vld [vmem:[%s5399_s20 + $0x1a0] sm:$0xff] }
 0x1d3   : > { %v7415_v28 = vadd.f32 %v3298_v34, %v2497_v43  ;;  %v7417_v24 = vadd.f32 %v3297_v49, %v2496_v19  ;;  %v8935_v43 = vld [vmem:[#allocation86_spill] sm:$0xff]  ;;  %v4714_v49 = vunpack.i.l.bf16 %v7196_v31  ;;  %v8942_v31 = vld [vmem:[#allocation91_spill] sm:$0xff] }
 0x1d4   : > { %v7412_v32 = vadd.f32 %v2466_v50, %v1826_v10  ;;  %4997 = vperm.xlu2 %4520, %v4996_v0   ;;  %v1798_v52 = vmul.f32 %v4539_v5, %v8935_v43  ;;  %v7429_v19 = vpop.f32.mrf.mxu2  ;;  %v7437_v4 = vpop.permute.xlu0 %4802  ;;  %v2503_v21 = vadd.f32 %v2439_v39, %v1799_v20  ;;  %v8943_v43 = vld [vmem:[#allocation56_spill] sm:$0xff] }
 0x1d5   : > { %8931 = vst [vmem:[#allocation104_spill] sm:$0xff] %v7417_v24  ;;  %v7439_v34 = vpop.permute.xlu1 %4807  ;;  %v2444_v20 = vmul.f32 %v4714_v49, %v8942_v31  ;;  %vm525_vm6 = vcmp.eq.s32.totalorder %v8943_v43, %v5386_v51  ;;  %v8950_v43 = vld [vmem:[#allocation92_spill] sm:$0xff] }
 0x1d6   : > { %8930 = vst [vmem:[#allocation103_spill] sm:$0xff] %v7412_v32  ;;  %v4858_v26 = vpop.permute.xlu2 %4857  ;;  %v2502_v5 = vadd.f32 %v2438_v47, %v1798_v52  ;;  %v8944_v52 = vld [vmem:[#allocation169_spill] sm:$0xff] }
 0x1d7   : > { %3426 = vst [vmem:[%s7423_s27 + $0x8] sm:$0xff] %v7415_v28  ;;  %v4860_v0 = vunpack.i.h.bf16 %v4858_v26  ;;  %v4859_v9 = vunpack.i.l.bf16 %v4858_v26  ;;  %1031 = vmatmul.f32.gmra.mxu0 %v817_v3  ;;  %v4664_v26 = vunpack.i.l.bf16 %v8944_v52 }
 0x1d8   : > { %8936 = vst [vmem:[#allocation123_spill] sm:$0xff] %v7429_v19  ;;  %v984_v10 = vpop.f32.mrf.mxu0  ;;  %1240 = vmatmul.f32.gmra.mxu1 %v817_v3  ;;  %2745 = vmatmul.f32.gmra.mxu2 %v817_v3  ;;  %v818_v3 = vsel %vm765_vm0, 1.0, %v753_v30  ;;  %v8949_v30 = vld [vmem:[#allocation53_spill] sm:$0xff] }
 0x1d9   : > { %3425 = vst [vmem:[%s7423_s27] sm:$0xff] %v7417_v24  ;;  %v1193_v50 = vpop.f32.mrf.mxu1  ;;  %v3304_v29 = vmul.f32 %v4860_v0, %v8939_v63  ;;  %v3303_v11 = vmul.f32 %v4859_v9, %v8940_v38  ;;  %v1827_v18 = vmul.f32 %v4610_v44, %v984_v10  ;;  %v8946_v0 = vld [vmem:[#allocation170_spill] sm:$0xff]  ;;  %v4012_v63 = vsel %vm525_vm6, 1.0, %v8691_v16 }
 0x1da   : > { %8937 = vst [vmem:[#allocation124_spill] sm:$0xff] %v7437_v4  ;;  %v2467_v57 = vmul.f32 %v4770_v62, %v1193_v50  ;;  %v4614_v9 = vunpack.i.l.bf16 %v8946_v0 }
 0x1db   : > { %8938 = vst [vmem:[#allocation96_spill] sm:$0xff] %v7439_v34  ;;  %v7447_v47 = vadd.f32 %v3304_v29, %v2503_v21  ;;  %v7449_v39 = vadd.f32 %v3303_v11, %v2502_v5  ;;  %v4774_v5 = vunpack.i.l.bf16 %v7360_v36  ;;  %v8948_v29 = vld [vmem:[#allocation143_spill] sm:$0xff] }
 0x1dc   : > { %v7444_v14 = vadd.f32 %v2467_v57, %v1827_v18  ;;  %v7457_v44 = vpop.f32.mrf.mxu2  ;;  %v7465_v10 = vpop.permute.xlu0 %4817  ;;  %v2508_v38 = vadd.f32 %v2444_v20, %v8948_v29  ;;  %v754_v29 = vld [vmem:[%s5399_s20 + $0x1a8] sm:$0xff] }
 0x1dd   : > { %3432 = vst [vmem:[%s7423_s27 + $0x38] sm:$0xff] %v7447_v47  ;;  %v7467_v50 = vpop.permute.xlu1 %4822 }
 0x1de   : > { %8941 = vst [vmem:[#allocation112_spill] sm:$0xff] %v7444_v14  ;;  %v4873_v62 = vpop.permute.xlu2 %4872  ;;  %v4824_v11 = vunpack.i.l.bf16 %v7467_v50 }
 0x1df   : > { %8945 = vst [vmem:[#allocation102_spill] sm:$0xff] %v7457_v44  ;;  %v4875_v21 = vunpack.i.h.bf16 %v4873_v62  ;;  %v4874_v49 = vunpack.i.l.bf16 %v4873_v62  ;;  %1034 = vmatmul.f32.gmra.mxu0 %v818_v3  ;;  %v7474_v62 = vpop.f32.mrf.mxu3  ;;  %3585 = vxpose.xlu1.b32.start [1/16] (narrow) %v4012_v63, 8 }
 0x1e0   : > { %3431 = vst [vmem:[%s7423_s27 + $0x30] sm:$0xff] %v7449_v39  ;;  %v987_v18 = vpop.f32.mrf.mxu0  ;;  %v2488_v44 = vmul.f32 %v4824_v11, %v7066_v61  ;;  %1243 = vmatmul.f32.gmra.mxu1 %v818_v3  ;;  %2748 = vmatmul.f32.gmra.mxu2 %v818_v3  ;;  %v4679_v61 = vunpack.i.l.bf16 %v6935_v56 }
 0x1e1   : > { %8947 = vst [vmem:[#allocation122_spill] sm:$0xff] %v7465_v10  ;;  %v1196_v57 = vpop.f32.mrf.mxu1  ;;  %v3308_v31 = vmul.f32 %v4875_v21, %v8949_v30  ;;  %v3309_v34 = vmul.f32 %v4874_v49, %v8950_v43  ;;  %v1828_v4 = vmul.f32 %v4614_v9, %v987_v18  ;;  %v8952_v10 = vld [vmem:[#allocation117_spill] sm:$0xff]  ;;  %v8954_v49 = vld [vmem:[#allocation40_spill] sm:$0xff] }
 0x1e2   : > { %v2468_v32 = vmul.f32 %v4774_v5, %v1196_v57  ;;  %8951 = vst [vmem:[#allocation121_spill] sm:$0xff] %v7474_v62  ;;  %v1848_v14 = vmul.f32 %v4664_v26, %v8952_v10  ;;  %vm526_vm14 = vcmp.eq.s32.totalorder %v8954_v49, %v5386_v51  ;;  %v4680_v26 = vunpack.i.h.bf16 %v6935_v56  ;;  %v8955_v49 = vld [vmem:[#allocation164_spill] sm:$0xff]  ;;  %v8956_v62 = vld [vmem:[#allocation63_spill] sm:$0xff] }
 0x1e3   : > { %v7481_v21 = vadd.f32 %v3309_v34, %v2508_v38  ;;  %v7484_v9 = vadd.f32 %v3308_v31, %v7032_v6  ;;  %v819_v6 = vsel %vm765_vm0, 1.0, %v754_v29  ;;  %v4013_v63 = vsel %vm526_vm14, 1.0, %v8691_v16 }
 0x1e4   : > { %v7478_v20 = vadd.f32 %v2468_v32, %v1828_v4  ;;  %v7486_v5 = vadd.f32 %v2488_v44, %v1848_v14  ;;  %v4674_v32 = vunpack.i.l.bf16 %v7054_v54  ;;  %v7495_v4 = vpop.f32.mrf.mxu2  ;;  %v7501_v3 = vpop.permute.xlu0 %4832  ;;  %v1854_v30 = vmul.f32 %v4679_v61, %v6961_v53  ;;  %v755_v53 = vld [vmem:[%s5399_s20 + $0x1b0] sm:$0xff] }
 0x1e5   : > { %3437 = vst [vmem:[%s7423_s27 + $0x60] sm:$0xff] %v7481_v21  ;;  %v4838_v10 = vpop.permute.xlu1 %4837  ;;  %v4834_v56 = vunpack.i.l.bf16 %v7501_v3  ;;  %v1855_v31 = vmul.f32 %v4680_v26, %v7019_v13  ;;  %vm527_vm15 = vcmp.eq.s32.totalorder %v8956_v62, %v5386_v51  ;;  %v8963_v62 = vld [vmem:[#allocation62_spill] sm:$0xff] }
 0x1e6   : > { %8953 = vst [vmem:[#allocation142_spill] sm:$0xff] %v7486_v5  ;;  %v4888_v34 = vpop.permute.xlu2 %4887  ;;  %v4840_v38 = vunpack.i.h.bf16 %v4838_v10  ;;  %v4839_v11 = vunpack.i.l.bf16 %v4838_v10  ;;  %vm528_vm3 = vcmp.eq.s32.totalorder %v8963_v62, %v5386_v51  ;;  %v4014_v26 = vsel %vm527_vm15, 1.0, %v8691_v16 }
 0x1e7   : > { %3436 = vst [vmem:[%s7423_s27 + $0x58] sm:$0xff] %v7484_v9  ;;  %v4890_v14 = vunpack.i.h.bf16 %v4888_v34  ;;  %v4889_v44 = vunpack.i.l.bf16 %v4888_v34  ;;  %1037 = vmatmul.f32.gmra.mxu0 %v819_v6  ;;  %v1852_v34 = vmul.f32 %v4674_v32, %v8955_v49  ;;  %v2492_v19 = vmul.f32 %v4834_v56, %v7268_v17  ;;  %3586 = vxpose.xlu1.b32.cont [2/16] (narrow) %v4013_v63, 8  ;;  %v7520_v13 = vpop.f32.mrf.mxu3 }
 0x1e8   : > { %v7505_v18 = vpop.f32.mrf.mxu0  ;;  %v2494_v10 = vmul.f32 %v4839_v11, %v7380_v12  ;;  %v2495_v5 = vmul.f32 %v4840_v38, %v7421_v59  ;;  %1246 = vmatmul.f32.gmra.mxu1 %v819_v6  ;;  %2751 = vmatmul.f32.gmra.mxu2 %v819_v6  ;;  %8957 = vst [vmem:[#allocation114_spill] sm:$0xff] %v7520_v13 }
 0x1e9   : > { %v7507_v57 = vpop.f32.mrf.mxu1  ;;  %v3325_v43 = vmul.f32 %v4890_v14, %v7178_v48  ;;  %v3326_v29 = vmul.f32 %v4889_v44, %v7224_v42  ;;  %v7528_v17 = vadd.f32 %v2492_v19, %v1852_v34  ;;  %v8964_v19 = vld [vmem:[#allocation146_spill] sm:$0xff] }
 0x1ea   : > { %v7530_v12 = vadd.f32 %v2494_v10, %v1854_v30  ;;  %v7532_v59 = vadd.f32 %v2495_v5, %v1855_v31  ;;  %v4619_v32 = vunpack.i.l.bf16 %v8964_v19  ;;  %v4779_v5 = vunpack.i.l.bf16 %v7362_v45 }
 0x1eb   : > { %v7523_v48 = vadd.f32 %v3326_v29, %v7204_v23  ;;  %v7526_v42 = vadd.f32 %v3325_v43, %v7160_v8  ;;  %8960 = vst [vmem:[#allocation166_spill] sm:$0xff] %v7528_v17  ;;  %v820_v8 = vsel %vm765_vm0, 1.0, %v755_v53  ;;  %v8965_v29 = vld [vmem:[#allocation54_spill] sm:$0xff] }
 0x1ec   : > { %8961 = vst [vmem:[#allocation167_spill] sm:$0xff] %v7530_v12  ;;  %v7539_v61 = vpop.f32.mrf.mxu2  ;;  %v4848_v44 = vpop.permute.xlu0 %4847  ;;  %vm557_vm13 = vcmp.eq.s32.totalorder %v8965_v29, %v5386_v51  ;;  %v8977_v29 = vld [vmem:[#allocation94_spill] sm:$0xff] }
 0x1ed   : > { %8958 = vst [vmem:[#allocation113_spill] sm:$0xff] %v7523_v48  ;;  %v4853_v63 = vpop.permute.xlu1 %4852  ;;  %v4850_v56 = vunpack.i.h.bf16 %v4848_v44  ;;  %v4849_v38 = vunpack.i.l.bf16 %v4848_v44 }
 0x1ee   : > { %8959 = vst [vmem:[#allocation139_spill] sm:$0xff] %v7526_v42  ;;  %v4903_v23 = vpop.permute.xlu2 %4902  ;;  %v4855_v11 = vunpack.i.h.bf16 %v4853_v63  ;;  %v4854_v30 = vunpack.i.l.bf16 %v4853_v63 }
 0x1ef   : > { %8962 = vst [vmem:[#allocation149_spill] sm:$0xff] %v7532_v59  ;;  %v4905_v6 = vunpack.i.h.bf16 %v4903_v23  ;;  %v4904_v14 = vunpack.i.l.bf16 %v4903_v23  ;;  %1040 = vmatmul.f32.gmra.mxu0 %v820_v8  ;;  %v8966_v23 = vld [vmem:[#allocation78_spill] sm:$0xff]  ;;  %v8967_v59 = vld [vmem:[#allocation9_spill] sm:$0xff]  ;;  %3587 = vxpose.xlu1.b32.cont [3/16] (narrow) %v4014_v26, 8  ;;  %v7574_v26 = vpop.f32.mrf.mxu3 }
 0x1f0   : > { %3454 = vst [vmem:[%s7423_s27 + $0xe8] sm:$0xff] %v7523_v48  ;;  %v993_v31 = vpop.f32.mrf.mxu0  ;;  %v3300_v12 = vmul.f32 %v4850_v56, %v8966_v23  ;;  %v3302_v44 = vmul.f32 %v4855_v11, %v8967_v59  ;;  %v8969_v48 = vld [vmem:[#allocation72_spill] sm:$0xff]  ;;  %1249 = vmatmul.f32.gmra.mxu1 %v820_v8  ;;  %2754 = vmatmul.f32.gmra.mxu2 %v820_v8  ;;  %v4620_v8 = vunpack.i.h.bf16 %v8964_v19 }
 0x1f1   : > { %3453 = vst [vmem:[%s7423_s27 + $0xe0] sm:$0xff] %v7526_v42  ;;  %v1202_v43 = vpop.f32.mrf.mxu1  ;;  %v3320_v49 = vmul.f32 %v4904_v14, %v6968_v22  ;;  %v1830_v34 = vmul.f32 %v4619_v32, %v993_v31  ;;  %v3319_v53 = vmul.f32 %v4905_v6, %v6933_v37  ;;  %v8968_v42 = vld [vmem:[#allocation82_spill] sm:$0xff]  ;;  %v3299_v13 = vmul.f32 %v4849_v38, %v8969_v48  ;;  %v756_v22 = vld [vmem:[%s5399_s20 + $0x1b8] sm:$0xff]  ;;  %v8972_v37 = vld [vmem:[#allocation177_spill] sm:$0xff] }
 0x1f2   : > { %v2470_v10 = vmul.f32 %v4779_v5, %v1202_v43  ;;  %v3301_v63 = vmul.f32 %v4854_v30, %v8968_v42  ;;  %v7562_v5 = vadd.f32 %v3302_v44, %v8972_v37  ;;  %v8973_v6 = vld [vmem:[#allocation176_spill] sm:$0xff]  ;;  %v4015_v48 = vsel %vm528_vm3, 1.0, %v8691_v16  ;;  %8975 = vst [vmem:[#allocation155_spill] sm:$0xff] %v7574_v26  ;;  %v8984_v26 = vld [vmem:[#allocation109_spill] sm:$0xff] }
 0x1f3   : > { %v7559_v32 = vadd.f32 %v3320_v49, %v7121_v41  ;;  %v8974_v59 = vld [vmem:[#allocation108_spill] sm:$0xff]  ;;  %v4044_v41 = vsel %vm557_vm13, 1.0, %v8691_v16  ;;  %v821_v62 = vsel %vm765_vm0, 1.0, %v756_v22  ;;  %v7593_v19 = vadd.f32 %v3299_v13, %v8977_v29 }
 0x1f4   : > { %v7555_v24 = vadd.f32 %v2470_v10, %v1830_v34  ;;  %v7565_v14 = vadd.f32 %v3301_v63, %v8973_v6  ;;  %v7568_v42 = vadd.f32 %v3300_v12, %v8974_v59  ;;  %v4780_v12 = vunpack.i.h.bf16 %v7362_v45  ;;  %v7584_v56 = vpop.f32.mrf.mxu2  ;;  %3430 = vst [vmem:[%s7423_s27 + $0x28] sm:$0xff] %v7562_v5  ;;  %3649 = vxpose.xlu0.b32.start [1/16] (narrow) %v4044_v41, 8  ;;  %v4863_v31 = vpop.permute.xlu0 %4862  ;;  %v8978_v45 = vld [vmem:[#allocation120_spill] sm:$0xff] }
 0x1f5   : > { %8971 = vst [vmem:[#allocation165_spill] sm:$0xff] %v7559_v32  ;;  %v4868_v43 = vpop.permute.xlu1 %4867  ;;  %v7596_v49 = vadd.f32 %v3319_v53, %v8978_v45  ;;  %v4865_v34 = vunpack.i.h.bf16 %v4863_v31  ;;  %v4864_v10 = vunpack.i.l.bf16 %v4863_v31  ;;  %v8979_v37 = vld [vmem:[#allocation48_spill] sm:$0xff] }
 0x1f6   : > { %8970 = vst [vmem:[#allocation150_spill] sm:$0xff] %v7555_v24  ;;  %v4918_v38 = vpop.permute.xlu2 %4917  ;;  %v4870_v23 = vunpack.i.h.bf16 %v4868_v43  ;;  %v4869_v44 = vunpack.i.l.bf16 %v4868_v43  ;;  %vm558_vm0 = vcmp.eq.s32.totalorder %v8979_v37, %v5386_v51  ;;  %v8980_v6 = vld [vmem:[#allocation136_spill] sm:$0xff]  ;;  %v8983_v43 = vld [vmem:[#allocation99_spill] sm:$0xff]  ;;  %v8985_v24 = vld [vmem:[#allocation125_spill] sm:$0xff] }
 0x1f7   : > { %3448 = vst [vmem:[%s7423_s27 + $0xb8] sm:$0xff] %v7559_v32  ;;  %v4920_v11 = vunpack.i.h.bf16 %v4918_v38  ;;  %v4919_v30 = vunpack.i.l.bf16 %v4918_v38  ;;  %1043 = vmatmul.f32.gmra.mxu0 %v821_v62  ;;  %v8981_v53 = vld [vmem:[#allocation116_spill] sm:$0xff]  ;;  %3588 = vxpose.xlu1.b32.cont [4/16] (narrow) %v4015_v48, 8 }
 0x1f8   : > { %8976 = vst [vmem:[#allocation160_spill] sm:$0xff] %v7584_v56  ;;  %v996_v63 = vpop.f32.mrf.mxu0  ;;  %v3312_v38 = vmul.f32 %v4865_v34, %v8981_v53  ;;  %v8982_v29 = vld [vmem:[#allocation24_spill] sm:$0xff]  ;;  %v3310_v45 = vmul.f32 %v4870_v23, %v8983_v43  ;;  %v3311_v32 = vmul.f32 %v4869_v44, %v8984_v26  ;;  %1252 = vmatmul.f32.gmra.mxu1 %v821_v62  ;;  %v7649_v43 = vpop.f32.mrf.mxu3 }
 0x1f9   : > { %3429 = vst [vmem:[%s7423_s27 + $0x20] sm:$0xff] %v7565_v14  ;;  %v1205_v22 = vpop.f32.mrf.mxu1  ;;  %v3314_v59 = vmul.f32 %v4919_v30, %v8980_v6  ;;  %v1831_v41 = vmul.f32 %v4620_v8, %v996_v63  ;;  %v3305_v31 = vmul.f32 %v4864_v10, %v8982_v29  ;;  %v3313_v56 = vmul.f32 %v4920_v11, %v8985_v24  ;;  %v8986_v8 = vld [vmem:[#allocation98_spill] sm:$0xff]  ;;  %v8987_v48 = vld [vmem:[#allocation76_spill] sm:$0xff]  ;;  %v8990_v63 = vld [vmem:[#allocation97_spill] sm:$0xff] }
 0x1fa   : > { %3428 = vst [vmem:[%s7423_s27 + $0x18] sm:$0xff] %v7568_v42  ;;  %v2471_v13 = vmul.f32 %v4780_v12, %v1205_v22  ;;  %2757 = vmatmul.f32.gmra.mxu2 %v821_v62  ;;  %v3376_v30 = vadd.f32 %v3312_v38, %v7216_v2  ;;  %v3375_v34 = vadd.f32 %v3311_v32, %v7219_v33  ;;  %v8988_v62 = vld [vmem:[#allocation44_spill] sm:$0xff]  ;;  %v4045_v2 = vsel %vm558_vm0, 1.0, %v8691_v16  ;;  %v8991_v29 = vld [vmem:[#allocation69_spill] sm:$0xff] }
 0x1fb   : > { %3427 = vst [vmem:[%s7423_s27 + $0x10] sm:$0xff] %v7593_v19  ;;  %v7613_v12 = vadd.f32 %v3314_v59, %v8986_v8  ;;  %v3374_v26 = vadd.f32 %v3310_v45, %v7213_v46  ;;  %v7621_v24 = vadd.f32 %v3305_v31, %v8987_v48  ;;  %vm529_vm4 = vcmp.eq.s32.totalorder %v8988_v62, %v5386_v51  ;;  %v8989_v32 = vld [vmem:[#allocation172_spill] sm:$0xff]  ;;  %v8992_v45 = vld [vmem:[#allocation31_spill] sm:$0xff]  ;;  %v8993_v8 = vld [vmem:[#allocation37_spill] sm:$0xff] }
 0x1fc   : > { %v7608_v17 = vadd.f32 %v2471_v13, %v1831_v41  ;;  %3447 = vst [vmem:[%s7423_s27 + $0xb0] sm:$0xff] %v7596_v49  ;;  %3681 = vmatpush.msra.mxu3 %v3376_v30  ;;  %v7632_v33 = vpop.f32.mrf.mxu2  ;;  %v4624_v11 = vunpack.i.l.bf16 %v8989_v32  ;;  %v4784_v10 = vunpack.i.l.bf16 %v7226_v58  ;;  %3650 = vxpose.xlu0.b32.cont [2/16] (narrow) %v4045_v2, 8  ;;  %v4878_v23 = vpop.permute.xlu0 %4877  ;;  %v7640_v22 = vadd.f32 %v3313_v56, %v8990_v63 }
 0x1fd   : > { %3442 = vst [vmem:[%s7423_s27 + $0x88] sm:$0xff] %v7613_v12  ;;  %v4883_v44 = vpop.permute.xlu1 %4882  ;;  %v4880_v37 = vunpack.i.h.bf16 %v4878_v23  ;;  %v4879_v6 = vunpack.i.l.bf16 %v4878_v23  ;;  %v4016_v38 = vsel %vm529_vm4, 1.0, %v8691_v16  ;;  %vm530_vm6 = vcmp.eq.s32.totalorder %v8991_v29, %v5386_v51 }
 0x1fe   : > { %3440 = vst [vmem:[%s7423_s27 + $0x78] sm:$0xff] %v3376_v30  ;;  %v7634_v46 = vpop.permute.xlu2 %4932  ;;  %v4885_v59 = vunpack.i.h.bf16 %v4883_v44  ;;  %v4884_v41 = vunpack.i.l.bf16 %v4883_v44  ;;  %3682 = vmatpush.msra.mxu3 %v3375_v34  ;;  %vm559_vm14 = vcmp.eq.s32.totalorder %v8992_v45, %v5386_v51  ;;  %v4615_v2 = vunpack.i.h.bf16 %v8946_v0  ;;  %v8995_v44 = vld [vmem:[#allocation115_spill] sm:$0xff]  ;;  %v8997_v0 = vld [vmem:[#allocation68_spill] sm:$0xff] }
 0x1ff   : > { %3439 = vst [vmem:[%s7423_s27 + $0x70] sm:$0xff] %v3375_v34  ;;  %v3306_v30 = vmul.f32 %v4880_v37, %v8993_v8  ;;  %v8994_v34 = vld [vmem:[#allocation41_spill] sm:$0xff]  ;;  %3589 = vxpose.xlu1.b32.cont [5/16] (narrow) %v4016_v38, 8  ;;  %v4775_v23 = vunpack.i.h.bf16 %v7360_v36  ;;  %v8996_v37 = vld [vmem:[#allocation106_spill] sm:$0xff]  ;;  %vm531_vm15 = vcmp.eq.s32.totalorder %v8997_v0, %v5386_v51 }
 0x200   : > { %v999_v13 = vpop.f32.mrf.mxu0  ;;  %3438 = vst [vmem:[%s7423_s27 + $0x68] sm:$0xff] %v3374_v26  ;;  %v3307_v48 = vmul.f32 %v4879_v6, %v8994_v34  ;;  %v3328_v62 = vmul.f32 %v4884_v41, %v7310_v60  ;;  %3683 = vmatpush.msra.mxu3 %v3374_v26  ;;  %v4017_v26 = vsel %vm530_vm6, 1.0, %v8691_v16 }
 0x201   : > { %v1208_v53 = vpop.f32.mrf.mxu1  ;;  %v1832_v31 = vmul.f32 %v4624_v11, %v999_v13  ;;  %3433 = vst [vmem:[%s7423_s27 + $0x40] sm:$0xff] %v7621_v24  ;;  %v3327_v11 = vmul.f32 %v4885_v59, %v7270_v25  ;;  %v7669_v6 = vadd.f32 %v3306_v30, %v8996_v37  ;;  %v1829_v25 = vmul.f32 %v4615_v2, %v7505_v18  ;;  %v8998_v59 = vld [vmem:[#allocation90_spill] sm:$0xff] }
 0x202   : > { %v2472_v56 = vmul.f32 %v4784_v10, %v1208_v53  ;;  %3441 = vst [vmem:[%s7423_s27 + $0x80] sm:$0xff] %v7640_v22  ;;  %v7666_v63 = vadd.f32 %v3307_v48, %v8995_v44  ;;  %v7672_v60 = vadd.f32 %v3328_v62, %v7336_v40  ;;  %v2469_v36 = vmul.f32 %v4775_v23, %v7507_v57  ;;  %v9001_v37 = vld [vmem:[#allocation126_spill] sm:$0xff] }
 0x203   : > { %3684 = vmatpush.msra.mxu3 %v7481_v21  ;;  %v4046_v40 = vsel %vm559_vm14, 1.0, %v8691_v16  ;;  %vm560_vm3 = vcmp.eq.s32.totalorder %v8998_v59, %v5386_v51  ;;  %v4625_v18 = vunpack.i.h.bf16 %v8989_v32  ;;  %v4785_v21 = vunpack.i.h.bf16 %v7226_v58  ;;  %3434 = vst [vmem:[%s7423_s27 + $0x48] sm:$0xff] %v7669_v6  ;;  %v9007_v59 = vld [vmem:[#allocation141_spill] sm:$0xff] }
 0x204   : > { %v7661_v10 = vadd.f32 %v2472_v56, %v1832_v31  ;;  %v7690_v41 = vpop.f32.mrf.mxu2  ;;  %3435 = vst [vmem:[%s7423_s27 + $0x50] sm:$0xff] %v7666_v63  ;;  %3651 = vxpose.xlu0.b32.cont [3/16] (narrow) %v4046_v40, 8  ;;  %v4893_v38 = vpop.permute.xlu0 %4892  ;;  %v7699_v31 = vadd.f32 %v3327_v11, %v7334_v27  ;;  %v2533_v58 = vadd.f32 %v2469_v36, %v1829_v25  ;;  %v8999_v27 = vld [vmem:[#allocation107_spill] sm:$0xff]  ;;  %v9000_v11 = vld [vmem:[#allocation105_spill] sm:$0xff] }
 0x205   : > { %3685 = vmatpush.msra.mxu3 %v7484_v9  ;;  %v4898_v29 = vpop.permute.xlu1 %4897  ;;  %v4895_v32 = vunpack.i.h.bf16 %v4893_v38  ;;  %v4894_v56 = vunpack.i.l.bf16 %v4893_v38  ;;  %3456 = vst [vmem:[%s7423_s27 + $0xf8] sm:$0xff] %v7672_v60 }
 0x206   : > { %v4948_v57 = vpop.permute.xlu2 %4947  ;;  %v4900_v45 = vunpack.i.h.bf16 %v4898_v29  ;;  %v4899_v8 = vunpack.i.l.bf16 %v4898_v29  ;;  %3455 = vst [vmem:[%s7423_s27 + $0xf0] sm:$0xff] %v7699_v31 }
 0x207   : > { %v4950_v13 = vunpack.i.h.bf16 %v4948_v57  ;;  %v4949_v53 = vunpack.i.l.bf16 %v4948_v57  ;;  %3686 = vmatpush.msra.mxu3 %v7666_v63  ;;  %v3323_v23 = vmul.f32 %v4895_v32, %v8999_v27  ;;  %v3324_v44 = vmul.f32 %v4894_v56, %v9000_v11  ;;  %3590 = vxpose.xlu1.b32.cont [6/16] (narrow) %v4017_v26, 8  ;;  %v9002_v57 = vld [vmem:[#allocation178_spill] sm:$0xff]  ;;  %v9003_v26 = vld [vmem:[#allocation133_spill] sm:$0xff] }
 0x208   : > { %v1002_v30 = vpop.f32.mrf.mxu0  ;;  %v3322_v40 = vmul.f32 %v4899_v8, %v9001_v37  ;;  %v3321_v38 = vmul.f32 %v4900_v45, %v9002_v57  ;;  %v4789_v56 = vunpack.i.l.bf16 %v7400_v15 }
 0x209   : > { %v1211_v34 = vpop.f32.mrf.mxu1  ;;  %v3334_v9 = vmul.f32 %v4949_v53, %v7539_v61  ;;  %v1833_v48 = vmul.f32 %v4625_v18, %v1002_v30  ;;  %v3333_v2 = vmul.f32 %v4950_v13, %v7495_v4  ;;  %3687 = vmatpush.msra.mxu3 %v7669_v6  ;;  %v7713_v61 = vpop.f32.mrf.mxu3  ;;  %v7720_v25 = vadd.f32 %v3324_v44, %v7299_v7  ;;  %v9005_v7 = vld [vmem:[#allocation89_spill] sm:$0xff] }
 0x20a   : > { %v2473_v62 = vmul.f32 %v4785_v21, %v1211_v34  ;;  %v7723_v36 = vadd.f32 %v3323_v23, %v7302_v1  ;;  %v7726_v18 = vadd.f32 %v3322_v40, %v9003_v26  ;;  %v9004_v21 = vld [vmem:[#allocation50_spill] sm:$0xff]  ;;  %v4018_v13 = vsel %vm531_vm15, 1.0, %v8691_v16  ;;  %v9006_v53 = vld [vmem:[#allocation173_spill] sm:$0xff] }
 0x20b   : > { %v7717_v4 = vadd.f32 %v3334_v9, %v2533_v58  ;;  %vm532_vm13 = vcmp.eq.s32.totalorder %v9004_v21, %v5386_v51  ;;  %3688 = vmatpush.msra.mxu3 %v7621_v24  ;;  %vm561_vm0 = vcmp.eq.s32.totalorder %v9005_v7, %v5386_v51  ;;  %v4047_v1 = vsel %vm560_vm3, 1.0, %v8691_v16  ;;  %3452 = vst [vmem:[%s7423_s27 + $0xd8] sm:$0xff] %v7720_v25  ;;  %v9017_v7 = vld [vmem:[#allocation70_spill] sm:$0xff] }
 0x20c   : > { %v7710_v29 = vadd.f32 %v2473_v62, %v1833_v48  ;;  %v4629_v32 = vunpack.i.l.bf16 %v9006_v53  ;;  %v7745_v45 = vpop.f32.mrf.mxu2  ;;  %3652 = vxpose.xlu0.b32.cont [4/16] (narrow) %v4047_v1, 8  ;;  %v4908_v30 = vpop.permute.xlu0 %4907  ;;  %3451 = vst [vmem:[%s7423_s27 + $0xd0] sm:$0xff] %v7723_v36  ;;  %v7753_v58 = vadd.f32 %v3321_v38, %v9007_v59  ;;  %v7756_v9 = vadd.f32 %v3333_v2, %v7478_v20  ;;  %v9008_v20 = vld [vmem:[#allocation162_spill] sm:$0xff]  ;;  %v9009_v38 = vld [vmem:[#allocation168_spill] sm:$0xff]  ;;  %v9010_v1 = vld [vmem:[#allocation145_spill] sm:$0xff] }
 0x20d   : > { %3462 = vst [vmem:[%s7423_s27 + $0x128] sm:$0xff] %v7717_v4  ;;  %3689 = vmatpush.msra.mxu3 %v7447_v47  ;;  %v4913_v34 = vpop.permute.xlu1 %4912  ;;  %v4910_v48 = vunpack.i.h.bf16 %v4908_v30  ;;  %v4909_v62 = vunpack.i.l.bf16 %v4908_v30  ;;  %v4835_v44 = vunpack.i.h.bf16 %v7501_v3  ;;  %v9011_v30 = vld [vmem:[#allocation153_spill] sm:$0xff]  ;;  %v4675_v59 = vunpack.i.h.bf16 %v7054_v54 }
 0x20e   : > { %v4958_v0 = vpop.permute.xlu2 %4957  ;;  %v4915_v27 = vunpack.i.h.bf16 %v4913_v34  ;;  %v4914_v23 = vunpack.i.l.bf16 %v4913_v34  ;;  %3450 = vst [vmem:[%s7423_s27 + $0xc8] sm:$0xff] %v7726_v18  ;;  %v4019_v54 = vsel %vm532_vm13, 1.0, %v8691_v16 }
 0x20f   : > { %v4960_v24 = vunpack.i.h.bf16 %v4958_v0  ;;  %v4959_v8 = vunpack.i.l.bf16 %v4958_v0  ;;  %3690 = vmatpush.msra.mxu3 %v7449_v39  ;;  %v3317_v2 = vmul.f32 %v4910_v48, %v9008_v20  ;;  %v3318_v26 = vmul.f32 %v4909_v62, %v9009_v38  ;;  %3591 = vxpose.xlu1.b32.cont [7/16] (narrow) %v4018_v13, 8  ;;  %3449 = vst [vmem:[%s7423_s27 + $0xc0] sm:$0xff] %v7753_v58  ;;  %v9012_v39 = vld [vmem:[#allocation25_spill] sm:$0xff]  ;;  %v9014_v48 = vld [vmem:[#allocation138_spill] sm:$0xff] }
 0x210   : > { %v1005_v11 = vpop.f32.mrf.mxu0  ;;  %v3315_v0 = vmul.f32 %v4915_v27, %v9010_v1  ;;  %v3316_v34 = vmul.f32 %v4914_v23, %v9011_v30  ;;  %v9015_v13 = vld [vmem:[#allocation77_spill] sm:$0xff]  ;;  %3461 = vst [vmem:[%s7423_s27 + $0x120] sm:$0xff] %v7756_v9  ;;  %v4630_v23 = vunpack.i.h.bf16 %v9006_v53  ;;  %v9019_v1 = vld [vmem:[#allocation171_spill] sm:$0xff] }
 0x211   : > { %v1214_v47 = vpop.f32.mrf.mxu1  ;;  %v3330_v37 = vmul.f32 %v4959_v8, %v7395_v55  ;;  %v1834_v40 = vmul.f32 %v4629_v32, %v1005_v11  ;;  %3691 = vmatpush.msra.mxu3 %v7562_v5  ;;  %v3329_v32 = vmul.f32 %v4960_v24, %v9012_v39  ;;  %v7779_v62 = vadd.f32 %v3317_v2, %v9014_v48  ;;  %v2776_v24 = vpop.f32.mrf.mxu3  ;;  %v9020_v30 = vld [vmem:[#allocation29_spill] sm:$0xff] }
 0x212   : > { %v2474_v57 = vmul.f32 %v4789_v56, %v1214_v47  ;;  %v9013_v56 = vld [vmem:[#allocation71_spill] sm:$0xff]  ;;  %v7782_v27 = vadd.f32 %v3316_v34, %v9015_v13  ;;  %v4935_v5 = vunpack.i.h.bf16 %v7634_v46  ;;  %v4790_v11 = vunpack.i.h.bf16 %v7400_v15  ;;  %v9016_v47 = vld [vmem:[#allocation129_spill] sm:$0xff] }
 0x213   : > { %v7772_v55 = vadd.f32 %v3330_v37, %v7375_v35  ;;  %v7776_v8 = vadd.f32 %v3318_v26, %v9013_v56  ;;  %v4048_v35 = vsel %vm561_vm0, 1.0, %v8691_v16  ;;  %3692 = vmatpush.msra.mxu3 %v7565_v14  ;;  %v2493_v21 = vmul.f32 %v4835_v44, %v9016_v47  ;;  %3445 = vst [vmem:[%s7423_s27 + $0xa0] sm:$0xff] %v7779_v62  ;;  %v9018_v44 = vld [vmem:[#allocation75_spill] sm:$0xff]  ;;  %v9025_v47 = vld [vmem:[#allocation104_spill] sm:$0xff] }
 0x214   : > { %v2538_v3 = vadd.f32 %v2474_v57, %v1834_v40  ;;  %v2719_v37 = vpop.f32.mrf.mxu2  ;;  %v7804_v57 = vadd.f32 %v3315_v0, %v9017_v7  ;;  %v4825_v14 = vunpack.i.h.bf16 %v7467_v50  ;;  %3653 = vxpose.xlu0.b32.cont [5/16] (narrow) %v4048_v35, 8  ;;  %v7808_v53 = vpop.permute.xlu0 %4922  ;;  %vm533_vm4 = vcmp.eq.s32.totalorder %v9018_v44, %v5386_v51  ;;  %3444 = vst [vmem:[%s7423_s27 + $0x98] sm:$0xff] %v7782_v27  ;;  %v9027_v7 = vld [vmem:[#allocation135_spill] sm:$0xff] }
 0x215   : > { %3458 = vst [vmem:[%s7423_s27 + $0x108] sm:$0xff] %v7772_v55  ;;  %3693 = vmatpush.msra.mxu3 %v7568_v42  ;;  %v3339_v20 = vmul.f32 %v4935_v5, %v2719_v37  ;;  %v7810_v15 = vpop.permute.xlu1 %4927  ;;  %v4665_v26 = vunpack.i.h.bf16 %v8944_v52  ;;  %v1853_v50 = vmul.f32 %v4675_v59, %v9019_v1  ;;  %v7821_v34 = vadd.f32 %v3329_v32, %v9020_v30  ;;  %v9021_v52 = vld [vmem:[#allocation35_spill] sm:$0xff]  ;;  %v9022_v32 = vld [vmem:[#allocation128_spill] sm:$0xff]  ;;  %v9026_v37 = vld [vmem:[#allocation154_spill] sm:$0xff] }
 0x216   : > { %v4968_v40 = vpop.permute.xlu2 %4967  ;;  %3446 = vst [vmem:[%s7423_s27 + $0xa8] sm:$0xff] %v7776_v8  ;;  %vm562_vm6 = vcmp.eq.s32.totalorder %v9021_v52, %v5386_v51 }
 0x217   : > { %v4970_v2 = vunpack.i.h.bf16 %v4968_v40  ;;  %v4969_v38 = vunpack.i.l.bf16 %v4968_v40  ;;  %v7823_v39 = vadd.f32 %v3339_v20, %v2538_v3  ;;  %3694 = vmatpush.msra.mxu3 %v7593_v19  ;;  %v2557_v59 = vadd.f32 %v2493_v21, %v1853_v50  ;;  %3592 = vxpose.xlu1.b32.cont [8/16] (narrow) %v4019_v54, 8  ;;  %3443 = vst [vmem:[%s7423_s27 + $0x90] sm:$0xff] %v7804_v57  ;;  %v9023_v19 = vld [vmem:[#allocation166_spill] sm:$0xff] }
 0x218   : > { %v1008_v42 = vpop.f32.mrf.mxu0  ;;  %v2489_v3 = vmul.f32 %v4825_v14, %v9022_v32  ;;  %3457 = vst [vmem:[%s7423_s27 + $0x100] sm:$0xff] %v7821_v34  ;;  %v4934_v54 = vunpack.i.l.bf16 %v7634_v46  ;;  %v4049_v21 = vsel %vm562_vm6, 1.0, %v8691_v16  ;;  %v4634_v40 = vunpack.i.l.bf16 %v9026_v37  ;;  %v9029_v32 = vld [vmem:[#allocation114_spill] sm:$0xff] }
 0x219   : > { %v1217_v0 = vpop.f32.mrf.mxu1  ;;  %v3357_v56 = vmul.f32 %v4970_v2, %v7713_v61  ;;  %v1835_v48 = vmul.f32 %v4630_v23, %v1008_v42  ;;  %v3358_v35 = vmul.f32 %v4969_v38, %v2776_v24  ;;  %3467 = vst [vmem:[%s7423_s27 + $0x150] sm:$0xff] %v7823_v39  ;;  %3695 = vmatpush.msra.mxu3 %v7415_v28  ;;  %v4020_v28 = vsel %vm533_vm4, 1.0, %v8691_v16 }
 0x21a   : > { %v2475_v13 = vmul.f32 %v4790_v11, %v1217_v0  ;;  %v9024_v11 = vld [vmem:[#allocation131_spill] sm:$0xff]  ;;  %v4794_v14 = vunpack.i.l.bf16 %v9027_v7 }
 0x21b   : > { %v7836_v61 = vadd.f32 %v3357_v56, %v9023_v19  ;;  %v7838_v23 = vadd.f32 %v3358_v35, %v2557_v59  ;;  %v1849_v24 = vmul.f32 %v4665_v26, %v9024_v11  ;;  %3696 = vmatpush.msra.mxu3 %v9025_v47  ;;  %v9028_v59 = vld [vmem:[#allocation121_spill] sm:$0xff] }
 0x21c   : > { %v2539_v5 = vadd.f32 %v2475_v13, %v1835_v48  ;;  %4342 = vmatmul.lmr.bf16.vlgmr.msra.gmra.1.mxu3  ;;  %v2722_v46 = vpop.f32.mrf.mxu2  ;;  %3654 = vxpose.xlu0.b32.cont [6/16] (narrow) %v4049_v21, 8  ;;  %v4938_v1 = vpop.permute.xlu0 %4937 }
 0x21d   : > { %3485 = vst [vmem:[%s7423_s27 + $0x1e0] sm:$0xff] %v7836_v61  ;;  %v2553_v2 = vadd.f32 %v2489_v3, %v1849_v24  ;;  %3701 = vmatpush.msra.mxu3 %v7672_v60  ;;  %v3340_v38 = vmul.f32 %v4934_v54, %v2722_v46  ;;  %v4943_v50 = vpop.permute.xlu1 %4942  ;;  %v4940_v42 = vunpack.i.h.bf16 %v4938_v1  ;;  %v4939_v0 = vunpack.i.l.bf16 %v4938_v1  ;;  %v9030_v54 = vld [vmem:[#allocation160_spill] sm:$0xff]  ;;  %v9036_v1 = vld [vmem:[#allocation142_spill] sm:$0xff] }
 0x21e   : > { %3486 = vst [vmem:[%s7423_s27 + $0x1e8] sm:$0xff] %v7838_v23  ;;  %v4978_v20 = vpop.permute.xlu2 %4977  ;;  %v4945_v30 = vunpack.i.h.bf16 %v4943_v50  ;;  %v4944_v56 = vunpack.i.l.bf16 %v4943_v50 }
 0x21f   : > { %v4980_v44 = vunpack.i.h.bf16 %v4978_v20  ;;  %v4979_v26 = vunpack.i.l.bf16 %v4978_v20  ;;  %v7860_v52 = vadd.f32 %v3340_v38, %v2539_v5  ;;  %3702 = vmatpush.msra.mxu3 %v7699_v31  ;;  %v3337_v11 = vmul.f32 %v4940_v42, %v7690_v41  ;;  %3593 = vxpose.xlu1.b32.cont [9/16] (narrow) %v4020_v28, 8  ;;  %v9031_v5 = vld [vmem:[#allocation95_spill] sm:$0xff]  ;;  %v9032_v20 = vld [vmem:[#allocation113_spill] sm:$0xff] }
 0x220   : > { %v1011_v48 = vpop.f32.mrf.mxu0  ;;  %v3338_v24 = vmul.f32 %v4939_v0, %v7745_v45  ;;  %v3335_v47 = vmul.f32 %v4945_v30, %v9030_v54  ;;  %v3336_v21 = vmul.f32 %v4944_v56, %v7632_v33  ;;  %vm563_vm14 = vcmp.eq.s32.totalorder %v9031_v5, %v5386_v51 }
 0x221   : > { %v1220_v13 = vpop.f32.mrf.mxu1  ;;  %v3353_v35 = vmul.f32 %v4980_v44, %v9028_v59  ;;  %v3354_v3 = vmul.f32 %v4979_v26, %v9029_v32  ;;  %v1836_v19 = vmul.f32 %v4634_v40, %v1011_v48  ;;  %3468 = vst [vmem:[%s7423_s27 + $0x158] sm:$0xff] %v7860_v52  ;;  %3703 = vmatpush.msra.mxu3 %v9032_v20  ;;  %v4930_v28 = vunpack.i.h.bf16 %v7810_v15  ;;  %v9033_v44 = vld [vmem:[#allocation139_spill] sm:$0xff]  ;;  %v9034_v26 = vld [vmem:[#allocation150_spill] sm:$0xff] }
 0x222   : > { %v2476_v46 = vmul.f32 %v4794_v14, %v1220_v13  ;;  %v7877_v41 = vadd.f32 %v3338_v24, %v7710_v29  ;;  %v7880_v45 = vadd.f32 %v3337_v11, %v7661_v10  ;;  %v7883_v33 = vadd.f32 %v3336_v21, %v7608_v17  ;;  %v7887_v14 = vpop.f32.mrf.mxu3  ;;  %v9035_v29 = vld [vmem:[#allocation74_spill] sm:$0xff]  ;;  %v9039_v24 = vld [vmem:[#allocation123_spill] sm:$0xff]  ;;  %v9049_v13 = vld [vmem:[#allocation140_spill] sm:$0xff] }
 0x223   : > { %v7874_v40 = vadd.f32 %v3354_v3, %v2553_v2  ;;  %3704 = vmatpush.msra.mxu3 %v9033_v44  ;;  %v7890_v2 = vadd.f32 %v3335_v47, %v9034_v26  ;;  %vm534_vm15 = vcmp.eq.s32.totalorder %v9035_v29, %v5386_v51  ;;  %v4050_v10 = vsel %vm563_vm14, 1.0, %v8691_v16  ;;  %v9040_v47 = vld [vmem:[#allocation102_spill] sm:$0xff]  ;;  %v9045_v26 = vld [vmem:[#allocation103_spill] sm:$0xff] }
 0x224   : > { %v2540_v38 = vadd.f32 %v2476_v46, %v1836_v19  ;;  %4359 = vllmr.1.mxu3  ;;  %v2725_v17 = vpop.f32.mrf.mxu2  ;;  %3466 = vst [vmem:[%s7423_s27 + $0x148] sm:$0xff] %v7877_v41  ;;  %v7900_v50 = vadd.f32 %v3353_v35, %v9036_v1  ;;  %v4635_v42 = vunpack.i.h.bf16 %v9026_v37  ;;  %v4795_v0 = vunpack.i.h.bf16 %v9027_v7  ;;  %3655 = vxpose.xlu0.b32.cont [7/16] (narrow) %v4050_v10, 8  ;;  %v4953_v56 = vpop.permute.xlu0 %4952  ;;  %v9042_v46 = vld [vmem:[#allocation93_spill] sm:$0xff] }
 0x225   : > { %3482 = vst [vmem:[%s7423_s27 + $0x1c8] sm:$0xff] %v7874_v40  ;;  %3705 = vmatpush.msra.mxu3 %v7720_v25  ;;  %v3341_v30 = vmul.f32 %v4930_v28, %v2725_v17  ;;  %v9037_v48 = vmov 1.0   ;;  %v4955_v59 = vunpack.i.h.bf16 %v4953_v56  ;;  %v4954_v35 = vunpack.i.l.bf16 %v4953_v56  ;;  %v9046_v17 = vld [vmem:[#allocation55_spill] sm:$0xff] }
 0x226   : > { %3465 = vst [vmem:[%s7423_s27 + $0x140] sm:$0xff] %v7880_v45  ;;  %v4021_v7 = vsel %vm534_vm15, 1.0, %v8691_v16  ;;  %v4929_v10 = vunpack.i.l.bf16 %v7810_v15  ;;  %v9050_v15 = vld [vmem:[#allocation165_spill] sm:$0xff] }
 0x227   : > { %4429 = vmatpush.lsf.msk.msk.msrb.mxu3 %vm524_vm1, %v9037_v48  ;;  %3464 = vst [vmem:[%s7423_s27 + $0x138] sm:$0xff] %v7883_v33  ;;  %v7917_v3 = vadd.f32 %v3341_v30, %v2540_v38  ;;  %v3331_v54 = vmul.f32 %v4955_v59, %v9039_v24  ;;  %v3332_v21 = vmul.f32 %v4954_v35, %v9040_v47  ;;  %v9044_v38 = vld [vmem:[#allocation112_spill] sm:$0xff]  ;;  %v9048_v30 = vld [vmem:[#allocation174_spill] sm:$0xff]  ;;  %v4799_v59 = vunpack.i.l.bf16 %v9049_v13 }
 0x228   : > { %v1014_v37 = vpop.f32.mrf.mxu0  ;;  %3463 = vst [vmem:[%s7423_s27 + $0x130] sm:$0xff] %v7890_v2  ;;  %3594 = vxpose.xlu1.b32.cont [10/16] (narrow) %v4021_v7, 8  ;;  %vm564_vm1 = vcmp.eq.s32.totalorder %v9042_v46, %v5386_v51  ;;  %v4639_v56 = vunpack.i.l.bf16 %v9048_v30  ;;  %v8005_v7 = vpop.permute.xlu2 %4987 }
 0x229   : > { %v1223_v32 = vpop.f32.mrf.mxu1  ;;  %3706 = vmatpush.msra.mxu3 %v7723_v36  ;;  %v1837_v19 = vmul.f32 %v4635_v42, %v1014_v37  ;;  %3481 = vst [vmem:[%s7423_s27 + $0x1c0] sm:$0xff] %v7900_v50  ;;  %v7940_v44 = vadd.f32 %v3332_v21, %v9044_v38  ;;  %v7943_v29 = vadd.f32 %v3331_v54, %v9045_v26  ;;  %v4051_v1 = vsel %vm564_vm1, 1.0, %v8691_v16 }
 0x22a   : > { %v2477_v11 = vmul.f32 %v4795_v0, %v1223_v32  ;;  %3469 = vst [vmem:[%s7423_s27 + $0x160] sm:$0xff] %v7917_v3  ;;  %v2782_v32 = vpop.f32.mrf.mxu3 }
 0x22b   : > { %4430 = vmatpush.lsf.msk.msk.msrb.mxu3 %vm523_vm2, %v9037_v48  ;;  %vm535_vm2 = vcmp.eq.s32.totalorder %v9046_v17, %v5386_v51  ;;  %3460 = vst [vmem:[%s7423_s27 + $0x118] sm:$0xff] %v7940_v44 }
 0x22c   : > { %v2541_v20 = vadd.f32 %v2477_v11, %v1837_v19  ;;  %v2728_v0 = vpop.f32.mrf.mxu2  ;;  %3656 = vxpose.xlu0.b32.cont [8/16] (narrow) %v4051_v1, 8  ;;  %v4963_v37 = vpop.permute.xlu0 %4962  ;;  %3459 = vst [vmem:[%s7423_s27 + $0x110] sm:$0xff] %v7943_v29  ;;  %v4022_v47 = vsel %vm535_vm2, 1.0, %v8691_v16  ;;  %v9057_v1 = vld [vmem:[#allocation167_spill] sm:$0xff] }
 0x22d   : > { %3707 = vmatpush.msra.mxu3 %v7726_v18  ;;  %v3342_v35 = vmul.f32 %v4929_v10, %v2728_v0  ;;  %v4965_v19 = vunpack.i.h.bf16 %v4963_v37  ;;  %v4964_v11 = vunpack.i.l.bf16 %v4963_v37  ;;  %v9053_v10 = vld [vmem:[#allocation36_spill] sm:$0xff]  ;;  %v4925_v0 = vunpack.i.h.bf16 %v7808_v53 }
 0x22e   : > { %v4640_v37 = vunpack.i.h.bf16 %v9048_v30 }
 0x22f   : > { %4431 = vmatpush.lsf.msk.msk.msrb.mxu3 %vm522_vm7, %v9037_v48  ;;  %v7969_v21 = vadd.f32 %v3342_v35, %v2541_v20  ;;  %v3359_v28 = vmul.f32 %v4965_v19, %v7887_v14  ;;  %v3360_v26 = vmul.f32 %v4964_v11, %v2782_v32  ;;  %vm565_vm7 = vcmp.eq.s32.totalorder %v9053_v10, %v5386_v51  ;;  %v9055_v14 = vld [vmem:[#allocation46_spill] sm:$0xff] }
 0x230   : > { %v1017_v24 = vpop.f32.mrf.mxu0  ;;  %3595 = vxpose.xlu1.b32.cont [11/16] (narrow) %v4022_v47, 8  ;;  %v4800_v32 = vunpack.i.h.bf16 %v9049_v13 }
 0x231   : > { %3708 = vmatpush.msra.mxu3 %v7753_v58  ;;  %v1226_v54 = vpop.f32.mrf.mxu1  ;;  %v1838_v5 = vmul.f32 %v4639_v56, %v1017_v24  ;;  %3470 = vst [vmem:[%s7423_s27 + $0x168] sm:$0xff] %v7969_v21  ;;  %v7990_v42 = vadd.f32 %v3359_v28, %v9057_v1  ;;  %v9058_v56 = vld [vmem:[#allocation81_spill] sm:$0xff]  ;;  %v9061_v24 = vld [vmem:[#allocation38_spill] sm:$0xff] }
 0x232   : > { %v2478_v46 = vmul.f32 %v4799_v59, %v1226_v54  ;;  %v4052_v59 = vsel %vm565_vm7, 1.0, %v8691_v16  ;;  %vm9062_vm3 = vcmp.eq.s32.totalorder %v9061_v24, %v5386_v51  ;;  %v9065_v1 = vld [vmem:[#allocation101_spill] sm:$0xff] }
 0x233   : > { %4432 = vmatpush.lsf.msk.msk.msrb.mxu3 %vm521_vm9, %v9037_v48  ;;  %vm536_vm9 = vcmp.eq.s32.totalorder %v9058_v56, %v5386_v51  ;;  %3487 = vst [vmem:[%s7423_s27 + $0x1f0] sm:$0xff] %v7990_v42  ;;  %vm566_vm13 = vcmp.eq.s32.totalorder %v9065_v1, %v5386_v51 }
 0x234   : > { %v2542_v20 = vadd.f32 %v2478_v46, %v1838_v5  ;;  %v2731_v35 = vpop.f32.mrf.mxu2  ;;  %3657 = vxpose.xlu0.b32.cont [9/16] (narrow) %v4052_v59, 8  ;;  %v4973_v11 = vpop.permute.xlu0 %4972  ;;  %v4023_v13 = vsel %vm536_vm9, 1.0, %v8691_v16  ;;  %v9069_v59 = vld [vmem:[#allocation134_spill] sm:$0xff] }
 0x235   : > { %3709 = vmatpush.msra.mxu3 %v9050_v15  ;;  %v9059_v15 = vld [vmem:[#allocation22_spill] sm:$0xff]  ;;  %v3343_v19 = vmul.f32 %v4925_v0, %v2731_v35  ;;  %v4975_v54 = vunpack.i.h.bf16 %v4973_v11  ;;  %v4974_v47 = vunpack.i.l.bf16 %v4973_v11  ;;  %v4924_v35 = vunpack.i.l.bf16 %v7808_v53  ;;  %v9073_v11 = vld [vmem:[#allocation175_spill] sm:$0xff] }
 0x236   : > { %v9066_v0 = vld [vmem:[#allocation18_spill] sm:$0xff]  ;;  %v4644_v24 = vunpack.i.l.bf16 %v9073_v11 }
 0x237   : > { %4433 = vmatpush.lsf.msk.msk.msrb.mxu3 %vm520_vm8, %v9037_v48  ;;  %vm9056_vm8 = vcmp.eq.s32.totalorder %v9055_v14, %v5386_v51  ;;  %v8018_v46 = vadd.f32 %v3343_v19, %v2542_v20  ;;  %vm9067_vm0 = vcmp.eq.s32.totalorder %v9066_v0, %v5386_v51  ;;  %v9079_v14 = vld [vmem:[#allocation100_spill] sm:$0xff]  ;;  %v9080_v0 = vld [vmem:[#allocation33_spill] sm:$0xff] }
 0x238   : > { %v1020_v30 = vpop.f32.mrf.mxu0  ;;  %3596 = vxpose.xlu1.b32.cont [12/16] (narrow) %v4023_v13, 8  ;;  %vm567_vm15 = vcmp.eq.s32.totalorder %v9079_v14, %v5386_v51  ;;  %vm9081_vm1 = vcmp.eq.s32.totalorder %v9080_v0, %v5386_v51  ;;  %v9087_v0 = vld [vmem:[#allocation163_spill] sm:$0xff] }
 0x239   : > { %3710 = vmatpush.msra.mxu3 %v7596_v49  ;;  %v9054_v49 = vld [vmem:[#allocation149_spill] sm:$0xff]  ;;  %v1229_v5 = vpop.f32.mrf.mxu1  ;;  %v1839_v28 = vmul.f32 %v4640_v37, %v1020_v30  ;;  %3471 = vst [vmem:[%s7423_s27 + $0x170] sm:$0xff] %v8018_v46  ;;  %v9070_v37 = vld [vmem:[#allocation80_spill] sm:$0xff] }
 0x23a   : > { %v7983_v17 = vadd.f32 %v3360_v26, %v9054_v49  ;;  %v2479_v38 = vmul.f32 %v4800_v32, %v1229_v5  ;;  %v9063_v26 = vld [vmem:[#allocation155_spill] sm:$0xff]  ;;  %v3356_v49 = vmul.f32 %v4974_v47, %v7649_v43  ;;  %v9068_v43 = vld [vmem:[#allocation130_spill] sm:$0xff] }
 0x23b   : > { %4434 = vmatpush.lsf.msk.msk.msrb.mxu3 %vm519_vm11, %v9037_v48  ;;  %vm9060_vm11 = vcmp.eq.s32.totalorder %v9059_v15, %v5386_v51  ;;  %v3355_v10 = vmul.f32 %v4975_v54, %v9063_v26  ;;  %v9071_v32 = vld [vmem:[#allocation14_spill] sm:$0xff]  ;;  %v9074_v54 = vld [vmem:[#allocation124_spill] sm:$0xff] }
 0x23c   : > { %3488 = vst [vmem:[%s7423_s27 + $0x1f8] sm:$0xff] %v7983_v17  ;;  %v2543_v20 = vadd.f32 %v2479_v38, %v1839_v28  ;;  %v8037_v56 = vadd.f32 %v3356_v49, %v9068_v43  ;;  %vm9072_vm4 = vcmp.eq.s32.totalorder %v9071_v32, %v5386_v51  ;;  %v2734_v19 = vpop.f32.mrf.mxu2  ;;  %v4804_v53 = vunpack.i.l.bf16 %v9074_v54  ;;  %v9077_v49 = vld [vmem:[#allocation26_spill] sm:$0xff]  ;;  %v9082_v43 = vld [vmem:[#allocation61_spill] sm:$0xff] }
 0x23d   : > { %3711 = vmatpush.msra.mxu3 %v7776_v8  ;;  %v8040_v15 = vadd.f32 %v3355_v10, %v9069_v59  ;;  %v3344_v47 = vmul.f32 %v4924_v35, %v2734_v19  ;;  %v4998_v10 = vpop.permute.xlu2 %4997  ;;  %vm9078_vm14 = vcmp.eq.s32.totalorder %v9077_v49, %v5386_v51  ;;  %vm538_vm2 = vcmp.eq.s32.totalorder %v9082_v43, %v5386_v51  ;;  %v9083_v35 = vld [vmem:[#allocation27_spill] sm:$0xff]  ;;  %v8085_v19 = vpop.permute.xlu0 %4982 }
 0x23e   : > { %3484 = vst [vmem:[%s7423_s27 + $0x1d8] sm:$0xff] %v8037_v56  ;;  %v4054_v59 = vsel %vm567_vm15, 1.0, %v8691_v16  ;;  %vm9084_vm7 = vcmp.eq.s32.totalorder %v9083_v35, %v5386_v51  ;;  %v4805_v32 = vunpack.i.h.bf16 %v9074_v54  ;;  %v4999_v54 = vunpack.i.l.bf16 %v4998_v10 }
 0x23f   : > { %4435 = vmatpush.lsf.msk.msk.msrb.mxu3 %vm9056_vm8, %v9037_v48  ;;  %3483 = vst [vmem:[%s7423_s27 + $0x1d0] sm:$0xff] %v8040_v15  ;;  %v8062_v28 = vadd.f32 %v3344_v47, %v2543_v20  ;;  %v5000_v20 = vunpack.i.h.bf16 %v4998_v10 }
 0x240   : > { %v1023_v30 = vpop.f32.mrf.mxu0 }
 0x241   : > { %3712 = vmatpush.msra.mxu3 %v7779_v62  ;;  %v1232_v5 = vpop.f32.mrf.mxu1  ;;  %v1840_v38 = vmul.f32 %v4644_v24, %v1023_v30  ;;  %3472 = vst [vmem:[%s7423_s27 + $0x178] sm:$0xff] %v8062_v28 }
 0x242   : > { %v2480_v26 = vmul.f32 %v4804_v53, %v1232_v5 }
 0x243   : > { %4436 = vmatpush.lsf.msk.msk.msrb.mxu3 %vm9060_vm11, %v9037_v48 }
 0x244   : > { %v2544_v1 = vadd.f32 %v2480_v26, %v1840_v38  ;;  %v9085_v38 = vld [vmem:[#allocation49_spill] sm:$0xff] }
 0x245   : > { %3713 = vmatpush.msra.mxu3 %v7782_v27  ;;  %vm568_vm8 = vcmp.eq.s32.totalorder %v9085_v38, %v5386_v51  ;;  %v9086_v26 = vld [vmem:[#allocation85_spill] sm:$0xff] }
 0x246   : > { %vm539_vm9 = vcmp.eq.s32.totalorder %v9086_v26, %v5386_v51  ;;  %v4055_v49 = vsel %vm568_vm8, 1.0, %v8691_v16 }
 0x247   : > { %4437 = vmatpush.lsf.msk.msk.msrb.mxu3 %vm9062_vm3, %v9037_v48 }
 0x248   : > { %v1026_v53 = vpop.f32.mrf.mxu0 }
 0x249   : > { %3714 = vmatpush.msra.mxu3 %v7804_v57  ;;  %v1235_v47 = vpop.f32.mrf.mxu1 }
 0x24b   : > { %4438 = vmatpush.lsf.msk.msk.msrb.mxu3 %vm515_vm10, %v9037_v48  ;;  %vm537_vm10 = vcmp.eq.s32.totalorder %v9070_v37, %v5386_v51  ;;  %v2737_v37 = vpop.f32.mrf.mxu2 }
 0x24c   : > { %v4024_v13 = vsel %vm537_vm10, 1.0, %v8691_v16  ;;  %v3345_v24 = vmul.f32 %v5000_v20, %v2737_v37  ;;  %v9088_v20 = vld [vmem:[#allocation96_spill] sm:$0xff] }
 0x24d   : > { %3715 = vmatpush.msra.mxu3 %v7613_v12  ;;  %v4053_v12 = vsel %vm566_vm13, 1.0, %v8691_v16  ;;  %3597 = vxpose.xlu1.b32.cont [13/16] (narrow) %v4024_v13, 8  ;;  %v2481_v13 = vmul.f32 %v4805_v32, %v1235_v47  ;;  %v4809_v43 = vunpack.i.l.bf16 %v9088_v20  ;;  %v9089_v47 = vld [vmem:[#allocation111_spill] sm:$0xff]  ;;  %v4810_v26 = vunpack.i.h.bf16 %v9088_v20 }
 0x24e   : > { %3658 = vxpose.xlu0.b32.cont [10/16] (narrow) %v4053_v12, 8  ;;  %v4645_v12 = vunpack.i.h.bf16 %v9073_v11  ;;  %v8088_v30 = vadd.f32 %v3345_v24, %v2544_v1  ;;  %v4649_v1 = vunpack.i.l.bf16 %v9087_v0  ;;  %vm569_vm11 = vcmp.eq.s32.totalorder %v9089_v47, %v5386_v51  ;;  %v9092_v47 = vld [vmem:[#allocation179_spill] sm:$0xff] }
 0x24f   : > { %4439 = vmatpush.lsf.msk.msk.msrb.mxu3 %vm9067_vm0, %v9037_v48  ;;  %v4056_v38 = vsel %vm569_vm11, 1.0, %v8691_v16 }
 0x250   : > { %v1841_v5 = vmul.f32 %v4645_v12, %v1026_v53  ;;  %3473 = vst [vmem:[%s7423_s27 + $0x180] sm:$0xff] %v8088_v30  ;;  %v1029_v35 = vpop.f32.mrf.mxu0  ;;  %v4026_v12 = vsel %vm539_vm9, 1.0, %v8691_v16  ;;  %v4993_v53 = vpop.permute.xlu0 %4992 }
 0x251   : > { %3716 = vmatpush.msra.mxu3 %v7640_v22  ;;  %v9075_v22 = vld [vmem:[#allocation32_spill] sm:$0xff]  ;;  %v1238_v37 = vpop.f32.mrf.mxu1  ;;  %v1842_v10 = vmul.f32 %v4649_v1, %v1029_v35 }
 0x252   : > { %vm9076_vm6 = vcmp.eq.s32.totalorder %v9075_v22, %v5386_v51  ;;  %v4025_v22 = vsel %vm538_vm2, 1.0, %v8691_v16  ;;  %v2545_v11 = vadd.f32 %v2481_v13, %v1841_v5  ;;  %v2482_v24 = vmul.f32 %v4809_v43, %v1238_v37  ;;  %v9090_v13 = vld [vmem:[#allocation84_spill] sm:$0xff] }
 0x253   : > { %4440 = vmatpush.lsf.msk.msk.msrb.mxu3 %vm9072_vm4, %v9037_v48  ;;  %v2740_v14 = vpop.f32.mrf.mxu2  ;;  %v4995_v5 = vunpack.i.h.bf16 %v4993_v53  ;;  %vm540_vm3 = vcmp.eq.s32.totalorder %v9090_v13, %v5386_v51  ;;  %v9093_v13 = vld [vmem:[#allocation132_spill] sm:$0xff] }
 0x254   : > { %v4027_v43 = vsel %vm540_vm3, 1.0, %v8691_v16 }
 0x255   : > { %4441 = vmatpush.lsf.msk.msk.msrb.mxu3 %vm9076_vm6, %v9037_v48  ;;  %3598 = vxpose.xlu1.b32.cont [14/16] (narrow) %v4025_v22, 8  ;;  %v2546_v22 = vadd.f32 %v2482_v24, %v1842_v10  ;;  %v4994_v10 = vunpack.i.l.bf16 %v4993_v53 }
 0x256   : > { %3659 = vxpose.xlu0.b32.cont [11/16] (narrow) %v4054_v59, 8  ;;  %v3346_v59 = vmul.f32 %v4999_v54, %v2740_v14 }
 0x257   : > { %4442 = vmatpush.lsf.msk.msk.msrb.mxu3 %vm9078_vm14, %v9037_v48 }
 0x258   : > { %v8100_v32 = vadd.f32 %v3346_v59, %v2545_v11  ;;  %v4650_v11 = vunpack.i.h.bf16 %v9087_v0  ;;  %v1032_v14 = vpop.f32.mrf.mxu0 }
 0x259   : > { %4443 = vmatpush.lsf.msk.msk.msrb.mxu3 %vm9081_vm1, %v9037_v48  ;;  %v1241_v1 = vpop.f32.mrf.mxu1 }
 0x25a   : > { %3474 = vst [vmem:[%s7423_s27 + $0x188] sm:$0xff] %v8100_v32  ;;  %v1843_v35 = vmul.f32 %v4650_v11, %v1032_v14  ;;  %v2483_v37 = vmul.f32 %v4810_v26, %v1241_v1  ;;  %v9094_v1 = vld [vmem:[#allocation88_spill] sm:$0xff] }
 0x25b   : > { %4444 = vmatpush.lsf.msk.msk.msrb.mxu3 %vm9084_vm7, %v9037_v48  ;;  %v2743_v54 = vpop.f32.mrf.mxu2  ;;  %vm571_vm0 = vcmp.eq.s32.totalorder %v9094_v1, %v5386_v51 }
 0x25c   : > { %v2547_v0 = vadd.f32 %v2483_v37, %v1843_v35  ;;  %v4058_v35 = vsel %vm571_vm0, 1.0, %v8691_v16 }
 0x25d   : > { %3599 = vxpose.xlu1.b32.cont [15/16] (narrow) %v4026_v12, 8  ;;  %v9091_v12 = vld [vmem:[#allocation110_spill] sm:$0xff] }
 0x25e   : > { %3660 = vxpose.xlu0.b32.cont [12/16] (narrow) %v4055_v49, 8  ;;  %v3347_v49 = vmul.f32 %v4995_v5, %v2743_v54  ;;  %vm570_vm13 = vcmp.eq.s32.totalorder %v9091_v12, %v5386_v51  ;;  %v4654_v5 = vunpack.i.l.bf16 %v9092_v47  ;;  %v4655_v12 = vunpack.i.h.bf16 %v9092_v47 }
 0x25f   : > { %v4057_v20 = vsel %vm570_vm13, 1.0, %v8691_v16 }
 0x260   : > { %v8112_v59 = vadd.f32 %v3347_v49, %v2546_v22  ;;  %v1035_v54 = vpop.f32.mrf.mxu0 }
 0x261   : > { %v1244_v11 = vpop.f32.mrf.mxu1  ;;  %v1844_v49 = vmul.f32 %v4654_v5, %v1035_v54  ;;  %v9095_v54 = vld [vmem:[#allocation118_spill] sm:$0xff] }
 0x262   : > { %3475 = vst [vmem:[%s7423_s27 + $0x190] sm:$0xff] %v8112_v59  ;;  %vm572_vm10 = vcmp.eq.s32.totalorder %v9095_v54, %v5386_v51 }
 0x263   : > { %v2746_v24 = vpop.f32.mrf.mxu2  ;;  %v4059_v47 = vsel %vm572_vm10, 1.0, %v8691_v16 }
 0x264   : > { %v3348_v22 = vmul.f32 %v4994_v10, %v2746_v24  ;;  %v4815_v10 = vunpack.i.h.bf16 %v9093_v13 }
 0x265   : > { %3600 = vxpose.xlu1.b32.end [16/16] (narrow) %v4027_v43, 8  ;;  %v4990_v43 = vunpack.i.h.bf16 %v8005_v7 }
 0x266   : > { %3661 = vxpose.xlu0.b32.cont [13/16] (narrow) %v4056_v38, 8  ;;  %v4814_v38 = vunpack.i.l.bf16 %v9093_v13  ;;  %v8121_v26 = vadd.f32 %v3348_v22, %v2547_v0 }
 0x268   : > { %v2484_v14 = vmul.f32 %v4814_v38, %v1244_v11  ;;  %3476 = vst [vmem:[%s7423_s27 + $0x198] sm:$0xff] %v8121_v26 }
 0x269   : > { %v1247_v24 = vpop.f32.mrf.mxu1 }
 0x26a   : > { %v2548_v53 = vadd.f32 %v2484_v14, %v1844_v49  ;;  %v2485_v22 = vmul.f32 %v4815_v10, %v1247_v24  ;;  %v4989_v49 = vunpack.i.l.bf16 %v8005_v7  ;;  %v9096_v14 = vld [vmem:[#allocation180_spill] sm:$0xff]  ;;  %v4985_v7 = vunpack.i.h.bf16 %v8085_v19 }
 0x26b   : > { %v2749_v37 = vpop.f32.mrf.mxu2  ;;  %v4659_v1 = vunpack.i.l.bf16 %v9096_v14 }
 0x26c   : > { %v3349_v0 = vmul.f32 %v4990_v43, %v2749_v37  ;;  %v9097_v43 = vld [vmem:[#allocation122_spill] sm:$0xff] }
 0x26e   : > { %3662 = vxpose.xlu0.b32.cont [14/16] (narrow) %v4057_v20, 8  ;;  %v1038_v20 = vpop.f32.mrf.mxu0  ;;  %v8131_v5 = vadd.f32 %v3349_v0, %v2548_v53 }
 0x26f   : > { %v1845_v38 = vmul.f32 %v4655_v12, %v1038_v20 }
 0x270   : > { %3477 = vst [vmem:[%s7423_s27 + $0x1a0] sm:$0xff] %v8131_v5 }
 0x271   : > { %v2549_v11 = vadd.f32 %v2485_v22, %v1845_v38  ;;  %v1250_v12 = vpop.f32.mrf.mxu1  ;;  %v4660_v38 = vunpack.i.h.bf16 %v9096_v14  ;;  %v4820_v22 = vunpack.i.h.bf16 %v9097_v43 }
 0x273   : > { %v2752_v13 = vpop.f32.mrf.mxu2 }
 0x274   : > { %v3350_v53 = vmul.f32 %v4989_v49, %v2752_v13 }
 0x276   : > { %3663 = vxpose.xlu0.b32.cont [15/16] (narrow) %v4058_v35, 8  ;;  %v4819_v35 = vunpack.i.l.bf16 %v9097_v43  ;;  %v1041_v37 = vpop.f32.mrf.mxu0  ;;  %v8141_v10 = vadd.f32 %v3350_v53, %v2549_v11  ;;  %v9102_v43 = vld [vmem:[#allocation42_spill] sm:$0xff] }
 0x277   : > { %v1846_v0 = vmul.f32 %v4659_v1, %v1041_v37  ;;  %vm9103_vm14 = vcmp.eq.s32.totalorder %v9102_v43, %v5386_v51  ;;  %v9124_v43 = vld [vmem:[#allocation11_spill] sm:$0xff] }
 0x278   : > { %v2486_v20 = vmul.f32 %v4819_v35, %v1250_v12  ;;  %3478 = vst [vmem:[%s7423_s27 + $0x1a8] sm:$0xff] %v8141_v10  ;;  %v4984_v35 = vunpack.i.l.bf16 %v8085_v19  ;;  %v9100_v19 = vld [vmem:[#allocation47_spill] sm:$0xff]  ;;  %vm9125_vm10 = vcmp.eq.s32.totalorder %v9124_v43, %v5386_v51  ;;  %v5095_v43 = vld [vmem:[%s7423_s27 + $0x10] sm:$0xff] }
 0x279   : > { %vm9101_vm6 = vcmp.eq.s32.totalorder %v9100_v19, %v5386_v51 }
 0x27a   : > { %v2550_v24 = vadd.f32 %v2486_v20, %v1846_v0  ;;  %v9104_v20 = vld [vmem:[#allocation8_spill] sm:$0xff] }
 0x27b   : > { %v2755_v16 = vpop.f32.mrf.mxu2  ;;  %vm9105_vm15 = vcmp.eq.s32.totalorder %v9104_v20, %v5386_v51  ;;  %v5087_v20 = vld [vmem:[%s7423_s27 + $0x60] sm:$0xff] }
 0x27c   : > { %v3351_v54 = vmul.f32 %v4985_v7, %v2755_v16  ;;  %v9108_v7 = vld [vmem:[#allocation30_spill] sm:$0xff]  ;;  %v9110_v16 = vld [vmem:[#allocation83_spill] sm:$0xff] }
 0x27d   : > { %vm9109_vm2 = vcmp.eq.s32.totalorder %v9108_v7, %v5386_v51  ;;  %vm9111_vm7 = vcmp.eq.s32.totalorder %v9110_v16, %v5386_v51  ;;  %v5088_v16 = vld [vmem:[%s7423_s27 + $0x58] sm:$0xff] }
 0x27e   : > { %3664 = vxpose.xlu0.b32.end [16/16] (narrow) %v4059_v47, 8  ;;  %v1044_v49 = vpop.f32.mrf.mxu0  ;;  %v1253_v47 = vpop.f32.mrf.mxu1  ;;  %v8148_v13 = vadd.f32 %v3351_v54, %v2550_v24  ;;  %v9106_v24 = vld [vmem:[#allocation43_spill] sm:$0xff] }
 0x27f   : > { %v1847_v11 = vmul.f32 %v4660_v38, %v1044_v49  ;;  %v2487_v53 = vmul.f32 %v4820_v22, %v1253_v47  ;;  %vm9107_vm1 = vcmp.eq.s32.totalorder %v9106_v24, %v5386_v51  ;;  %v9112_v38 = vld [vmem:[#allocation20_spill] sm:$0xff]  ;;  %v9114_v22 = vld [vmem:[#allocation19_spill] sm:$0xff]  ;;  %v9118_v49 = vld [vmem:[#allocation13_spill] sm:$0xff]  ;;  %v3501_v24 = vmul.f32 %v5087_v20, %v5087_v20 }
 0x280   : > { %3479 = vst [vmem:[%s7423_s27 + $0x1b0] sm:$0xff] %v8148_v13  ;;  %vm9113_vm8 = vcmp.eq.s32.totalorder %v9112_v38, %v5386_v51  ;;  %vm9115_vm9 = vcmp.eq.s32.totalorder %v9114_v22, %v5386_v51  ;;  %v9116_v54 = vld [vmem:[#allocation79_spill] sm:$0xff]  ;;  %vm9119_vm3 = vcmp.eq.s32.totalorder %v9118_v49, %v5386_v51  ;;  %v3500_v38 = vmul.f32 %v5088_v16, %v5088_v16  ;;  %v5097_v16 = vld [vmem:[%s7423_s27] sm:$0xff] }
 0x281   : > { %v2551_v1 = vadd.f32 %v2487_v53, %v1847_v11  ;;  %vm9117_vm11 = vcmp.eq.s32.totalorder %v9116_v54, %v5386_v51  ;;  %v9120_v11 = vld [vmem:[#allocation12_spill] sm:$0xff]  ;;  %v5084_v53 = vld [vmem:[%s7423_s27 + $0x78] sm:$0xff]  ;;  %v3499_v54 = vmul.f32 %v7666_v63, %v7666_v63  ;;  %v3498_v49 = vmul.f32 %v7669_v6, %v7669_v6  ;;  %v5092_v63 = vld [vmem:[%s7423_s27 + $0x28] sm:$0xff] }
 0x282   : > { %vm9121_vm13 = vcmp.eq.s32.totalorder %v9120_v11, %v5386_v51  ;;  %v5089_v11 = vld [vmem:[%s7423_s27 + $0x40] sm:$0xff]  ;;  %v5094_v6 = vld [vmem:[%s7423_s27 + $0x18] sm:$0xff]  ;;  %v3491_v20 = vmul.f32 %v5095_v43, %v5095_v43  ;;  %v3520_v22 = vmul.f32 %v7672_v60, %v7672_v60  ;;  %v3515_v60 = vmul.f32 %v7723_v36, %v7723_v36 }
 0x283   : > { %v2758_v37 = vpop.f32.mrf.mxu2  ;;  %v3510_v36 = vmul.f32 %v7776_v8, %v7776_v8  ;;  %v3536_v8 = vmul.f32 %v8062_v28, %v8062_v28 }
 0x284   : > { %v3352_v12 = vmul.f32 %v4984_v35, %v2758_v37  ;;  %v5085_v35 = vld [vmem:[%s7423_s27 + $0x70] sm:$0xff] }
 0x285   : > { %v3503_v37 = vmul.f32 %v5085_v35, %v5085_v35 }
 0x286   : > { %v8153_v0 = vadd.f32 %v3352_v12, %v2551_v1  ;;  %v3504_v1 = vmul.f32 %v5084_v53, %v5084_v53  ;;  %v9122_v12 = vld [vmem:[#allocation73_spill] sm:$0xff]  ;;  %v3497_v53 = vmul.f32 %v5089_v11, %v5089_v11 }
 0x287   : > { %vm9123_vm0 = vcmp.eq.s32.totalorder %v9122_v12, %v5386_v51  ;;  %v5093_v12 = vld [vmem:[%s7423_s27 + $0x20] sm:$0xff] }
 0x288   : > { %3480 = vst [vmem:[%s7423_s27 + $0x1b8] sm:$0xff] %v8153_v0 }
 0x291   : > { %v8157_v14 = vpop.trf.xlu1 }
 0x292   : > { %3717 = vmatmul.f32.vlgmr.msra.gmra.mxu3 %v8157_v14 }
 0x293   : > { %3721 = vmatpush.msra.mxu3 %v8062_v28  ;;  %v3531_v28 = vmul.f32 %v7823_v39, %v7823_v39 }
 0x295   : > { %3722 = vmatpush.msra.mxu3 %v8018_v46 }
 0x297   : > { %3723 = vmatpush.msra.mxu3 %v7969_v21 }
 0x299   : > { %3724 = vmatpush.msra.mxu3 %v7917_v3 }
 0x29b   : > { %3725 = vmatpush.msra.mxu3 %v7860_v52 }
 0x29d   : > { %3726 = vmatpush.msra.mxu3 %v7823_v39  ;;  %v3525_v39 = vmul.f32 %v7756_v9, %v7756_v9 }
 0x29f   : > { %3727 = vmatpush.msra.mxu3 %v7877_v41 }
 0x2a1   : > { %3728 = vmatpush.msra.mxu3 %v7880_v45 }
 0x2a3   : > { %3729 = vmatpush.msra.mxu3 %v7883_v33 }
 0x2a5   : > { %3730 = vmatpush.msra.mxu3 %v7890_v2 }
 0x2a7   : > { %3731 = vmatpush.msra.mxu3 %v7717_v4  ;;  %v9098_v4 = vld [vmem:[#allocation21_spill] sm:$0xff] }
 0x2a8   : > { %vm9099_vm4 = vcmp.eq.s32.totalorder %v9098_v4, %v5386_v51  ;;  %v5086_v4 = vld [vmem:[%s7423_s27 + $0x68] sm:$0xff]  ;;  %v5091_v51 = vld [vmem:[%s7423_s27 + $0x30] sm:$0xff] }
 0x2a9   : > { %3732 = vmatpush.msra.mxu3 %v7756_v9  ;;  %v3502_v19 = vmul.f32 %v5086_v4, %v5086_v4  ;;  %v3493_v4 = vmul.f32 %v5093_v12, %v5093_v12  ;;  %v3507_v12 = vmul.f32 %v7804_v57, %v7804_v57  ;;  %v3533_v57 = vmul.f32 %v7917_v3, %v7917_v3 }
 0x2aa   : > { %v8235_v47 = vpop.trf.xlu0  ;;  %v3528_v3 = vmul.f32 %v7883_v33, %v7883_v33  ;;  %v3522_v33 = vmul.f32 %v7772_v55, %v7772_v55  ;;  %v3552_v9 = vmul.f32 %v7983_v17, %v7983_v17 }
 0x2ab   : > { %3733 = vmatpush.msra.mxu3 %v7940_v44 }
 0x2ad   : > { %3734 = vmatpush.msra.mxu3 %v7943_v29 }
 0x2af   : > { %3735 = vmatpush.msra.mxu3 %v7772_v55  ;;  %v3549_v55 = vmul.f32 %v7836_v61, %v7836_v61 }
 0x2b1   : > { %3736 = vmatpush.msra.mxu3 %v7821_v34 }
 0x2b2   : > { %4360 = vmatmul.lmr.bf16.vlgmr.msra.gmra.1.mxu3 }
 0x2b3   : > { %3741 = vmatpush.msra.mxu3 %v7983_v17  ;;  %v3547_v17 = vmul.f32 %v8040_v15, %v8040_v15 }
 0x2b5   : > { %3742 = vmatpush.msra.mxu3 %v7990_v42 }
 0x2b7   : > { %3743 = vmatpush.msra.mxu3 %v7838_v23 }
 0x2b9   : > { %3744 = vmatpush.msra.mxu3 %v7836_v61  ;;  %v3544_v61 = vmul.f32 %v8153_v0, %v8153_v0 }
 0x2ba   : > { %4377 = vllmr.1.mxu3 }
 0x2bb   : > { %3745 = vmatpush.msra.mxu3 %v8037_v56 }
 0x2bd   : > { %4445 = vmatpush.lsf.msk.msk.msrb.mxu3 %vm9099_vm4, %v9037_v48 }
 0x2bf   : > { %3746 = vmatpush.msra.mxu3 %v8040_v15  ;;  %v3542_v15 = vmul.f32 %v8141_v10, %v8141_v10 }
 0x2c1   : > { %4446 = vmatpush.lsf.msk.msk.msrb.mxu3 %vm9101_vm6, %v9037_v48 }
 0x2c3   : > { %3747 = vmatpush.msra.mxu3 %v7874_v40 }
 0x2c5   : > { %4447 = vmatpush.lsf.msk.msk.msrb.mxu3 %vm9103_vm14, %v9037_v48 }
 0x2c7   : > { %3748 = vmatpush.msra.mxu3 %v7900_v50 }
 0x2c9   : > { %4448 = vmatpush.lsf.msk.msk.msrb.mxu3 %vm9105_vm15, %v9037_v48 }
 0x2cb   : > { %3749 = vmatpush.msra.mxu3 %v8153_v0  ;;  %v3539_v0 = vmul.f32 %v8112_v59, %v8112_v59 }
 0x2cd   : > { %4449 = vmatpush.lsf.msk.msk.msrb.mxu3 %vm9107_vm1, %v9037_v48 }
 0x2cf   : > { %3750 = vmatpush.msra.mxu3 %v8148_v13 }
 0x2d1   : > { %4450 = vmatpush.lsf.msk.msk.msrb.mxu3 %vm9109_vm2, %v9037_v48 }
 0x2d3   : > { %3751 = vmatpush.msra.mxu3 %v8141_v10  ;;  %v3537_v10 = vmul.f32 %v8088_v30, %v8088_v30 }
 0x2d5   : > { %4451 = vmatpush.lsf.msk.msk.msrb.mxu3 %vm9111_vm7, %v9037_v48 }
 0x2d7   : > { %3752 = vmatpush.msra.mxu3 %v8131_v5 }
 0x2d9   : > { %4452 = vmatpush.lsf.msk.msk.msrb.mxu3 %vm9113_vm8, %v9037_v48 }
 0x2db   : > { %3753 = vmatpush.msra.mxu3 %v8121_v26 }
 0x2dd   : > { %4453 = vmatpush.lsf.msk.msk.msrb.mxu3 %vm9115_vm9, %v9037_v48 }
 0x2df   : > { %3754 = vmatpush.msra.mxu3 %v8112_v59 }
 0x2e1   : > { %4454 = vmatpush.lsf.msk.msk.msrb.mxu3 %vm9117_vm11, %v9037_v48 }
 0x2e3   : > { %3755 = vmatpush.msra.mxu3 %v8100_v32 }
 0x2e5   : > { %4455 = vmatpush.lsf.msk.msk.msrb.mxu3 %vm9119_vm3, %v9037_v48 }
 0x2e7   : > { %3756 = vmatpush.msra.mxu3 %v8088_v30 }
 0x2e8   : > { %3757 = vmatmul.f32.vlgmr.msra.gmra.mxu3 %v8235_v47 }
 0x2e9   : > { %4456 = vmatpush.lsf.msk.msk.msrb.mxu3 %vm9121_vm13, %v9037_v48 }
 0x2eb   : > { %3761 = vmatpush.msra.mxu3 %v3504_v1  ;;  %v5090_v1 = vld [vmem:[%s7423_s27 + $0x38] sm:$0xff] }
 0x2ec   : > { %v3496_v35 = vmul.f32 %v5090_v1, %v5090_v1 }
 0x2ed   : > { %4457 = vmatpush.lsf.msk.msk.msrb.mxu3 %vm9123_vm0, %v9037_v48 }
 0x2ef   : > { %3762 = vmatpush.msra.mxu3 %v3503_v37  ;;  %v3494_v37 = vmul.f32 %v5092_v63, %v5092_v63 }
 0x2f1   : > { %4458 = vmatpush.lsf.msk.msk.msrb.mxu3 %vm9125_vm10, %v9037_v48 }
 0x2f3   : > { %3763 = vmatpush.msra.mxu3 %v3502_v19  ;;  %v3492_v19 = vmul.f32 %v5094_v6, %v5094_v6 }
 0x2f5   : > { %4459 = vmatpush.lsf.msk.msk.msrb.mxu3 %vm542_vm5, %v9037_v48 }
 0x2f7   : > { %3764 = vmatpush.msra.mxu3 %v3501_v24  ;;  %v5096_v24 = vld [vmem:[%s7423_s27 + $0x8] sm:$0xff] }
 0x2f8   : > { %v3490_v7 = vmul.f32 %v5096_v24, %v5096_v24 }
 0x2f9   : > { %4460 = vmatpush.lsf.msk.msk.msrb.mxu3 %vm541_vm12, %v9037_v48  ;;  %v3495_v48 = vmul.f32 %v5091_v51, %v5091_v51  ;;  %v3513_v51 = vmul.f32 %v7753_v58, %v7753_v58  ;;  %v3508_v58 = vmul.f32 %v7782_v27, %v7782_v27  ;;  %v3534_v27 = vmul.f32 %v7969_v21, %v7969_v21 }
 0x2fa   : > { %v3529_v21 = vmul.f32 %v7880_v45, %v7880_v45  ;;  %v3523_v45 = vmul.f32 %v7943_v29, %v7943_v29  ;;  %v3550_v29 = vmul.f32 %v7838_v23, %v7838_v23  ;;  %v3545_v23 = vmul.f32 %v7900_v50, %v7900_v50 }
 0x2fb   : > { %3765 = vmatpush.msra.mxu3 %v3500_v38  ;;  %v3489_v38 = vmul.f32 %v5097_v16, %v5097_v16  ;;  %v3540_v50 = vmul.f32 %v8121_v26, %v8121_v26 }
 0x2fd   : > { %3766 = vmatpush.msra.mxu3 %v3499_v54  ;;  %v3519_v54 = vmul.f32 %v7699_v31, %v7699_v31  ;;  %v3514_v31 = vmul.f32 %v7726_v18, %v7726_v18  ;;  %v3509_v18 = vmul.f32 %v7779_v62, %v7779_v62  ;;  %v3535_v62 = vmul.f32 %v8018_v46, %v8018_v46 }
 0x2fe   : > { %v3530_v46 = vmul.f32 %v7877_v41, %v7877_v41  ;;  %v3524_v41 = vmul.f32 %v7940_v44, %v7940_v44  ;;  %v3551_v44 = vmul.f32 %v7990_v42, %v7990_v42  ;;  %v3546_v42 = vmul.f32 %v7874_v40, %v7874_v40 }
 0x2ff   : > { %3767 = vmatpush.msra.mxu3 %v3498_v49  ;;  %v5098_v49 = vld [vmem:[%s7423_s27 + $0xe8] sm:$0xff]  ;;  %v3541_v40 = vmul.f32 %v8131_v5, %v8131_v5 }
 0x300   : > { %v3518_v11 = vmul.f32 %v5098_v49, %v5098_v49 }
 0x301   : > { %3768 = vmatpush.msra.mxu3 %v3497_v53  ;;  %v5099_v53 = vld [vmem:[%s7423_s27 + $0xe0] sm:$0xff] }
 0x302   : > { %v3517_v1 = vmul.f32 %v5099_v53, %v5099_v53 }
 0x303   : > { %3769 = vmatpush.msra.mxu3 %v3496_v35  ;;  %v3516_v35 = vmul.f32 %v7720_v25, %v7720_v25  ;;  %v5101_v25 = vld [vmem:[%s7423_s27 + $0xb0] sm:$0xff] }
 0x305   : > { %3770 = vmatpush.msra.mxu3 %v3495_v48  ;;  %v5100_v48 = vld [vmem:[%s7423_s27 + $0xb8] sm:$0xff] }
 0x306   : > { %v3512_v63 = vmul.f32 %v5100_v48, %v5100_v48 }
 0x307   : > { %3771 = vmatpush.msra.mxu3 %v3494_v37  ;;  %v3511_v37 = vmul.f32 %v5101_v25, %v5101_v25 }
 0x309   : > { %3772 = vmatpush.msra.mxu3 %v3493_v4  ;;  %v5102_v4 = vld [vmem:[%s7423_s27 + $0x88] sm:$0xff] }
 0x30a   : > { %v3506_v6 = vmul.f32 %v5102_v4, %v5102_v4 }
 0x30b   : > { %3773 = vmatpush.msra.mxu3 %v3492_v19  ;;  %v5103_v19 = vld [vmem:[%s7423_s27 + $0x80] sm:$0xff] }
 0x30c   : > { %v3505_v43 = vmul.f32 %v5103_v19, %v5103_v19 }
 0x30d   : > { %3774 = vmatpush.msra.mxu3 %v3491_v20  ;;  %v3532_v20 = vmul.f32 %v7860_v52, %v7860_v52  ;;  %v3527_v52 = vmul.f32 %v7890_v2, %v7890_v2  ;;  %v3521_v2 = vmul.f32 %v7821_v34, %v7821_v34  ;;  %v3548_v34 = vmul.f32 %v8037_v56, %v8037_v56 }
 0x30e   : > { %v3543_v56 = vmul.f32 %v8148_v13, %v8148_v13  ;;  %v3538_v13 = vmul.f32 %v8100_v32, %v8100_v32 }
 0x30f   : > { %3775 = vmatpush.msra.mxu3 %v3490_v7 }
 0x311   : > { %3776 = vmatpush.msra.mxu3 %v3489_v38 }
 0x312   : > { %4378 = vmatmul.lmr.bf16.vlgmr.msra.gmra.1.mxu3 }
 0x313   : > { %3781 = vmatpush.msra.mxu3 %v3520_v22 }
 0x315   : > { %3782 = vmatpush.msra.mxu3 %v3519_v54 }
 0x317   : > { %3783 = vmatpush.msra.mxu3 %v3518_v11 }
 0x319   : > { %3784 = vmatpush.msra.mxu3 %v3517_v1 }
 0x31a   : > { %4395 = vllmr.1.mxu3 }
 0x31b   : > { %3785 = vmatpush.msra.mxu3 %v3516_v35 }
 0x31d   : > { %3786 = vmatpush.msra.mxu3 %v3515_v60 }
 0x31f   : > { %3787 = vmatpush.msra.mxu3 %v3514_v31 }
 0x321   : > { %3788 = vmatpush.msra.mxu3 %v3513_v51 }
 0x323   : > { %3789 = vmatpush.msra.mxu3 %v3512_v63 }
 0x325   : > { %3790 = vmatpush.msra.mxu3 %v3511_v37 }
 0x327   : > { %3791 = vmatpush.msra.mxu3 %v3510_v36 }
 0x329   : > { %3792 = vmatpush.msra.mxu3 %v3509_v18 }
 0x32b   : > { %3793 = vmatpush.msra.mxu3 %v3508_v58 }
 0x32d   : > { %3794 = vmatpush.msra.mxu3 %v3507_v12 }
 0x32f   : > { %3795 = vmatpush.msra.mxu3 %v3506_v6 }
 0x331   : > { %3796 = vmatpush.msra.mxu3 %v3505_v43 }
 0x332   : > { %3797 = vmatmul.f32.vlgmr.msra.gmra.mxu3 %v8157_v14  ;;  %v5104_v14 = vld [vmem:[%s7423_s27 + $0x128] sm:$0xff] }
 0x333   : > { %3801 = vmatpush.msra.mxu3 %v3536_v8  ;;  %v3526_v24 = vmul.f32 %v5104_v14, %v5104_v14 }
 0x335   : > { %3802 = vmatpush.msra.mxu3 %v3535_v62 }
 0x337   : > { %3803 = vmatpush.msra.mxu3 %v3534_v27 }
 0x339   : > { %3804 = vmatpush.msra.mxu3 %v3533_v57 }
 0x33b   : > { %3805 = vmatpush.msra.mxu3 %v3532_v20 }
 0x33d   : > { %3806 = vmatpush.msra.mxu3 %v3531_v28 }
 0x33f   : > { %3807 = vmatpush.msra.mxu3 %v3530_v46 }
 0x341   : > { %3808 = vmatpush.msra.mxu3 %v3529_v21 }
 0x343   : > { %3809 = vmatpush.msra.mxu3 %v3528_v3 }
 0x345   : > { %3810 = vmatpush.msra.mxu3 %v3527_v52 }
 0x347   : > { %3811 = vmatpush.msra.mxu3 %v3526_v24 }
 0x349   : > { %3812 = vmatpush.msra.mxu3 %v3525_v39 }
 0x34b   : > { %3813 = vmatpush.msra.mxu3 %v3524_v41 }
 0x34d   : > { %3814 = vmatpush.msra.mxu3 %v3523_v45 }
 0x34f   : > { %3815 = vmatpush.msra.mxu3 %v3522_v33 }
 0x351   : > { %3816 = vmatpush.msra.mxu3 %v3521_v2 }
 0x352   : > { %4396 = vmatmul.lmr.bf16.vlgmr.msra.gmra.1.mxu3 }
 0x353   : > { %3821 = vmatpush.msra.mxu3 %v3552_v9 }
 0x355   : > { %3822 = vmatpush.msra.mxu3 %v3551_v44 }
 0x357   : > { %3823 = vmatpush.msra.mxu3 %v3550_v29 }
 0x359   : > { %3824 = vmatpush.msra.mxu3 %v3549_v55 }
 0x35b   : > { %3825 = vmatpush.msra.mxu3 %v3548_v34 }
 0x35d   : > { %3826 = vmatpush.msra.mxu3 %v3547_v17 }
 0x35f   : > { %3827 = vmatpush.msra.mxu3 %v3546_v42 }
 0x361   : > { %3828 = vmatpush.msra.mxu3 %v3545_v23 }
 0x363   : > { %3829 = vmatpush.msra.mxu3 %v3544_v61 }
 0x365   : > { %3830 = vmatpush.msra.mxu3 %v3543_v56 }
 0x367   : > { %3831 = vmatpush.msra.mxu3 %v3542_v15 }
 0x369   : > { %3832 = vmatpush.msra.mxu3 %v3541_v40 }
 0x36b   : > { %3833 = vmatpush.msra.mxu3 %v3540_v50 }
 0x36d   : > { %3834 = vmatpush.msra.mxu3 %v3539_v0 }
 0x36f   : > { %3835 = vmatpush.msra.mxu3 %v3538_v13 }
 0x371   : > { %3836 = vmatpush.msra.mxu3 %v3537_v10 }
 0x372   : > { %3837 = vmatmul.f32.vlgmr.msra.gmra.mxu3 %v8235_v47 }
 0x373   : > { %5162 = shalt.err (!%p5159_p8)
}
 0x374   : > { %s5209_s22 = smov 128   ;;  %s5210_s23 = smov 8   ;;  %v3698_v30 = vpop.f32.mrf.mxu3  ;;  %vm3844_vm12 = vcmask 1043456  }
 0x375   : > { %4465 = dma.vmem_to_hbm [thread:$0]  (%p5278_p5), %s3867_s6, 8192, %s3869_s7, %s3849_s8, %s5209_s22, %s5209_s22, %s5210_s23  }
 0x376   : > { %p246_p9 = scmp.lt.s32.totalorder %s5261_s19, 1 }
 0x378   : > { %s9135_s19 = smov (!%p246_p9, %s5261_s19), 1 }
 0x379   : > { %s4257_s27 = sshll.u32 %s9135_s19, 3 }
 0x37a   : > { %s250_s29 = scalar_lea.vmem %s8411_s4, %s4257_s27 }
 0x37c   : > { %v3718_v32 = vpop.f32.mrf.mxu3 }
 0x37d   : > { %v3719_v38 = vadd.f32 %v3718_v32, %v3698_v30 }
 0x384   : > { %v3738_v59 = vpop.f32.mrf.mxu3 }
 0x385   : > { %v3739_v49 = vadd.f32 %v3738_v59, %v3719_v38 }
 0x38c   : > { %v3758_v26 = vpop.f32.mrf.mxu3 }
 0x38d   : > { %v3759_v53 = vadd.f32 %v3758_v26, %v3739_v49 }
 0x395   : > { %v3778_v5 = vpop.f32.mrf.mxu3 }
 0x3b5   : > { %v3798_v47 = vpop.f32.mrf.mxu3 }
 0x3b6   : > { %v3799_v16 = vadd.f32 %v3798_v47, %v3778_v5 }
 0x3d5   : > { %v3818_v7 = vpop.f32.mrf.mxu3 }
 0x3d6   : > { %v3819_v22 = vadd.f32 %v3818_v7, %v3799_v16 }
 0x3f5   : > { %v3838_v54 = vpop.f32.mrf.mxu3 }
 0x3f6   : > { %v3839_v11 = vadd.f32 %v3838_v54, %v3819_v22 }
 0x3f8   : > { %v3843_v1 = vrot.slane %v3839_v11, 4 }
 0x3fa   : > { %v3845_v35 = vsel %vm3844_vm12, %v3759_v53, %v3843_v1 }
 0x3fb   : > { %3847 = vst [vmem:[%s250_s29] sm:$0x77] %v3845_v35 }
 0x3fc PF: > { %p4477_p5 = scmp.ge.s32.totalorder %s5201_s18, 2  ;;  %s3886_s30 = sand.u32 1, %s5189_s15  }
 0x3fd   : > { %s3887_s19 = scalar_lea.sflag [#allocation4], %s3886_s30 }
 0x3fe   : > { %p4472_p10 = pnand %p4477_p5, %p5282_p6 }
 0x400   : > { %p4473_p11 = pneg %p4472_p10 }
 0x402   : > { %5184 = dma.done.wait (%p4473_p11), %s3887_s19, 8192  }
 0x403   : > { %5186 = vsyncadd (%p4473_p11), %s3887_s19, 4294959104  ;;  %p16_p12 = scmp.ge.s32.totalorder %s5265_s21, 4   ;;  %s9128_s15 = smov %s5193_s16 }
 0x404   : > { %s9129_s16 = smov %s5197_s17  ;;  %s9130_s17 = smov %s5276_s24 }
 0x405   : > { %s9131_s18 = smov %s5265_s21  ;;  %18 = sbr.rel (!%p16_p12) target bundleno = 4 (0x4), region = 87 }
 0x40a   :  { %3901 = vsyncpa [#allocation3], 1 }
 0x40b   :  { %3903 = vsyncpa [#allocation3 + $0x1], 1 }
 0x40c   :  { %3904 = vsyncpa [#allocation4], 1 }
 0x40d   :  { %3906 = vsyncpa [#allocation4 + $0x1], 1 }

</bundles_post_ra>
